<compile_context>
chip_gen: v6e
topology: v6e:2x2x1
jax: 0.10.0
libtpu: 0.0.40
codegen_flags: <defaults>
</compile_context>

<pallas_src>
import functools

import numpy as np
import jax
import jax.numpy as jnp
from jax.experimental import pallas as pl
from jax.experimental.pallas import tpu as pltpu

LANE = 128          # TPU lane width: output N padded to this for unmasked stores
ROW_ALIGN = 16      # bf16 sublane packing (16,128); multiples of 16 keep layouts dense


def _cdiv(a, b):
    return (a + b - 1) // b


def _round_up(x, m):
    return _cdiv(x, m) * m


def _choose_row_tile(M, t_max, *, align=ROW_ALIGN, min_programs=2):
    """Row-tile choice: bounded padding waste AND >=2 grid programs when M allows,
    so the 'parallel' grid axis can shard across v7x's two TensorCores."""
    n = max(_cdiv(M, t_max), min(min_programs, _cdiv(M, align)))
    n = max(n, 1)
    tile = _round_up(_cdiv(M, n), align)
    grid = _cdiv(M, tile)
    return tile, grid


# ----------------------------------------------------------------------------
# Pallas kernel: out = act(x @ w + b)   (M-tiled, weights resident per tile)
# x/w are bf16, accumulation f32, bias f32, output dtype selectable.
# ----------------------------------------------------------------------------
def _gemm_kernel(x_ref, w_ref, b_ref, o_ref, *, activation):
    acc = jnp.dot(x_ref[...], w_ref[...], preferred_element_type=jnp.float32)
    acc = acc + b_ref[...]
    if activation == "relu":
        acc = jnp.maximum(acc, 0.0)
    elif activation == "tanh":
        acc = jnp.tanh(acc)
    o_ref[...] = acc.astype(o_ref.dtype)


def pallas_gemm(x, w, b, *, activation="none", out_dtype=jnp.bfloat16, tm_max=512):
    """act(x @ w + b).  x: (M, K);  w: (K, N) bf16;  b: (1, N) f32 (pre-shaped at init)."""
    M, K = x.shape
    N = w.shape[1]
    tm, grid_m = _choose_row_tile(M, tm_max)
    Mp = tm * grid_m
    x = x.astype(jnp.bfloat16)
    if Mp != M:                       # fuses into patch materialization under jit
        x = jnp.pad(x, ((0, Mp - M), (0, 0)))
    out_bytes = Mp * N * jnp.dtype(out_dtype).itemsize
    kernel = functools.partial(_gemm_kernel, activation=activation)
    out = pl.pallas_call(
        kernel,
        out_shape=jax.ShapeDtypeStruct((Mp, N), out_dtype),
        grid=(grid_m,),
        in_specs=[
            pl.BlockSpec((tm, K), lambda i: (i, 0)),
            pl.BlockSpec((K, N), lambda i: (0, 0)),
            pl.BlockSpec((1, N), lambda i: (0, 0)),
        ],
        out_specs=pl.BlockSpec((tm, N), lambda i: (i, 0)),
        compiler_params=pltpu.CompilerParams(
            dimension_semantics=("parallel",),
            vmem_limit_bytes=32 * 1024 * 1024),
        cost_estimate=pl.CostEstimate(
            flops=2 * Mp * K * N,
            transcendentals=0,
            bytes_accessed=2 * (Mp * K + K * N) + 4 * N + out_bytes),
    )(x, w, b)
    if Mp != M:
        out = out[:M]
    return out


# ----------------------------------------------------------------------------
# Pallas kernel: fused policy head (one pallas_call, all weights VMEM-resident)
#   tanh(x @ w1 + b1) -> tanh(. @ w2 + b2) -> . @ wm + bm
# (w1 already has AdaptiveAvgPool folded in; wm/bm lane-padded to 128.)
# ----------------------------------------------------------------------------
def _head_kernel(x_ref, w1_ref, b1_ref, w2_ref, b2_ref, wm_ref, bm_ref, o_ref):
    h = jnp.dot(x_ref[...], w1_ref[...], preferred_element_type=jnp.float32) + b1_ref[...]
    h = jnp.tanh(h).astype(jnp.bfloat16)
    h = jnp.dot(h, w2_ref[...], preferred_element_type=jnp.float32) + b2_ref[...]
    h = jnp.tanh(h).astype(jnp.bfloat16)
    o_ref[...] = (jnp.dot(h, wm_ref[...], preferred_element_type=jnp.float32)
                  + bm_ref[...])


def pallas_policy_head(x, w1, b1, w2, b2, wm, bm, *, tb_max=256):
    B, K = x.shape
    N1, N2, Nm = w1.shape[1], w2.shape[1], wm.shape[1]
    tb, grid_b = _choose_row_tile(B, tb_max)
    Bp = tb * grid_b
    x = x.astype(jnp.bfloat16)
    if Bp != B:
        x = jnp.pad(x, ((0, Bp - B), (0, 0)))
    out = pl.pallas_call(
        _head_kernel,
        out_shape=jax.ShapeDtypeStruct((Bp, Nm), jnp.float32),
        grid=(grid_b,),
        in_specs=[
            pl.BlockSpec((tb, K), lambda i: (i, 0)),
            pl.BlockSpec((K, N1), lambda i: (0, 0)),
            pl.BlockSpec((1, N1), lambda i: (0, 0)),
            pl.BlockSpec((N1, N2), lambda i: (0, 0)),
            pl.BlockSpec((1, N2), lambda i: (0, 0)),
            pl.BlockSpec((N2, Nm), lambda i: (0, 0)),
            pl.BlockSpec((1, Nm), lambda i: (0, 0)),
        ],
        out_specs=pl.BlockSpec((tb, Nm), lambda i: (i, 0)),
        compiler_params=pltpu.CompilerParams(
            dimension_semantics=("parallel",),
            vmem_limit_bytes=32 * 1024 * 1024),
        cost_estimate=pl.CostEstimate(
            flops=2 * Bp * (K * N1 + N1 * N2 + N2 * Nm),
            transcendentals=Bp * (N1 + N2),
            bytes_accessed=2 * (Bp * K + K * N1 + N1 * N2 + N2 * Nm) + 4 * Bp * Nm),
    )(x, w1, b1, w2, b2, wm, bm)
    if Bp != B:
        out = out[:B]
    return out


# ----------------------------------------------------------------------------
# Conv2d (valid padding, stride s) via NHWC im2col + Pallas GEMM (fused ReLU).
# im2col is built from static STRIDED SLICES (no gather lowering).
# ----------------------------------------------------------------------------
def _im2col_nhwc(x, kh, kw, stride):
    # x: (B, H, W, C) -> patches (B*OH*OW, KH*KW*C), feature order (kh, kw, c)
    B, H, W, C = x.shape
    oh = (H - kh) // stride + 1
    ow = (W - kw) // stride + 1
    taps = []
    for i in range(kh):
        for j in range(kw):
            sl = jax.lax.slice(
                x,
                start_indices=(0, i, j, 0),
                limit_indices=(B, i + (oh - 1) * stride + 1,
                               j + (ow - 1) * stride + 1, C),
                strides=(1, stride, stride, 1))        # (B, oh, ow, C)
            taps.append(sl)
    p = jnp.concatenate(taps, axis=-1)                 # (B, oh, ow, kh*kw*C)
    return p.reshape(B * oh * ow, kh * kw * C), oh, ow


def conv2d_nhwc(x, w_gemm, b, kh, kw, stride, cout):
    # x: (B, H, W, Cin) bf16;  w_gemm: (KH*KW*Cin, 128-padded Cout) bf16;  b: (1, 128-padded) f32
    B = x.shape[0]
    patches, oh, ow = _im2col_nhwc(x, kh, kw, stride)
    y = pallas_gemm(patches, w_gemm, b, activation="relu")
    # GEMM Cout is lane-padded to 128 for unmasked stores; slice back to the
    # true channel count so the next layer's K doesn't grow.
    return y.reshape(B, oh, ow, -1)[..., :cout]


# ----------------------------------------------------------------------------
# AdaptiveAvgPool2d((oh, ow)) as a (HW_in, HW_out) averaging matrix (init-time)
# ----------------------------------------------------------------------------
def adaptive_pool_matrix(in_h, in_w, out_h, out_w):
    P = np.zeros((in_h * in_w, out_h * out_w), dtype=np.float32)
    for oi in range(out_h):
        hs = (oi * in_h) // out_h
        he = -(-((oi + 1) * in_h) // out_h)
        for oj in range(out_w):
            ws = (oj * in_w) // out_w
            we = -(-((oj + 1) * in_w) // out_w)
            area = (he - hs) * (we - ws)
            for i in range(hs, he):
                for j in range(ws, we):
                    P[i * in_w + j, oi * out_w + oj] = 1.0 / area
    return P


# ----------------------------------------------------------------------------
# Parameter init (xavier_normal_ weights, PyTorch-default uniform biases).
# All GEMM reshapes, lane padding, pool folding and bf16 casts done ONCE here.
# ----------------------------------------------------------------------------
def init_params(key, input_channels=1, n_actions=2, input_hw=(84, 84)):
    H, W = input_hw
    h1, w1 = (H - 8) // 4 + 1, (W - 8) // 4 + 1      # conv1 output
    h2, w2 = (h1 - 4) // 2 + 1, (w1 - 4) // 2 + 1    # conv2 output
    h3, w3 = (h2 - 3) // 1 + 1, (w2 - 3) // 1 + 1    # conv3 output

    ks = jax.random.split(key, 12)
    p = {}

    def conv_weight(k, cout, cin, kh, kw):
        fan_in, fan_out = cin * kh * kw, cout * kh * kw
        std = (2.0 / (fan_in + fan_out)) ** 0.5
        w = std * jax.random.normal(k, (cout, cin, kh, kw), dtype=jnp.float32)
        # GEMM layout (KH*KW*Cin, Cout) matching im2col feature order (kh, kw, c),
        # Cout zero-padded to the 128-lane width for unmasked output stores.
        wg = jnp.transpose(w, (2, 3, 1, 0)).reshape(kh * kw * cin, cout)
        cout_p = _round_up(cout, LANE)
        wg = jnp.pad(wg, ((0, 0), (0, cout_p - cout)))
        return wg.astype(jnp.bfloat16)

    def conv_bias(k, cout, fan_in):
        bound = 1.0 / (fan_in ** 0.5)
        b = jax.random.uniform(k, (1, cout), jnp.float32, -bound, bound)
        cout_p = _round_up(cout, LANE)
        return jnp.pad(b, ((0, 0), (0, cout_p - cout)))

    def linear(kw_, kb_, n_out, n_in):
        std = (2.0 / (n_in + n_out)) ** 0.5
        w = std * jax.random.normal(kw_, (n_out, n_in), dtype=jnp.float32)
        bound = 1.0 / (n_in ** 0.5)
        b = jax.random.uniform(kb_, (1, n_out), jnp.float32, -bound, bound)
        return w, b

    p["c1_w"] = conv_weight(ks[0], 32, input_channels, 8, 8)
    p["c1_b"] = conv_bias(ks[1], 32, input_channels * 64)
    p["c2_w"] = conv_weight(ks[2], 64, 32, 4, 4)
    p["c2_b"] = conv_bias(ks[3], 64, 32 * 16)
    p["c3_w"] = conv_weight(ks[4], 64, 64, 3, 3)
    p["c3_b"] = conv_bias(ks[5], 64, 64 * 9)

    fc1_w, p["f1_b"] = linear(ks[6], ks[7], 256, 64 * 6 * 6)
    fc2_w, p["f2_b"] = linear(ks[8], ks[9], 256, 256)
    mean_w, mean_b = linear(ks[10], ks[11], n_actions, 256)

    # Fold AdaptiveAvgPool2d((6,6)) into fc1 so fc1 acts directly on the
    # flattened conv3 output in NHWC order (feature index = s*Cout + c).
    P = jnp.asarray(adaptive_pool_matrix(h3, w3, 6, 6))            # (h3*w3, 36)
    fc1_r = fc1_w.reshape(256, 64, 36)                             # (n, c, p)
    fc1_fused = jnp.einsum("ncp,sp->nsc", fc1_r, P)                # (n, s, c)
    p["f1_w"] = fc1_fused.reshape(256, h3 * w3 * 64).T.astype(jnp.bfloat16)
    p["f2_w"] = fc2_w.T.astype(jnp.bfloat16)                       # (256, 256)

    # Mean layer padded on the lane axis to 128 for a lane-dense output store.
    nm_p = max(LANE, _round_up(n_actions, LANE))
    p["mean_w"] = (jnp.zeros((256, nm_p), jnp.float32)
                   .at[:, :n_actions].set(mean_w.T)).astype(jnp.bfloat16)
    p["mean_b"] = jnp.zeros((1, nm_p), jnp.float32).at[:, :n_actions].set(mean_b)

    # log_std exists in the module but is unused by forward (kept for parity;
    # also used to recover the static n_actions).
    p["log_std"] = jnp.zeros((n_actions,), jnp.float32)
    return p


# ----------------------------------------------------------------------------
# Forward pass (matches PolicyNetContinuous.forward -> returns the mean)
# ----------------------------------------------------------------------------
@jax.jit
def policy_net_forward(params, x_nchw):
    # NCHW -> NHWC once; bf16 operands with f32 accumulation inside the kernels.
    x = jnp.transpose(x_nchw, (0, 2, 3, 1)).astype(jnp.bfloat16)
    B = x.shape[0]

    x = conv2d_nhwc(x, params["c1_w"], params["c1_b"], 8, 8, 4, 32)
    x = conv2d_nhwc(x, params["c2_w"], params["c2_b"], 4, 4, 2, 64)
    x = conv2d_nhwc(x, params["c3_w"], params["c3_b"], 3, 3, 1, 64)   # (B, h3, w3, 64)

    feat = x.reshape(B, -1)                                           # (B, h3*w3*64), NHWC flat
    n_actions = params["log_std"].shape[0]
    mean = pallas_policy_head(feat,
                              params["f1_w"], params["f1_b"],
                              params["f2_w"], params["f2_b"],
                              params["mean_w"], params["mean_b"])
    return mean[:, :n_actions]


if __name__ == "__main__":
    key = jax.random.PRNGKey(0)
    k_params, k_x = jax.random.split(key)

    params = init_params(k_params, input_channels=1, n_actions=2, input_hw=(84, 84))
    # Natural input for this conv stack: 84x84 -> 20 -> 9 -> 7 -> pool 6x6.
    x = jax.random.normal(k_x, (2, 1, 84, 84), dtype=jnp.float32)

    mean = policy_net_forward(params, x)
    mean = jax.block_until_ready(mean)
    assert mean.shape == (2, 2), mean.shape
    assert mean.dtype == jnp.float32
    assert bool(jnp.all(jnp.isfinite(mean)))
    print("KERNEL_OK")
</pallas_src>

<mosaic_0001>
module attributes {stable_mosaic.version = 11 : i64} {
  func.func @_gemm_kernel(%arg0: i32, %arg1: memref<400x64xbf16, #tpu.memory_space<vmem>>, %arg2: memref<64x128xbf16, #tpu.memory_space<vmem>>, %arg3: memref<1x128xf32, #tpu.memory_space<vmem>>, %arg4: memref<400x128xbf16, #tpu.memory_space<vmem>>) attributes {dimension_semantics = [#tpu.dimension_semantics<parallel>], iteration_bounds = array<i64: 2>, scalar_prefetch = 0 : i64, scratch_operands = 0 : i64, tpu.core_type = #tpu.core_type<tc>, window_params = [{transform_indices = @transform_0, window_bounds = array<i64: 400, 64>}, {pipeline_mode = #tpu.pipeline_mode<synchronous>, transform_indices = @transform_1, window_bounds = array<i64: 64, 128>}, {pipeline_mode = #tpu.pipeline_mode<synchronous>, transform_indices = @transform_2, window_bounds = array<i64: 1, 128>}, {transform_indices = @transform_3, window_bounds = array<i64: 400, 128>}]} {
    %c0 = arith.constant 0 : index
    %c0_0 = arith.constant 0 : index
    %0 = vector.load %arg1[%c0, %c0_0] : memref<400x64xbf16, #tpu.memory_space<vmem>>, vector<400x64xbf16>
    %c0_1 = arith.constant 0 : index
    %c0_2 = arith.constant 0 : index
    %1 = vector.load %arg2[%c0_1, %c0_2] : memref<64x128xbf16, #tpu.memory_space<vmem>>, vector<64x128xbf16>
    %cst = arith.constant dense<0.000000e+00> : vector<400x128xf32>
    %2 = tpu.matmul %0, %1, %cst {dimension_numbers = #tpu.dot_dimension_numbers<[1], [0], [0], [1], [0, 0, 1, 1], [], []>} : vector<400x64xbf16>, vector<64x128xbf16>, vector<400x128xf32> -> vector<400x128xf32>
    %c0_3 = arith.constant 0 : index
    %c0_4 = arith.constant 0 : index
    %3 = vector.load %arg3[%c0_3, %c0_4] : memref<1x128xf32, #tpu.memory_space<vmem>>, vector<1x128xf32>
    %4 = vector.broadcast %3 : vector<1x128xf32> to vector<400x128xf32>
    %5 = arith.addf %2, %4 : vector<400x128xf32>
    %cst_5 = arith.constant 0.000000e+00 : f32
    %6 = vector.broadcast %cst_5 : f32 to vector<400x128xf32>
    %7 = arith.maximumf %5, %6 : vector<400x128xf32>
    %8 = arith.truncf %7 : vector<400x128xf32> to vector<400x128xbf16>
    %c0_6 = arith.constant 0 : index
    %c0_7 = arith.constant 0 : index
    %9 = vector.load %arg4[%c0_6, %c0_7] : memref<400x128xbf16, #tpu.memory_space<vmem>>, vector<400x128xbf16>
    tpu.vector_store %arg4[%c0_6, %c0_7], %8 {strides = array<i32>} : memref<400x128xbf16, #tpu.memory_space<vmem>>, vector<400x128xbf16>,
    return
  }
  func.func @transform_0(%arg0: i32) -> (i32, i32) {
    %c0_i32 = arith.constant 0 : i32
    %c0_i32_0 = arith.constant 0 : i32
    return %arg0, %c0_i32 : i32, i32
  }
  func.func @transform_1(%arg0: i32) -> (i32, i32) {
    %c0_i32 = arith.constant 0 : i32
    %c0_i32_0 = arith.constant 0 : i32
    %c0_i32_1 = arith.constant 0 : i32
    return %c0_i32, %c0_i32_0 : i32, i32
  }
  func.func @transform_2(%arg0: i32) -> (i32, i32) {
    %c0_i32 = arith.constant 0 : i32
    %c0_i32_0 = arith.constant 0 : i32
    %c0_i32_1 = arith.constant 0 : i32
    return %c0_i32, %c0_i32_0 : i32, i32
  }
  func.func @transform_3(%arg0: i32) -> (i32, i32) {
    %c0_i32 = arith.constant 0 : i32
    %c0_i32_0 = arith.constant 0 : i32
    return %arg0, %c0_i32 : i32, i32
  }
}

module attributes {stable_mosaic.version = 11 : i64} {
  func.func @_gemm_kernel(%arg0: i32, %arg1: memref<96x512xbf16, #tpu.memory_space<vmem>>, %arg2: memref<512x128xbf16, #tpu.memory_space<vmem>>, %arg3: memref<1x128xf32, #tpu.memory_space<vmem>>, %arg4: memref<96x128xbf16, #tpu.memory_space<vmem>>) attributes {dimension_semantics = [#tpu.dimension_semantics<parallel>], iteration_bounds = array<i64: 2>, scalar_prefetch = 0 : i64, scratch_operands = 0 : i64, tpu.core_type = #tpu.core_type<tc>, window_params = [{transform_indices = @transform_0, window_bounds = array<i64: 96, 512>}, {pipeline_mode = #tpu.pipeline_mode<synchronous>, transform_indices = @transform_1, window_bounds = array<i64: 512, 128>}, {pipeline_mode = #tpu.pipeline_mode<synchronous>, transform_indices = @transform_2, window_bounds = array<i64: 1, 128>}, {transform_indices = @transform_3, window_bounds = array<i64: 96, 128>}]} {
    %c0 = arith.constant 0 : index
    %c0_0 = arith.constant 0 : index
    %0 = vector.load %arg1[%c0, %c0_0] : memref<96x512xbf16, #tpu.memory_space<vmem>>, vector<96x512xbf16>
    %c0_1 = arith.constant 0 : index
    %c0_2 = arith.constant 0 : index
    %1 = vector.load %arg2[%c0_1, %c0_2] : memref<512x128xbf16, #tpu.memory_space<vmem>>, vector<512x128xbf16>
    %cst = arith.constant dense<0.000000e+00> : vector<96x128xf32>
    %2 = tpu.matmul %0, %1, %cst {dimension_numbers = #tpu.dot_dimension_numbers<[1], [0], [0], [1], [0, 0, 1, 1], [], []>} : vector<96x512xbf16>, vector<512x128xbf16>, vector<96x128xf32> -> vector<96x128xf32>
    %c0_3 = arith.constant 0 : index
    %c0_4 = arith.constant 0 : index
    %3 = vector.load %arg3[%c0_3, %c0_4] : memref<1x128xf32, #tpu.memory_space<vmem>>, vector<1x128xf32>
    %4 = vector.broadcast %3 : vector<1x128xf32> to vector<96x128xf32>
    %5 = arith.addf %2, %4 : vector<96x128xf32>
    %cst_5 = arith.constant 0.000000e+00 : f32
    %6 = vector.broadcast %cst_5 : f32 to vector<96x128xf32>
    %7 = arith.maximumf %5, %6 : vector<96x128xf32>
    %8 = arith.truncf %7 : vector<96x128xf32> to vector<96x128xbf16>
    %c0_6 = arith.constant 0 : index
    %c0_7 = arith.constant 0 : index
    %9 = vector.load %arg4[%c0_6, %c0_7] : memref<96x128xbf16, #tpu.memory_space<vmem>>, vector<96x128xbf16>
    tpu.vector_store %arg4[%c0_6, %c0_7], %8 {strides = array<i32>} : memref<96x128xbf16, #tpu.memory_space<vmem>>, vector<96x128xbf16>,
    return
  }
  func.func @transform_0(%arg0: i32) -> (i32, i32) {
    %c0_i32 = arith.constant 0 : i32
    %c0_i32_0 = arith.constant 0 : i32
    return %arg0, %c0_i32 : i32, i32
  }
  func.func @transform_1(%arg0: i32) -> (i32, i32) {
    %c0_i32 = arith.constant 0 : i32
    %c0_i32_0 = arith.constant 0 : i32
    %c0_i32_1 = arith.constant 0 : i32
    return %c0_i32, %c0_i32_0 : i32, i32
  }
  func.func @transform_2(%arg0: i32) -> (i32, i32) {
    %c0_i32 = arith.constant 0 : i32
    %c0_i32_0 = arith.constant 0 : i32
    %c0_i32_1 = arith.constant 0 : i32
    return %c0_i32, %c0_i32_0 : i32, i32
  }
  func.func @transform_3(%arg0: i32) -> (i32, i32) {
    %c0_i32 = arith.constant 0 : i32
    %c0_i32_0 = arith.constant 0 : i32
    return %arg0, %c0_i32 : i32, i32
  }
}

module attributes {stable_mosaic.version = 11 : i64} {
  func.func @_gemm_kernel(%arg0: i32, %arg1: memref<64x576xbf16, #tpu.memory_space<vmem>>, %arg2: memref<576x128xbf16, #tpu.memory_space<vmem>>, %arg3: memref<1x128xf32, #tpu.memory_space<vmem>>, %arg4: memref<64x128xbf16, #tpu.memory_space<vmem>>) attributes {dimension_semantics = [#tpu.dimension_semantics<parallel>], iteration_bounds = array<i64: 2>, scalar_prefetch = 0 : i64, scratch_operands = 0 : i64, tpu.core_type = #tpu.core_type<tc>, window_params = [{transform_indices = @transform_0, window_bounds = array<i64: 64, 576>}, {pipeline_mode = #tpu.pipeline_mode<synchronous>, transform_indices = @transform_1, window_bounds = array<i64: 576, 128>}, {pipeline_mode = #tpu.pipeline_mode<synchronous>, transform_indices = @transform_2, window_bounds = array<i64: 1, 128>}, {transform_indices = @transform_3, window_bounds = array<i64: 64, 128>}]} {
    %c0 = arith.constant 0 : index
    %c0_0 = arith.constant 0 : index
    %0 = vector.load %arg1[%c0, %c0_0] : memref<64x576xbf16, #tpu.memory_space<vmem>>, vector<64x576xbf16>
    %c0_1 = arith.constant 0 : index
    %c0_2 = arith.constant 0 : index
    %1 = vector.load %arg2[%c0_1, %c0_2] : memref<576x128xbf16, #tpu.memory_space<vmem>>, vector<576x128xbf16>
    %cst = arith.constant dense<0.000000e+00> : vector<64x128xf32>
    %2 = tpu.matmul %0, %1, %cst {dimension_numbers = #tpu.dot_dimension_numbers<[1], [0], [0], [1], [0, 0, 1, 1], [], []>} : vector<64x576xbf16>, vector<576x128xbf16>, vector<64x128xf32> -> vector<64x128xf32>
    %c0_3 = arith.constant 0 : index
    %c0_4 = arith.constant 0 : index
    %3 = vector.load %arg3[%c0_3, %c0_4] : memref<1x128xf32, #tpu.memory_space<vmem>>, vector<1x128xf32>
    %4 = vector.broadcast %3 : vector<1x128xf32> to vector<64x128xf32>
    %5 = arith.addf %2, %4 : vector<64x128xf32>
    %cst_5 = arith.constant 0.000000e+00 : f32
    %6 = vector.broadcast %cst_5 : f32 to vector<64x128xf32>
    %7 = arith.maximumf %5, %6 : vector<64x128xf32>
    %8 = arith.truncf %7 : vector<64x128xf32> to vector<64x128xbf16>
    %c0_6 = arith.constant 0 : index
    %c0_7 = arith.constant 0 : index
    %9 = vector.load %arg4[%c0_6, %c0_7] : memref<64x128xbf16, #tpu.memory_space<vmem>>, vector<64x128xbf16>
    tpu.vector_store %arg4[%c0_6, %c0_7], %8 {strides = array<i32>} : memref<64x128xbf16, #tpu.memory_space<vmem>>, vector<64x128xbf16>,
    return
  }
  func.func @transform_0(%arg0: i32) -> (i32, i32) {
    %c0_i32 = arith.constant 0 : i32
    %c0_i32_0 = arith.constant 0 : i32
    return %arg0, %c0_i32 : i32, i32
  }
  func.func @transform_1(%arg0: i32) -> (i32, i32) {
    %c0_i32 = arith.constant 0 : i32
    %c0_i32_0 = arith.constant 0 : i32
    %c0_i32_1 = arith.constant 0 : i32
    return %c0_i32, %c0_i32_0 : i32, i32
  }
  func.func @transform_2(%arg0: i32) -> (i32, i32) {
    %c0_i32 = arith.constant 0 : i32
    %c0_i32_0 = arith.constant 0 : i32
    %c0_i32_1 = arith.constant 0 : i32
    return %c0_i32, %c0_i32_0 : i32, i32
  }
  func.func @transform_3(%arg0: i32) -> (i32, i32) {
    %c0_i32 = arith.constant 0 : i32
    %c0_i32_0 = arith.constant 0 : i32
    return %arg0, %c0_i32 : i32, i32
  }
}

module attributes {stable_mosaic.version = 11 : i64} {
  func.func @_head_kernel(%arg0: i32, %arg1: memref<16x3136xbf16, #tpu.memory_space<vmem>>, %arg2: memref<3136x256xbf16, #tpu.memory_space<vmem>>, %arg3: memref<1x256xf32, #tpu.memory_space<vmem>>, %arg4: memref<256x256xbf16, #tpu.memory_space<vmem>>, %arg5: memref<1x256xf32, #tpu.memory_space<vmem>>, %arg6: memref<256x128xbf16, #tpu.memory_space<vmem>>, %arg7: memref<1x128xf32, #tpu.memory_space<vmem>>, %arg8: memref<16x128xf32, #tpu.memory_space<vmem>>) attributes {dimension_semantics = [#tpu.dimension_semantics<parallel>], iteration_bounds = array<i64: 1>, scalar_prefetch = 0 : i64, scratch_operands = 0 : i64, tpu.core_type = #tpu.core_type<tc>, window_params = [{transform_indices = @transform_0, window_bounds = array<i64: 16, 3136>}, {pipeline_mode = #tpu.pipeline_mode<synchronous>, transform_indices = @transform_1, window_bounds = array<i64: 3136, 256>}, {pipeline_mode = #tpu.pipeline_mode<synchronous>, transform_indices = @transform_2, window_bounds = array<i64: 1, 256>}, {pipeline_mode = #tpu.pipeline_mode<synchronous>, transform_indices = @transform_3, window_bounds = array<i64: 256, 256>}, {pipeline_mode = #tpu.pipeline_mode<synchronous>, transform_indices = @transform_4, window_bounds = array<i64: 1, 256>}, {pipeline_mode = #tpu.pipeline_mode<synchronous>, transform_indices = @transform_5, window_bounds = array<i64: 256, 128>}, {pipeline_mode = #tpu.pipeline_mode<synchronous>, transform_indices = @transform_6, window_bounds = array<i64: 1, 128>}, {transform_indices = @transform_7, window_bounds = array<i64: 16, 128>}]} {
    %c0 = arith.constant 0 : index
    %c0_0 = arith.constant 0 : index
    %0 = vector.load %arg1[%c0, %c0_0] : memref<16x3136xbf16, #tpu.memory_space<vmem>>, vector<16x3136xbf16>
    %c0_1 = arith.constant 0 : index
    %c0_2 = arith.constant 0 : index
    %1 = vector.load %arg2[%c0_1, %c0_2] : memref<3136x256xbf16, #tpu.memory_space<vmem>>, vector<3136x256xbf16>
    %cst = arith.constant dense<0.000000e+00> : vector<16x256xf32>
    %2 = tpu.matmul %0, %1, %cst {dimension_numbers = #tpu.dot_dimension_numbers<[1], [0], [0], [1], [0, 0, 1, 1], [], []>} : vector<16x3136xbf16>, vector<3136x256xbf16>, vector<16x256xf32> -> vector<16x256xf32>
    %c0_3 = arith.constant 0 : index
    %c0_4 = arith.constant 0 : index
    %3 = vector.load %arg3[%c0_3, %c0_4] : memref<1x256xf32, #tpu.memory_space<vmem>>, vector<1x256xf32>
    %4 = vector.broadcast %3 : vector<1x256xf32> to vector<16x256xf32>
    %5 = arith.addf %2, %4 : vector<16x256xf32>
    %6 = math.tanh %5 : vector<16x256xf32>
    %7 = arith.truncf %6 : vector<16x256xf32> to vector<16x256xbf16>
    %c0_5 = arith.constant 0 : index
    %c0_6 = arith.constant 0 : index
    %8 = vector.load %arg4[%c0_5, %c0_6] : memref<256x256xbf16, #tpu.memory_space<vmem>>, vector<256x256xbf16>
    %cst_7 = arith.constant dense<0.000000e+00> : vector<16x256xf32>
    %9 = tpu.matmul %7, %8, %cst_7 {dimension_numbers = #tpu.dot_dimension_numbers<[1], [0], [0], [1], [0, 0, 1, 1], [], []>} : vector<16x256xbf16>, vector<256x256xbf16>, vector<16x256xf32> -> vector<16x256xf32>
    %c0_8 = arith.constant 0 : index
    %c0_9 = arith.constant 0 : index
    %10 = vector.load %arg5[%c0_8, %c0_9] : memref<1x256xf32, #tpu.memory_space<vmem>>, vector<1x256xf32>
    %11 = vector.broadcast %10 : vector<1x256xf32> to vector<16x256xf32>
    %12 = arith.addf %9, %11 : vector<16x256xf32>
    %13 = math.tanh %12 : vector<16x256xf32>
    %14 = arith.truncf %13 : vector<16x256xf32> to vector<16x256xbf16>
    %c0_10 = arith.constant 0 : index
    %c0_11 = arith.constant 0 : index
    %15 = vector.load %arg6[%c0_10, %c0_11] : memref<256x128xbf16, #tpu.memory_space<vmem>>, vector<256x128xbf16>
    %cst_12 = arith.constant dense<0.000000e+00> : vector<16x128xf32>
    %16 = tpu.matmul %14, %15, %cst_12 {dimension_numbers = #tpu.dot_dimension_numbers<[1], [0], [0], [1], [0, 0, 1, 1], [], []>} : vector<16x256xbf16>, vector<256x128xbf16>, vector<16x128xf32> -> vector<16x128xf32>
    %c0_13 = arith.constant 0 : index
    %c0_14 = arith.constant 0 : index
    %17 = vector.load %arg7[%c0_13, %c0_14] : memref<1x128xf32, #tpu.memory_space<vmem>>, vector<1x128xf32>
    %18 = vector.broadcast %17 : vector<1x128xf32> to vector<16x128xf32>
    %19 = arith.addf %16, %18 : vector<16x128xf32>
    %c0_15 = arith.constant 0 : index
    %c0_16 = arith.constant 0 : index
    %20 = vector.load %arg8[%c0_15, %c0_16] : memref<16x128xf32, #tpu.memory_space<vmem>>, vector<16x128xf32>
    tpu.vector_store %arg8[%c0_15, %c0_16], %19 {strides = array<i32>} : memref<16x128xf32, #tpu.memory_space<vmem>>, vector<16x128xf32>,
    return
  }
  func.func @transform_0(%arg0: i32) -> (i32, i32) {
    %c0_i32 = arith.constant 0 : i32
    %c0_i32_0 = arith.constant 0 : i32
    return %arg0, %c0_i32 : i32, i32
  }
  func.func @transform_1(%arg0: i32) -> (i32, i32) {
    %c0_i32 = arith.constant 0 : i32
    %c0_i32_0 = arith.constant 0 : i32
    %c0_i32_1 = arith.constant 0 : i32
    return %c0_i32, %c0_i32_0 : i32, i32
  }
  func.func @transform_2(%arg0: i32) -> (i32, i32) {
    %c0_i32 = arith.constant 0 : i32
    %c0_i32_0 = arith.constant 0 : i32
    %c0_i32_1 = arith.constant 0 : i32
    return %c0_i32, %c0_i32_0 : i32, i32
  }
  func.func @transform_3(%arg0: i32) -> (i32, i32) {
    %c0_i32 = arith.constant 0 : i32
    %c0_i32_0 = arith.constant 0 : i32
    %c0_i32_1 = arith.constant 0 : i32
    return %c0_i32, %c0_i32_0 : i32, i32
  }
  func.func @transform_4(%arg0: i32) -> (i32, i32) {
    %c0_i32 = arith.constant 0 : i32
    %c0_i32_0 = arith.constant 0 : i32
    %c0_i32_1 = arith.constant 0 : i32
    return %c0_i32, %c0_i32_0 : i32, i32
  }
  func.func @transform_5(%arg0: i32) -> (i32, i32) {
    %c0_i32 = arith.constant 0 : i32
    %c0_i32_0 = arith.constant 0 : i32
    %c0_i32_1 = arith.constant 0 : i32
    return %c0_i32, %c0_i32_0 : i32, i32
  }
  func.func @transform_6(%arg0: i32) -> (i32, i32) {
    %c0_i32 = arith.constant 0 : i32
    %c0_i32_0 = arith.constant 0 : i32
    %c0_i32_1 = arith.constant 0 : i32
    return %c0_i32, %c0_i32_0 : i32, i32
  }
  func.func @transform_7(%arg0: i32) -> (i32, i32) {
    %c0_i32 = arith.constant 0 : i32
    %c0_i32_0 = arith.constant 0 : i32
    return %arg0, %c0_i32 : i32, i32
  }
}

</mosaic_0001>

<bundles_post_ra>
// kernel: policy_net_forward.4
= control target key start
LH: loop header
LB: loop body
LE: loop exit
PB: predicated region body
PF: predicated region fallthrough
CT: control target
= control target key end

     0   :  { %s1581_s12 = smov 0   ;;  %s1809_s0 = inlined_call_operand.vmem [shape: bf16[800,64], index: 0, kind: input, shape index: {}]   ;;  %s1810_s1 = inlined_call_operand.vmem [shape: bf16[64,128], index: 1, kind: input, shape index: {}]   ;;  %s1811_s2 = inlined_call_operand.vmem [shape: f32[1,128], index: 2, kind: input, shape index: {}]   ;;  %s1812_s3 = inlined_call_operand.vmem [shape: bf16[800,128], index: 3, kind: output, shape index: {}]  }
   0x1 LB: > { %s1054_s13 = sadd.s32 4294967295, %s1557_s12   ;;  %p1058_p0 = scmp.ge.s32.totalorder %s1557_s12, 1  ;;  %s1557_s12 = sphi %s1581_s12, %s13_s12  }
   0x2   : > { %p138_p1 = scmp.lt.s32.totalorder %s1557_s12, 3 }
   0x4   : > { %p139_p2 = pnand %p1058_p0, %p138_p1 }
   0x5   : > { %s162_s18 = smul.u32 (!%p139_p2), 50, %s1054_s13 }
   0x6   : > { %142 = sbr.rel (%p139_p2) target bundleno = 328 (0x148), region = 32 }
   0x7   : > { %p163_p3 = scmp.lt.s32.totalorder (!%p139_p2), %s162_s18, 99 }
   0xb   : > { %v1522_v0 = vld [vmem:[%s1810_s1 + $0x18] sm:$0xff]   ;;  %v1559_v1 = vmov 0.0   ;;  %v1523_v2 = vld [vmem:[%s1810_s1 + $0x10] sm:$0xff]   ;;  %vm1560_vm0 = vmmov 0   ;;  %v1524_v3 = vld [vmem:[%s1810_s1 + $0x8] sm:$0xff]   ;;  %s1814_s18 = smov (!%p163_p3, %s162_s18), 99 }
   0xc   : > { %1396 = vmatprep.subr.bf16.mxu0 %v1559_v1  ;;  %1504 = vmatprep.subr.bf16.mxu1 %v1559_v1  ;;  %s1059_s21 = sshll.u32 %s1814_s18, 2  ;;  %v1525_v4 = vld [vmem:[%s1810_s1] sm:$0xff]   ;;  %vm389_vm1 = vcmask 523264  }
   0xd   : > { %1397 = vmatpush3.bf16.msra.mxu0 %v1522_v0  ;;  %1508 = vmatpush3.bf16.msra.mxu1 %v1522_v0  ;;  %s1616_s24 = scalar_lea.vmem %s1809_s0, %s1059_s21  ;;  %v1722_v30 = vld [vmem:[%s1811_s2] ss:$0 sm:$0xff]  ;;  %s1733_s4 = scalar_lea.vmem %s1812_s3, %s1059_s21 }
   0xe   : > { %1398 = vmatprep.subr.bf16.mxu0 %v1559_v1  ;;  %1505 = vmatprep.subr.bf16.mxu1 %v1559_v1  ;;  %v1526_v5 = vld [vmem:[%s1616_s24] sm:$0xff]   ;;  %v1527_v6 = vld [vmem:[%s1616_s24 + $0x68] sm:$0xff]   ;;  %v1529_v8 = vld [vmem:[%s1616_s24 + $0x70] sm:$0xff]  }
   0xf   : > { %1404 = vmatprep.mubr.msk.bf16.mxu0 %vm1560_vm0, %v1559_v1  ;;  %1456 = vmatprep.mubr.msk.bf16.mxu1 %vm1560_vm0, %v1559_v1  ;;  %v1528_v7 = vld [vmem:[%s1616_s24 + $0x8] sm:$0xff]   ;;  %v1530_v9 = vld [vmem:[%s1616_s24 + $0x10] sm:$0xff]   ;;  %v1531_v10 = vld [vmem:[%s1616_s24 + $0x78] sm:$0xff]  }
  0x10   : > { %v1532_v11 = vld [vmem:[%s1616_s24 + $0x18] sm:$0xff]   ;;  %v1533_v12 = vld [vmem:[%s1616_s24 + $0x80] sm:$0xff]   ;;  %v1535_v14 = vld [vmem:[%s1616_s24 + $0x88] sm:$0xff]  }
  0x11   : > { %1399 = vmatpush3.bf16.msra.mxu0 %v1523_v2  ;;  %1509 = vmatpush3.bf16.msra.mxu1 %v1523_v2  ;;  %v1534_v13 = vld [vmem:[%s1616_s24 + $0x20] sm:$0xff]   ;;  %v1536_v15 = vld [vmem:[%s1616_s24 + $0x28] sm:$0xff]   ;;  %v1537_v16 = vld [vmem:[%s1616_s24 + $0x90] sm:$0xff]  }
  0x12   : > { %1400 = vmatprep.subr.bf16.mxu0 %v1559_v1  ;;  %1506 = vmatprep.subr.bf16.mxu1 %v1559_v1  ;;  %v1538_v17 = vld [vmem:[%s1616_s24 + $0x30] sm:$0xff]   ;;  %v1539_v18 = vld [vmem:[%s1616_s24 + $0x98] sm:$0xff]   ;;  %v1541_v20 = vld [vmem:[%s1616_s24 + $0xa0] sm:$0xff]  }
  0x13   : > { %v1540_v19 = vld [vmem:[%s1616_s24 + $0x38] sm:$0xff]   ;;  %v1542_v21 = vld [vmem:[%s1616_s24 + $0x40] sm:$0xff]   ;;  %v1543_v22 = vld [vmem:[%s1616_s24 + $0xa8] sm:$0xff]  }
  0x14   : > { %v1544_v23 = vld [vmem:[%s1616_s24 + $0x48] sm:$0xff]   ;;  %v1545_v24 = vld [vmem:[%s1616_s24 + $0xb0] sm:$0xff]   ;;  %v1547_v26 = vld [vmem:[%s1616_s24 + $0xb8] sm:$0xff]  }
  0x15   : > { %1401 = vmatpush3.bf16.msra.mxu0 %v1524_v3  ;;  %1510 = vmatpush3.bf16.msra.mxu1 %v1524_v3  ;;  %v1546_v25 = vld [vmem:[%s1616_s24 + $0x50] sm:$0xff]   ;;  %v1548_v27 = vld [vmem:[%s1616_s24 + $0x58] sm:$0xff]   ;;  %v1549_v28 = vld [vmem:[%s1616_s24 + $0xc0] sm:$0xff]  }
  0x16   : > { %1402 = vmatprep.subr.bf16.mxu0 %v1559_v1  ;;  %1507 = vmatprep.subr.bf16.mxu1 %v1559_v1  ;;  %v1550_v29 = vld [vmem:[%s1616_s24 + $0x60] sm:$0xff]  }
  0x19   : > { %1403 = vmatpush3.bf16.msra.mxu0 %v1525_v4  ;;  %1511 = vmatpush3.bf16.msra.mxu1 %v1525_v4 }
  0x1c   : > { %1405 = vmatmul.mubr.msk.bf16.vlgmr.msra.gmra.mxu0 %vm389_vm1, %v1526_v5  ;;  %1457 = vmatmul.mubr.msk.bf16.vlgmr.msra.gmra.mxu1 %vm389_vm1, %v1527_v6 }
  0x1d   : > { %1408 = vmatprep.mubr.msk.bf16.mxu0 %vm1560_vm0, %v1559_v1  ;;  %1460 = vmatprep.mubr.msk.bf16.mxu1 %vm1560_vm0, %v1559_v1 }
  0x24   : > { %1409 = vmatmul.mubr.msk.bf16.gmra.mxu0 %vm389_vm1, %v1528_v7  ;;  %1461 = vmatmul.mubr.msk.bf16.gmra.mxu1 %vm389_vm1, %v1529_v8 }
  0x25   : > { %1412 = vmatprep.mubr.msk.bf16.mxu0 %vm1560_vm0, %v1559_v1  ;;  %1464 = vmatprep.mubr.msk.bf16.mxu1 %vm1560_vm0, %v1559_v1 }
  0x2c   : > { %1413 = vmatmul.mubr.msk.bf16.gmra.mxu0 %vm389_vm1, %v1530_v9  ;;  %1465 = vmatmul.mubr.msk.bf16.gmra.mxu1 %vm389_vm1, %v1531_v10 }
  0x2d   : > { %1416 = vmatprep.mubr.msk.bf16.mxu0 %vm1560_vm0, %v1559_v1  ;;  %1468 = vmatprep.mubr.msk.bf16.mxu1 %vm1560_vm0, %v1559_v1 }
  0x34   : > { %1417 = vmatmul.mubr.msk.bf16.gmra.mxu0 %vm389_vm1, %v1532_v11  ;;  %1469 = vmatmul.mubr.msk.bf16.gmra.mxu1 %vm389_vm1, %v1533_v12 }
  0x35   : > { %1420 = vmatprep.mubr.msk.bf16.mxu0 %vm1560_vm0, %v1559_v1  ;;  %1472 = vmatprep.mubr.msk.bf16.mxu1 %vm1560_vm0, %v1559_v1 }
  0x3c   : > { %1421 = vmatmul.mubr.msk.bf16.gmra.mxu0 %vm389_vm1, %v1534_v13  ;;  %1473 = vmatmul.mubr.msk.bf16.gmra.mxu1 %vm389_vm1, %v1535_v14 }
  0x3d   : > { %1424 = vmatprep.mubr.msk.bf16.mxu0 %vm1560_vm0, %v1559_v1  ;;  %1476 = vmatprep.mubr.msk.bf16.mxu1 %vm1560_vm0, %v1559_v1 }
  0x44   : > { %1425 = vmatmul.mubr.msk.bf16.gmra.mxu0 %vm389_vm1, %v1536_v15  ;;  %1477 = vmatmul.mubr.msk.bf16.gmra.mxu1 %vm389_vm1, %v1537_v16 }
  0x45   : > { %1428 = vmatprep.mubr.msk.bf16.mxu0 %vm1560_vm0, %v1559_v1  ;;  %1480 = vmatprep.mubr.msk.bf16.mxu1 %vm1560_vm0, %v1559_v1 }
  0x4c   : > { %1429 = vmatmul.mubr.msk.bf16.gmra.mxu0 %vm389_vm1, %v1538_v17  ;;  %1481 = vmatmul.mubr.msk.bf16.gmra.mxu1 %vm389_vm1, %v1539_v18 }
  0x4d   : > { %1432 = vmatprep.mubr.msk.bf16.mxu0 %vm1560_vm0, %v1559_v1  ;;  %1484 = vmatprep.mubr.msk.bf16.mxu1 %vm1560_vm0, %v1559_v1 }
  0x54   : > { %1433 = vmatmul.mubr.msk.bf16.gmra.mxu0 %vm389_vm1, %v1540_v19  ;;  %1485 = vmatmul.mubr.msk.bf16.gmra.mxu1 %vm389_vm1, %v1541_v20 }
  0x55   : > { %1436 = vmatprep.mubr.msk.bf16.mxu0 %vm1560_vm0, %v1559_v1  ;;  %1488 = vmatprep.mubr.msk.bf16.mxu1 %vm1560_vm0, %v1559_v1 }
  0x5c   : > { %1437 = vmatmul.mubr.msk.bf16.gmra.mxu0 %vm389_vm1, %v1542_v21  ;;  %1489 = vmatmul.mubr.msk.bf16.gmra.mxu1 %vm389_vm1, %v1543_v22 }
  0x5d   : > { %1440 = vmatprep.mubr.msk.bf16.mxu0 %vm1560_vm0, %v1559_v1  ;;  %1492 = vmatprep.mubr.msk.bf16.mxu1 %vm1560_vm0, %v1559_v1 }
  0x64   : > { %1441 = vmatmul.mubr.msk.bf16.gmra.mxu0 %vm389_vm1, %v1544_v23  ;;  %1493 = vmatmul.mubr.msk.bf16.gmra.mxu1 %vm389_vm1, %v1545_v24 }
  0x65   : > { %1444 = vmatprep.mubr.msk.bf16.mxu0 %vm1560_vm0, %v1559_v1  ;;  %1496 = vmatprep.mubr.msk.bf16.mxu1 %vm1560_vm0, %v1559_v1 }
  0x6c   : > { %1445 = vmatmul.mubr.msk.bf16.gmra.mxu0 %vm389_vm1, %v1546_v25  ;;  %1497 = vmatmul.mubr.msk.bf16.gmra.mxu1 %vm389_vm1, %v1547_v26 }
  0x6d   : > { %1448 = vmatprep.mubr.msk.bf16.mxu0 %vm1560_vm0, %v1559_v1  ;;  %1500 = vmatprep.mubr.msk.bf16.mxu1 %vm1560_vm0, %v1559_v1 }
  0x74   : > { %1449 = vmatmul.mubr.msk.bf16.gmra.mxu0 %vm389_vm1, %v1548_v27  ;;  %1501 = vmatmul.mubr.msk.bf16.gmra.mxu1 %vm389_vm1, %v1549_v28 }
  0x75   : > { %1452 = vmatprep.mubr.msk.bf16.mxu0 %vm1560_vm0, %v1559_v1 }
  0x7c   : > { %1453 = vmatmul.mubr.msk.bf16.gmra.mxu0 %vm389_vm1, %v1550_v29 }
  0xdc   : > { %v499_v31 = vpop.f32.mrf.mxu0  ;;  %v603_v32 = vpop.f32.mrf.mxu1 }
  0xdd   : > { %v604_v33 = vadd.f32 %v1722_v30, %v603_v32  ;;  %v500_v36 = vadd.f32 %v1722_v30, %v499_v31 }
  0xde   : > { %v1406_v34 = vpop.f32.mrf.mxu0  ;;  %v1458_v35 = vpop.f32.mrf.mxu1 }
  0xdf   : > { %v724_v39 = vmax.f32 %v604_v33, 0.0  ;;  %v698_v44 = vmax.f32 %v500_v36, 0.0 }
  0xe0   : > { %v502_v37 = vpop.f32.mrf.mxu0  ;;  %v606_v38 = vpop.f32.mrf.mxu1 }
  0xe1   : > { %v503_v40 = vadd.f32 %v1722_v30, %v502_v37  ;;  %v607_v41 = vadd.f32 %v1722_v30, %v606_v38 }
  0xe2   : > { %v1407_v42 = vpop.f32.mrf.mxu0  ;;  %v1459_v43 = vpop.f32.mrf.mxu1 }
  0xe3   : > { %v699_v45 = vmax.f32 %v503_v40, 0.0  ;;  %v725_v46 = vmax.f32 %v607_v41, 0.0 }
  0xe4   : > { %v507_v47 = vpop.f32.mrf.mxu0  ;;  %v611_v48 = vpop.f32.mrf.mxu1 }
  0xe5   : > { %v1221_v49 = vpack.c.bf16 %v699_v45, %v698_v44  ;;  %v1286_v50 = vpack.c.bf16 %v725_v46, %v724_v39  ;;  %v612_v51 = vadd.f32 %v1722_v30, %v611_v48  ;;  %v508_v54 = vadd.f32 %v1722_v30, %v507_v47 }
  0xe6   : > { %v1410_v52 = vpop.f32.mrf.mxu0  ;;  %v1462_v53 = vpop.f32.mrf.mxu1 }
  0xe7   : > { %1222 = vst [vmem:[%s1733_s4] sm:$0xff] %v1221_v49   ;;  %1355 = vst [vmem:[%s1733_s4 + $0x68] sm:$0xff] %v1286_v50   ;;  %v726_v57 = vmax.f32 %v612_v51, 0.0  ;;  %v700_v62 = vmax.f32 %v508_v54, 0.0 }
  0xe8   : > { %v510_v55 = vpop.f32.mrf.mxu0  ;;  %v614_v56 = vpop.f32.mrf.mxu1 }
  0xe9   : > { %v511_v58 = vadd.f32 %v1722_v30, %v510_v55  ;;  %v615_v59 = vadd.f32 %v1722_v30, %v614_v56 }
  0xea   : > { %v1411_v60 = vpop.f32.mrf.mxu0  ;;  %v1463_v61 = vpop.f32.mrf.mxu1 }
  0xeb   : > { %v701_v63 = vmax.f32 %v511_v58, 0.0  ;;  %v727_v0 = vmax.f32 %v615_v59, 0.0 }
  0xec   : > { %v515_v1 = vpop.f32.mrf.mxu0  ;;  %v619_v2 = vpop.f32.mrf.mxu1 }
  0xed   : > { %v1226_v3 = vpack.c.bf16 %v701_v63, %v700_v62  ;;  %v1291_v4 = vpack.c.bf16 %v727_v0, %v726_v57  ;;  %v620_v5 = vadd.f32 %v1722_v30, %v619_v2  ;;  %v516_v8 = vadd.f32 %v1722_v30, %v515_v1 }
  0xee   : > { %v1414_v6 = vpop.f32.mrf.mxu0  ;;  %v1466_v7 = vpop.f32.mrf.mxu1 }
  0xef   : > { %1343 = vst [vmem:[%s1733_s4 + $0x8] sm:$0xff] %v1226_v3   ;;  %1356 = vst [vmem:[%s1733_s4 + $0x70] sm:$0xff] %v1291_v4   ;;  %v728_v11 = vmax.f32 %v620_v5, 0.0  ;;  %v702_v16 = vmax.f32 %v516_v8, 0.0 }
  0xf0   : > { %v518_v9 = vpop.f32.mrf.mxu0  ;;  %v622_v10 = vpop.f32.mrf.mxu1 }
  0xf1   : > { %v519_v12 = vadd.f32 %v1722_v30, %v518_v9  ;;  %v623_v13 = vadd.f32 %v1722_v30, %v622_v10 }
  0xf2   : > { %v1415_v14 = vpop.f32.mrf.mxu0  ;;  %v1467_v15 = vpop.f32.mrf.mxu1 }
  0xf3   : > { %v703_v17 = vmax.f32 %v519_v12, 0.0  ;;  %v729_v18 = vmax.f32 %v623_v13, 0.0 }
  0xf4   : > { %v523_v19 = vpop.f32.mrf.mxu0  ;;  %v627_v20 = vpop.f32.mrf.mxu1 }
  0xf5   : > { %v1231_v21 = vpack.c.bf16 %v703_v17, %v702_v16  ;;  %v1296_v22 = vpack.c.bf16 %v729_v18, %v728_v11  ;;  %v628_v23 = vadd.f32 %v1722_v30, %v627_v20  ;;  %v524_v26 = vadd.f32 %v1722_v30, %v523_v19 }
  0xf6   : > { %v1418_v24 = vpop.f32.mrf.mxu0  ;;  %v1470_v25 = vpop.f32.mrf.mxu1 }
  0xf7   : > { %1344 = vst [vmem:[%s1733_s4 + $0x10] sm:$0xff] %v1231_v21   ;;  %1357 = vst [vmem:[%s1733_s4 + $0x78] sm:$0xff] %v1296_v22   ;;  %v730_v29 = vmax.f32 %v628_v23, 0.0  ;;  %v704_v35 = vmax.f32 %v524_v26, 0.0 }
  0xf8   : > { %v526_v27 = vpop.f32.mrf.mxu0  ;;  %v630_v28 = vpop.f32.mrf.mxu1 }
  0xf9   : > { %v527_v31 = vadd.f32 %v1722_v30, %v526_v27  ;;  %v631_v32 = vadd.f32 %v1722_v30, %v630_v28 }
  0xfa   : > { %v1419_v33 = vpop.f32.mrf.mxu0  ;;  %v1471_v34 = vpop.f32.mrf.mxu1 }
  0xfb   : > { %v705_v36 = vmax.f32 %v527_v31, 0.0  ;;  %v731_v37 = vmax.f32 %v631_v32, 0.0 }
  0xfc   : > { %v531_v38 = vpop.f32.mrf.mxu0  ;;  %v635_v39 = vpop.f32.mrf.mxu1 }
  0xfd   : > { %v1236_v40 = vpack.c.bf16 %v705_v36, %v704_v35  ;;  %v1301_v41 = vpack.c.bf16 %v731_v37, %v730_v29  ;;  %v636_v42 = vadd.f32 %v1722_v30, %v635_v39  ;;  %v532_v45 = vadd.f32 %v1722_v30, %v531_v38 }
  0xfe   : > { %v1422_v43 = vpop.f32.mrf.mxu0  ;;  %v1474_v44 = vpop.f32.mrf.mxu1 }
  0xff   : > { %1345 = vst [vmem:[%s1733_s4 + $0x18] sm:$0xff] %v1236_v40   ;;  %1358 = vst [vmem:[%s1733_s4 + $0x80] sm:$0xff] %v1301_v41   ;;  %v732_v48 = vmax.f32 %v636_v42, 0.0  ;;  %v706_v53 = vmax.f32 %v532_v45, 0.0 }
 0x100   : > { %v534_v46 = vpop.f32.mrf.mxu0  ;;  %v638_v47 = vpop.f32.mrf.mxu1 }
 0x101   : > { %v535_v49 = vadd.f32 %v1722_v30, %v534_v46  ;;  %v639_v50 = vadd.f32 %v1722_v30, %v638_v47 }
 0x102   : > { %v1423_v51 = vpop.f32.mrf.mxu0  ;;  %v1475_v52 = vpop.f32.mrf.mxu1 }
 0x103   : > { %v707_v54 = vmax.f32 %v535_v49, 0.0  ;;  %v733_v55 = vmax.f32 %v639_v50, 0.0 }
 0x104   : > { %v539_v56 = vpop.f32.mrf.mxu0  ;;  %v643_v57 = vpop.f32.mrf.mxu1 }
 0x105   : > { %v1241_v58 = vpack.c.bf16 %v707_v54, %v706_v53  ;;  %v1306_v59 = vpack.c.bf16 %v733_v55, %v732_v48  ;;  %v644_v60 = vadd.f32 %v1722_v30, %v643_v57  ;;  %v540_v63 = vadd.f32 %v1722_v30, %v539_v56 }
 0x106   : > { %v1426_v61 = vpop.f32.mrf.mxu0  ;;  %v1478_v62 = vpop.f32.mrf.mxu1 }
 0x107   : > { %1346 = vst [vmem:[%s1733_s4 + $0x20] sm:$0xff] %v1241_v58   ;;  %1359 = vst [vmem:[%s1733_s4 + $0x88] sm:$0xff] %v1306_v59   ;;  %v734_v2 = vmax.f32 %v644_v60, 0.0  ;;  %v708_v7 = vmax.f32 %v540_v63, 0.0 }
 0x108   : > { %v542_v0 = vpop.f32.mrf.mxu0  ;;  %v646_v1 = vpop.f32.mrf.mxu1 }
 0x109   : > { %v543_v3 = vadd.f32 %v1722_v30, %v542_v0  ;;  %v647_v4 = vadd.f32 %v1722_v30, %v646_v1 }
 0x10a   : > { %v1427_v5 = vpop.f32.mrf.mxu0  ;;  %v1479_v6 = vpop.f32.mrf.mxu1 }
 0x10b   : > { %v709_v8 = vmax.f32 %v543_v3, 0.0  ;;  %v735_v9 = vmax.f32 %v647_v4, 0.0 }
 0x10c   : > { %v547_v10 = vpop.f32.mrf.mxu0  ;;  %v651_v11 = vpop.f32.mrf.mxu1 }
 0x10d   : > { %v1246_v12 = vpack.c.bf16 %v709_v8, %v708_v7  ;;  %v1311_v13 = vpack.c.bf16 %v735_v9, %v734_v2  ;;  %v652_v14 = vadd.f32 %v1722_v30, %v651_v11  ;;  %v548_v17 = vadd.f32 %v1722_v30, %v547_v10 }
 0x10e   : > { %v1430_v15 = vpop.f32.mrf.mxu0  ;;  %v1482_v16 = vpop.f32.mrf.mxu1 }
 0x10f   : > { %1347 = vst [vmem:[%s1733_s4 + $0x28] sm:$0xff] %v1246_v12   ;;  %1360 = vst [vmem:[%s1733_s4 + $0x90] sm:$0xff] %v1311_v13   ;;  %v736_v20 = vmax.f32 %v652_v14, 0.0  ;;  %v710_v25 = vmax.f32 %v548_v17, 0.0 }
 0x110   : > { %v550_v18 = vpop.f32.mrf.mxu0  ;;  %v654_v19 = vpop.f32.mrf.mxu1 }
 0x111   : > { %v551_v21 = vadd.f32 %v1722_v30, %v550_v18  ;;  %v655_v22 = vadd.f32 %v1722_v30, %v654_v19 }
 0x112   : > { %v1431_v23 = vpop.f32.mrf.mxu0  ;;  %v1483_v24 = vpop.f32.mrf.mxu1 }
 0x113   : > { %v711_v26 = vmax.f32 %v551_v21, 0.0  ;;  %v737_v27 = vmax.f32 %v655_v22, 0.0 }
 0x114   : > { %v555_v28 = vpop.f32.mrf.mxu0  ;;  %v659_v29 = vpop.f32.mrf.mxu1 }
 0x115   : > { %v1251_v31 = vpack.c.bf16 %v711_v26, %v710_v25  ;;  %v1316_v32 = vpack.c.bf16 %v737_v27, %v736_v20  ;;  %v660_v33 = vadd.f32 %v1722_v30, %v659_v29  ;;  %v556_v36 = vadd.f32 %v1722_v30, %v555_v28 }
 0x116   : > { %v1434_v34 = vpop.f32.mrf.mxu0  ;;  %v1486_v35 = vpop.f32.mrf.mxu1 }
 0x117   : > { %1348 = vst [vmem:[%s1733_s4 + $0x30] sm:$0xff] %v1251_v31   ;;  %1361 = vst [vmem:[%s1733_s4 + $0x98] sm:$0xff] %v1316_v32   ;;  %v738_v39 = vmax.f32 %v660_v33, 0.0  ;;  %v712_v44 = vmax.f32 %v556_v36, 0.0 }
 0x118   : > { %v558_v37 = vpop.f32.mrf.mxu0  ;;  %v662_v38 = vpop.f32.mrf.mxu1 }
 0x119   : > { %v559_v40 = vadd.f32 %v1722_v30, %v558_v37  ;;  %v663_v41 = vadd.f32 %v1722_v30, %v662_v38 }
 0x11a   : > { %v1435_v42 = vpop.f32.mrf.mxu0  ;;  %v1487_v43 = vpop.f32.mrf.mxu1 }
 0x11b   : > { %v713_v45 = vmax.f32 %v559_v40, 0.0  ;;  %v739_v46 = vmax.f32 %v663_v41, 0.0 }
 0x11c   : > { %v563_v47 = vpop.f32.mrf.mxu0  ;;  %v667_v48 = vpop.f32.mrf.mxu1 }
 0x11d   : > { %v1256_v49 = vpack.c.bf16 %v713_v45, %v712_v44  ;;  %v1321_v50 = vpack.c.bf16 %v739_v46, %v738_v39  ;;  %v668_v51 = vadd.f32 %v1722_v30, %v667_v48  ;;  %v564_v54 = vadd.f32 %v1722_v30, %v563_v47 }
 0x11e   : > { %v1438_v52 = vpop.f32.mrf.mxu0  ;;  %v1490_v53 = vpop.f32.mrf.mxu1 }
 0x11f   : > { %1349 = vst [vmem:[%s1733_s4 + $0x38] sm:$0xff] %v1256_v49   ;;  %1362 = vst [vmem:[%s1733_s4 + $0xa0] sm:$0xff] %v1321_v50   ;;  %v740_v57 = vmax.f32 %v668_v51, 0.0  ;;  %v714_v62 = vmax.f32 %v564_v54, 0.0 }
 0x120   : > { %v566_v55 = vpop.f32.mrf.mxu0  ;;  %v670_v56 = vpop.f32.mrf.mxu1 }
 0x121   : > { %v567_v58 = vadd.f32 %v1722_v30, %v566_v55  ;;  %v671_v59 = vadd.f32 %v1722_v30, %v670_v56 }
 0x122   : > { %v1439_v60 = vpop.f32.mrf.mxu0  ;;  %v1491_v61 = vpop.f32.mrf.mxu1 }
 0x123   : > { %v715_v63 = vmax.f32 %v567_v58, 0.0  ;;  %v741_v0 = vmax.f32 %v671_v59, 0.0 }
 0x124   : > { %v571_v1 = vpop.f32.mrf.mxu0  ;;  %v675_v2 = vpop.f32.mrf.mxu1 }
 0x125   : > { %v1261_v3 = vpack.c.bf16 %v715_v63, %v714_v62  ;;  %v1326_v4 = vpack.c.bf16 %v741_v0, %v740_v57  ;;  %v676_v5 = vadd.f32 %v1722_v30, %v675_v2  ;;  %v572_v8 = vadd.f32 %v1722_v30, %v571_v1 }
 0x126   : > { %v1442_v6 = vpop.f32.mrf.mxu0  ;;  %v1494_v7 = vpop.f32.mrf.mxu1 }
 0x127   : > { %1350 = vst [vmem:[%s1733_s4 + $0x40] sm:$0xff] %v1261_v3   ;;  %1363 = vst [vmem:[%s1733_s4 + $0xa8] sm:$0xff] %v1326_v4   ;;  %v742_v11 = vmax.f32 %v676_v5, 0.0  ;;  %v716_v16 = vmax.f32 %v572_v8, 0.0 }
 0x128   : > { %v574_v9 = vpop.f32.mrf.mxu0  ;;  %v678_v10 = vpop.f32.mrf.mxu1 }
 0x129   : > { %v575_v12 = vadd.f32 %v1722_v30, %v574_v9  ;;  %v679_v13 = vadd.f32 %v1722_v30, %v678_v10 }
 0x12a   : > { %v1443_v14 = vpop.f32.mrf.mxu0  ;;  %v1495_v15 = vpop.f32.mrf.mxu1 }
 0x12b   : > { %v717_v17 = vmax.f32 %v575_v12, 0.0  ;;  %v743_v18 = vmax.f32 %v679_v13, 0.0 }
 0x12c   : > { %v579_v19 = vpop.f32.mrf.mxu0  ;;  %v683_v20 = vpop.f32.mrf.mxu1 }
 0x12d   : > { %v1266_v21 = vpack.c.bf16 %v717_v17, %v716_v16  ;;  %v1331_v22 = vpack.c.bf16 %v743_v18, %v742_v11  ;;  %v684_v23 = vadd.f32 %v1722_v30, %v683_v20  ;;  %v580_v26 = vadd.f32 %v1722_v30, %v579_v19 }
 0x12e   : > { %v1446_v24 = vpop.f32.mrf.mxu0  ;;  %v1498_v25 = vpop.f32.mrf.mxu1 }
 0x12f   : > { %1351 = vst [vmem:[%s1733_s4 + $0x48] sm:$0xff] %v1266_v21   ;;  %1364 = vst [vmem:[%s1733_s4 + $0xb0] sm:$0xff] %v1331_v22   ;;  %v744_v29 = vmax.f32 %v684_v23, 0.0  ;;  %v718_v35 = vmax.f32 %v580_v26, 0.0 }
 0x130   : > { %v582_v27 = vpop.f32.mrf.mxu0  ;;  %v686_v28 = vpop.f32.mrf.mxu1 }
 0x131   : > { %v583_v31 = vadd.f32 %v1722_v30, %v582_v27  ;;  %v687_v32 = vadd.f32 %v1722_v30, %v686_v28 }
 0x132   : > { %v1447_v33 = vpop.f32.mrf.mxu0  ;;  %v1499_v34 = vpop.f32.mrf.mxu1 }
 0x133   : > { %v719_v36 = vmax.f32 %v583_v31, 0.0  ;;  %v745_v37 = vmax.f32 %v687_v32, 0.0 }
 0x134   : > { %v587_v38 = vpop.f32.mrf.mxu0  ;;  %v691_v39 = vpop.f32.mrf.mxu1 }
 0x135   : > { %v1271_v40 = vpack.c.bf16 %v719_v36, %v718_v35  ;;  %v1336_v41 = vpack.c.bf16 %v745_v37, %v744_v29  ;;  %v692_v42 = vadd.f32 %v1722_v30, %v691_v39  ;;  %v588_v45 = vadd.f32 %v1722_v30, %v587_v38 }
 0x136   : > { %v1450_v43 = vpop.f32.mrf.mxu0  ;;  %v1502_v44 = vpop.f32.mrf.mxu1 }
 0x137   : > { %1352 = vst [vmem:[%s1733_s4 + $0x50] sm:$0xff] %v1271_v40   ;;  %1365 = vst [vmem:[%s1733_s4 + $0xb8] sm:$0xff] %v1336_v41   ;;  %v746_v48 = vmax.f32 %v692_v42, 0.0  ;;  %v720_v53 = vmax.f32 %v588_v45, 0.0 }
 0x138   : > { %v590_v46 = vpop.f32.mrf.mxu0  ;;  %v694_v47 = vpop.f32.mrf.mxu1 }
 0x139   : > { %v591_v49 = vadd.f32 %v1722_v30, %v590_v46  ;;  %v695_v50 = vadd.f32 %v1722_v30, %v694_v47 }
 0x13a   : > { %v1451_v51 = vpop.f32.mrf.mxu0  ;;  %v1503_v52 = vpop.f32.mrf.mxu1 }
 0x13b   : > { %v721_v54 = vmax.f32 %v591_v49, 0.0  ;;  %v747_v55 = vmax.f32 %v695_v50, 0.0 }
 0x13c   : > { %v595_v56 = vpop.f32.mrf.mxu0 }
 0x13d   : > { %v1276_v57 = vpack.c.bf16 %v721_v54, %v720_v53  ;;  %v1341_v58 = vpack.c.bf16 %v747_v55, %v746_v48  ;;  %v596_v60 = vadd.f32 %v1722_v30, %v595_v56 }
 0x13e   : > { %v1454_v59 = vpop.f32.mrf.mxu0 }
 0x13f   : > { %1353 = vst [vmem:[%s1733_s4 + $0x58] sm:$0xff] %v1276_v57   ;;  %1366 = vst [vmem:[%s1733_s4 + $0xc0] sm:$0xff] %v1341_v58   ;;  %v722_v0 = vmax.f32 %v596_v60, 0.0 }
 0x140   : > { %v598_v61 = vpop.f32.mrf.mxu0 }
 0x141   : > { %v599_v62 = vadd.f32 %v1722_v30, %v598_v61 }
 0x142   : > { %v1455_v63 = vpop.f32.mrf.mxu0 }
 0x143   : > { %v723_v1 = vmax.f32 %v599_v62, 0.0 }
 0x145   : > { %v1281_v2 = vpack.c.bf16 %v723_v1, %v722_v0 }
 0x147   : > { %1354 = vst [vmem:[%s1733_s4 + $0x60] sm:$0xff] %v1281_v2  }
 0x148 PF: > { %s13_s12 = sadd.s32 1, %s1557_s12  }
 0x149   : > { %p10_p4 = scmp.ge.s32.totalorder %s13_s12, 4  }
 0x14b   :  { %12 = sbr.rel (!%p10_p4) target bundleno = 1 (0x1), region = 62 }

// kernel: policy_net_forward.5
= control target key start
LH: loop header
LB: loop body
LE: loop exit
PB: predicated region body
PF: predicated region fallthrough
CT: control target
= control target key end

     0   :  { %s1210_s12 = smov 0   ;;  %s1380_s0 = inlined_call_operand.vmem [shape: bf16[192,512], index: 0, kind: input, shape index: {}]   ;;  %s1381_s1 = inlined_call_operand.vmem [shape: bf16[512,128], index: 1, kind: input, shape index: {}]   ;;  %s1382_s2 = inlined_call_operand.vmem [shape: f32[1,128], index: 2, kind: input, shape index: {}]   ;;  %s1383_s3 = inlined_call_operand.vmem [shape: bf16[192,128], index: 3, kind: output, shape index: {}]  }
   0x1 LB: > { %s875_s13 = sadd.s32 4294967295, %s1188_s12   ;;  %p879_p0 = scmp.ge.s32.totalorder %s1188_s12, 1  ;;  %s1188_s12 = sphi %s1210_s12, %s13_s12  }
   0x2   : > { %p139_p1 = scmp.lt.s32.totalorder %s1188_s12, 3 }
   0x4   : > { %p140_p2 = pnand %p879_p0, %p139_p1 }
   0x5   : > { %s164_s19 = smul.u32 (!%p140_p2), 12, %s875_s13 }
   0x6   : > { %143 = sbr.rel (%p140_p2) target bundleno = 295 (0x127), region = 32 }
   0x7   : > { %p165_p3 = scmp.lt.s32.totalorder (!%p140_p2), %s164_s19, 23 }
   0xb   : > { %v1114_v0 = vld [vmem:[%s1381_s1 + $0x78] sm:$0xff]   ;;  %v1118_v4 = vld [vmem:[%s1381_s1 + $0x70] sm:$0xff]   ;;  %v1122_v8 = vld [vmem:[%s1381_s1 + $0x68] sm:$0xff]   ;;  %s1385_s19 = smov (!%p165_p3, %s164_s19), 23 }
   0xc   : > { %v1115_v1 = vld [vmem:[%s1381_s1 + $0xf8] sm:$0xff]   ;;  %1002 = vmatprep.subr.bf16.mxu0 %v1114_v0  ;;  %v1119_v5 = vld [vmem:[%s1381_s1 + $0xf0] sm:$0xff]   ;;  %v1123_v9 = vld [vmem:[%s1381_s1 + $0xe8] sm:$0xff]   ;;  %s954_s18 = sshll.u32 %s1385_s19, 4  ;;  %s882_s7 = sshll.u32 %s1385_s19, 2 }
   0xd   : > { %v1116_v2 = vld [vmem:[%s1381_s1 + $0x38] sm:$0xff]   ;;  %1054 = vmatprep.subr.bf16.mxu1 %v1115_v1  ;;  %v1120_v6 = vld [vmem:[%s1381_s1 + $0x30] sm:$0xff]   ;;  %v1124_v10 = vld [vmem:[%s1381_s1 + $0x28] sm:$0xff]   ;;  %s1316_s13 = scalar_lea.vmem %s1380_s0, %s954_s18  ;;  %s1360_s10 = scalar_lea.vmem %s1383_s3, %s882_s7 }
   0xe   : > { %v1117_v3 = vld [vmem:[%s1381_s1 + $0xb8] sm:$0xff]   ;;  %1003 = vmatpush3.bf16.msra.mxu0 %v1116_v2  ;;  %v1121_v7 = vld [vmem:[%s1381_s1 + $0xb0] sm:$0xff]   ;;  %v1125_v11 = vld [vmem:[%s1381_s1 + $0xa8] sm:$0xff]  }
   0xf   : > { %1055 = vmatpush3.bf16.msra.mxu1 %v1117_v3  ;;  %1004 = vmatprep.subr.bf16.mxu0 %v1118_v4  ;;  %v1126_v12 = vld [vmem:[%s1381_s1 + $0x60] sm:$0xff]   ;;  %v1130_v16 = vld [vmem:[%s1381_s1 + $0x58] sm:$0xff]   ;;  %v1134_v20 = vld [vmem:[%s1381_s1 + $0x50] sm:$0xff]  }
  0x10   : > { %1056 = vmatprep.subr.bf16.mxu1 %v1119_v5  ;;  %v1127_v13 = vld [vmem:[%s1381_s1 + $0xe0] sm:$0xff]   ;;  %v1131_v17 = vld [vmem:[%s1381_s1 + $0xd8] sm:$0xff]   ;;  %v1135_v21 = vld [vmem:[%s1381_s1 + $0xd0] sm:$0xff]  }
  0x11   : > { %v1128_v14 = vld [vmem:[%s1381_s1 + $0x20] sm:$0xff]   ;;  %v1132_v18 = vld [vmem:[%s1381_s1 + $0x18] sm:$0xff]   ;;  %v1136_v22 = vld [vmem:[%s1381_s1 + $0x10] sm:$0xff]  }
  0x12   : > { %1005 = vmatpush3.bf16.msra.mxu0 %v1120_v6  ;;  %v1129_v15 = vld [vmem:[%s1381_s1 + $0xa0] sm:$0xff]   ;;  %v1133_v19 = vld [vmem:[%s1381_s1 + $0x98] sm:$0xff]   ;;  %v1137_v23 = vld [vmem:[%s1381_s1 + $0x90] sm:$0xff]  }
  0x13   : > { %1057 = vmatpush3.bf16.msra.mxu1 %v1121_v7  ;;  %1006 = vmatprep.subr.bf16.mxu0 %v1122_v8  ;;  %v1138_v24 = vld [vmem:[%s1381_s1 + $0x48] sm:$0xff]   ;;  %v1142_v28 = vld [vmem:[%s1381_s1 + $0x40] sm:$0xff]  }
  0x14   : > { %1058 = vmatprep.subr.bf16.mxu1 %v1123_v9  ;;  %v1139_v25 = vld [vmem:[%s1381_s1 + $0xc8] sm:$0xff]   ;;  %v1143_v29 = vld [vmem:[%s1381_s1 + $0xc0] sm:$0xff]  }
  0x15   : > { %v1140_v26 = vld [vmem:[%s1381_s1 + $0x8] sm:$0xff]   ;;  %v1144_v30 = vld [vmem:[%s1381_s1] sm:$0xff]  }
  0x16   : > { %1007 = vmatpush3.bf16.msra.mxu0 %v1124_v10  ;;  %v1141_v27 = vld [vmem:[%s1381_s1 + $0x88] sm:$0xff]   ;;  %v1145_v31 = vld [vmem:[%s1381_s1 + $0x80] sm:$0xff]  }
  0x17   : > { %1059 = vmatpush3.bf16.msra.mxu1 %v1125_v11  ;;  %1008 = vmatprep.subr.bf16.mxu0 %v1126_v12  ;;  %v1146_v32 = vld [vmem:[%s1316_s13] ss:$16 sps:$4 sm:$0xff]   ;;  %v1148_v33 = vld [vmem:[%s1316_s13 + $0x4] ss:$16 sps:$4 sm:$0xff]   ;;  %v1149_v34 = vld [vmem:[%s1316_s13 + $0x8] ss:$16 sps:$4 sm:$0xff]  }
  0x18   : > { %1060 = vmatprep.subr.bf16.mxu1 %v1127_v13  ;;  %v1151_v35 = vld [vmem:[%s1316_s13 + $0xc] ss:$16 sps:$4 sm:$0xff]   ;;  %617 = vmatprep.mubr.bf16.mxu0 %v1148_v33  ;;  %v1152_v36 = vld [vmem:[%s1316_s13 + $0x24] ss:$16 sps:$4 sm:$0xff]   ;;  %v1156_v38 = vld [vmem:[%s1316_s13 + $0x20] ss:$16 sps:$4 sm:$0xff]  }
  0x19   : > { %698 = vmatprep.mubr.bf16.mxu1 %v1151_v35  ;;  %v1154_v37 = vld [vmem:[%s1316_s13 + $0x2c] ss:$16 sps:$4 sm:$0xff]   ;;  %v1157_v39 = vld [vmem:[%s1316_s13 + $0x28] ss:$16 sps:$4 sm:$0xff]   ;;  %v1158_v40 = vld [vmem:[%s1316_s13 + $0x44] ss:$16 sps:$4 sm:$0xff]  }
  0x1a   : > { %1009 = vmatpush3.bf16.msra.mxu0 %v1128_v14  ;;  %v1160_v41 = vld [vmem:[%s1316_s13 + $0x4c] ss:$16 sps:$4 sm:$0xff]   ;;  %v1162_v42 = vld [vmem:[%s1316_s13 + $0x40] ss:$16 sps:$4 sm:$0xff]   ;;  %v1163_v43 = vld [vmem:[%s1316_s13 + $0x48] ss:$16 sps:$4 sm:$0xff]  }
  0x1b   : > { %1061 = vmatpush3.bf16.msra.mxu1 %v1129_v15  ;;  %1010 = vmatprep.subr.bf16.mxu0 %v1130_v16  ;;  %v1164_v44 = vld [vmem:[%s1316_s13 + $0x64] ss:$16 sps:$4 sm:$0xff]   ;;  %v1166_v45 = vld [vmem:[%s1316_s13 + $0x6c] ss:$16 sps:$4 sm:$0xff]   ;;  %v1168_v46 = vld [vmem:[%s1316_s13 + $0x60] ss:$16 sps:$4 sm:$0xff]  }
  0x1c   : > { %1062 = vmatprep.subr.bf16.mxu1 %v1131_v17  ;;  %v1169_v47 = vld [vmem:[%s1316_s13 + $0x68] ss:$16 sps:$4 sm:$0xff]   ;;  %v1170_v48 = vld [vmem:[%s1316_s13 + $0x84] ss:$16 sps:$4 sm:$0xff]   ;;  %v1172_v49 = vld [vmem:[%s1316_s13 + $0x8c] ss:$16 sps:$4 sm:$0xff]  }
  0x1d   : > { %v1174_v50 = vld [vmem:[%s1316_s13 + $0x80] ss:$16 sps:$4 sm:$0xff]   ;;  %v1175_v51 = vld [vmem:[%s1316_s13 + $0x88] ss:$16 sps:$4 sm:$0xff]   ;;  %v1176_v52 = vld [vmem:[%s1316_s13 + $0xa4] ss:$16 sps:$4 sm:$0xff]  }
  0x1e   : > { %1011 = vmatpush3.bf16.msra.mxu0 %v1132_v18  ;;  %v1178_v53 = vld [vmem:[%s1316_s13 + $0xac] ss:$16 sps:$4 sm:$0xff]   ;;  %v1180_v54 = vld [vmem:[%s1316_s13 + $0xa0] ss:$16 sps:$4 sm:$0xff]   ;;  %v1181_v55 = vld [vmem:[%s1316_s13 + $0xa8] ss:$16 sps:$4 sm:$0xff]  }
  0x1f   : > { %1063 = vmatpush3.bf16.msra.mxu1 %v1133_v19  ;;  %1012 = vmatprep.subr.bf16.mxu0 %v1134_v20  ;;  %v1351_v58 = vld [vmem:[%s1382_s2] ss:$0 sm:$0xff] }
  0x20   : > { %1064 = vmatprep.subr.bf16.mxu1 %v1135_v21 }
  0x22   : > { %1013 = vmatpush3.bf16.msra.mxu0 %v1136_v22 }
  0x23   : > { %1065 = vmatpush3.bf16.msra.mxu1 %v1137_v23  ;;  %1014 = vmatprep.subr.bf16.mxu0 %v1138_v24 }
  0x24   : > { %1066 = vmatprep.subr.bf16.mxu1 %v1139_v25 }
  0x26   : > { %1015 = vmatpush3.bf16.msra.mxu0 %v1140_v26 }
  0x27   : > { %1067 = vmatpush3.bf16.msra.mxu1 %v1141_v27  ;;  %1016 = vmatprep.subr.bf16.mxu0 %v1142_v28 }
  0x28   : > { %1068 = vmatprep.subr.bf16.mxu1 %v1143_v29 }
  0x2a   : > { %1017 = vmatpush3.bf16.msra.mxu0 %v1144_v30 }
  0x2b   : > { %1069 = vmatpush3.bf16.msra.mxu1 %v1145_v31 }
  0x2d   : > { %618 = vmatmul.mubr.bf16.vlgmr.msra.gmra.mxu0 %v1146_v32 }
  0x2e   : > { %699 = vmatmul.mubr.bf16.vlgmr.msra.gmra.mxu1 %v1149_v34  ;;  %625 = vmatprep.mubr.bf16.mxu0 %v1152_v36 }
  0x2f   : > { %706 = vmatprep.mubr.bf16.mxu1 %v1154_v37 }
  0x35   : > { %626 = vmatmul.mubr.bf16.gmra.mxu0 %v1156_v38 }
  0x36   : > { %707 = vmatmul.mubr.bf16.gmra.mxu1 %v1157_v39  ;;  %633 = vmatprep.mubr.bf16.mxu0 %v1158_v40 }
  0x37   : > { %714 = vmatprep.mubr.bf16.mxu1 %v1160_v41 }
  0x3d   : > { %634 = vmatmul.mubr.bf16.gmra.mxu0 %v1162_v42 }
  0x3e   : > { %715 = vmatmul.mubr.bf16.gmra.mxu1 %v1163_v43  ;;  %641 = vmatprep.mubr.bf16.mxu0 %v1164_v44 }
  0x3f   : > { %722 = vmatprep.mubr.bf16.mxu1 %v1166_v45 }
  0x45   : > { %642 = vmatmul.mubr.bf16.gmra.mxu0 %v1168_v46 }
  0x46   : > { %723 = vmatmul.mubr.bf16.gmra.mxu1 %v1169_v47  ;;  %649 = vmatprep.mubr.bf16.mxu0 %v1170_v48 }
  0x47   : > { %730 = vmatprep.mubr.bf16.mxu1 %v1172_v49 }
  0x4d   : > { %650 = vmatmul.mubr.bf16.gmra.mxu0 %v1174_v50 }
  0x4e   : > { %731 = vmatmul.mubr.bf16.gmra.mxu1 %v1175_v51  ;;  %657 = vmatprep.mubr.bf16.mxu0 %v1176_v52 }
  0x4f   : > { %738 = vmatprep.mubr.bf16.mxu1 %v1178_v53 }
  0x55   : > { %658 = vmatmul.mubr.bf16.gmra.mxu0 %v1180_v54 }
  0x56   : > { %739 = vmatmul.mubr.bf16.gmra.mxu1 %v1181_v55 }
  0xed   : > { %v1018_v56 = vpop.f32.mrf.mxu0 }
  0xee   : > { %v1070_v57 = vpop.f32.mrf.mxu1 }
  0xef   : > { %v1019_v59 = vpop.f32.mrf.mxu0 }
  0xf0   : > { %v1020_v60 = vadd.f32 %v1019_v59, %v1018_v56  ;;  %v1071_v61 = vpop.f32.mrf.mxu1 }
  0xf1   : > { %v1021_v62 = vpop.f32.mrf.mxu0  ;;  %v1072_v2 = vadd.f32 %v1071_v61, %v1070_v57 }
  0xf2   : > { %v620_v63 = vadd.f32 %v1020_v60, %v1351_v58  ;;  %v1073_v0 = vpop.f32.mrf.mxu1 }
  0xf3   : > { %v1022_v1 = vpop.f32.mrf.mxu0 }
  0xf4   : > { %v1023_v3 = vadd.f32 %v1022_v1, %v1021_v62  ;;  %v1074_v4 = vpop.f32.mrf.mxu1  ;;  %v701_v6 = vadd.f32 %v1072_v2, %v620_v63 }
  0xf5   : > { %v1024_v5 = vpop.f32.mrf.mxu0  ;;  %v1075_v8 = vadd.f32 %v1074_v4, %v1073_v0 }
  0xf6   : > { %v623_v7 = vadd.f32 %v1023_v3, %v1351_v58  ;;  %v1076_v9 = vpop.f32.mrf.mxu1  ;;  %v747_v15 = vmax.f32 %v701_v6, 0.0 }
  0xf7   : > { %v1025_v10 = vpop.f32.mrf.mxu0 }
  0xf8   : > { %v704_v11 = vadd.f32 %v1075_v8, %v623_v7  ;;  %v1026_v12 = vadd.f32 %v1025_v10, %v1024_v5  ;;  %v1077_v13 = vpop.f32.mrf.mxu1 }
  0xf9   : > { %v1027_v14 = vpop.f32.mrf.mxu0  ;;  %v1078_v21 = vadd.f32 %v1077_v13, %v1076_v9 }
  0xfa   : > { %v748_v16 = vmax.f32 %v704_v11, 0.0  ;;  %v628_v17 = vadd.f32 %v1026_v12, %v1351_v58  ;;  %v1079_v18 = vpop.f32.mrf.mxu1 }
  0xfb   : > { %v1028_v19 = vpop.f32.mrf.mxu0 }
  0xfc   : > { %v970_v20 = vpack.c.bf16 %v748_v16, %v747_v15  ;;  %v1029_v22 = vadd.f32 %v1028_v19, %v1027_v14  ;;  %v1080_v23 = vpop.f32.mrf.mxu1  ;;  %v709_v25 = vadd.f32 %v1078_v21, %v628_v17 }
  0xfd   : > { %v1030_v24 = vpop.f32.mrf.mxu0  ;;  %v1081_v27 = vadd.f32 %v1080_v23, %v1079_v18 }
  0xfe   : > { %971 = vst [vmem:[%s1360_s10] sm:$0xff] %v970_v20   ;;  %v631_v26 = vadd.f32 %v1029_v22, %v1351_v58  ;;  %v1082_v28 = vpop.f32.mrf.mxu1  ;;  %v749_v34 = vmax.f32 %v709_v25, 0.0 }
  0xff   : > { %v1031_v29 = vpop.f32.mrf.mxu0 }
 0x100   : > { %v712_v30 = vadd.f32 %v1081_v27, %v631_v26  ;;  %v1032_v31 = vadd.f32 %v1031_v29, %v1030_v24  ;;  %v1083_v32 = vpop.f32.mrf.mxu1 }
 0x101   : > { %v1033_v33 = vpop.f32.mrf.mxu0  ;;  %v1084_v40 = vadd.f32 %v1083_v32, %v1082_v28 }
 0x102   : > { %v750_v35 = vmax.f32 %v712_v30, 0.0  ;;  %v636_v36 = vadd.f32 %v1032_v31, %v1351_v58  ;;  %v1085_v37 = vpop.f32.mrf.mxu1 }
 0x103   : > { %v1034_v38 = vpop.f32.mrf.mxu0 }
 0x104   : > { %v975_v39 = vpack.c.bf16 %v750_v35, %v749_v34  ;;  %v1035_v41 = vadd.f32 %v1034_v38, %v1033_v33  ;;  %v1086_v42 = vpop.f32.mrf.mxu1  ;;  %v717_v44 = vadd.f32 %v1084_v40, %v636_v36 }
 0x105   : > { %v1036_v43 = vpop.f32.mrf.mxu0  ;;  %v1087_v46 = vadd.f32 %v1086_v42, %v1085_v37 }
 0x106   : > { %997 = vst [vmem:[%s1360_s10 + $0x8] sm:$0xff] %v975_v39   ;;  %v639_v45 = vadd.f32 %v1035_v41, %v1351_v58  ;;  %v1088_v47 = vpop.f32.mrf.mxu1  ;;  %v751_v53 = vmax.f32 %v717_v44, 0.0 }
 0x107   : > { %v1037_v48 = vpop.f32.mrf.mxu0 }
 0x108   : > { %v720_v49 = vadd.f32 %v1087_v46, %v639_v45  ;;  %v1038_v50 = vadd.f32 %v1037_v48, %v1036_v43  ;;  %v1089_v51 = vpop.f32.mrf.mxu1 }
 0x109   : > { %v1039_v52 = vpop.f32.mrf.mxu0  ;;  %v1090_v60 = vadd.f32 %v1089_v51, %v1088_v47 }
 0x10a   : > { %v752_v54 = vmax.f32 %v720_v49, 0.0  ;;  %v644_v55 = vadd.f32 %v1038_v50, %v1351_v58  ;;  %v1091_v56 = vpop.f32.mrf.mxu1 }
 0x10b   : > { %v1040_v57 = vpop.f32.mrf.mxu0 }
 0x10c   : > { %v980_v59 = vpack.c.bf16 %v752_v54, %v751_v53  ;;  %v1041_v61 = vadd.f32 %v1040_v57, %v1039_v52  ;;  %v1092_v62 = vpop.f32.mrf.mxu1  ;;  %v725_v0 = vadd.f32 %v1090_v60, %v644_v55 }
 0x10d   : > { %v1042_v63 = vpop.f32.mrf.mxu0  ;;  %v1093_v2 = vadd.f32 %v1092_v62, %v1091_v56 }
 0x10e   : > { %998 = vst [vmem:[%s1360_s10 + $0x10] sm:$0xff] %v980_v59   ;;  %v647_v1 = vadd.f32 %v1041_v61, %v1351_v58  ;;  %v1094_v3 = vpop.f32.mrf.mxu1  ;;  %v753_v9 = vmax.f32 %v725_v0, 0.0 }
 0x10f   : > { %v1043_v4 = vpop.f32.mrf.mxu0 }
 0x110   : > { %v728_v5 = vadd.f32 %v1093_v2, %v647_v1  ;;  %v1044_v6 = vadd.f32 %v1043_v4, %v1042_v63  ;;  %v1095_v7 = vpop.f32.mrf.mxu1 }
 0x111   : > { %v1045_v8 = vpop.f32.mrf.mxu0  ;;  %v1096_v15 = vadd.f32 %v1095_v7, %v1094_v3 }
 0x112   : > { %v754_v10 = vmax.f32 %v728_v5, 0.0  ;;  %v652_v11 = vadd.f32 %v1044_v6, %v1351_v58  ;;  %v1097_v12 = vpop.f32.mrf.mxu1 }
 0x113   : > { %v1046_v13 = vpop.f32.mrf.mxu0 }
 0x114   : > { %v985_v14 = vpack.c.bf16 %v754_v10, %v753_v9  ;;  %v1047_v16 = vadd.f32 %v1046_v13, %v1045_v8  ;;  %v1098_v17 = vpop.f32.mrf.mxu1  ;;  %v733_v19 = vadd.f32 %v1096_v15, %v652_v11 }
 0x115   : > { %v1048_v18 = vpop.f32.mrf.mxu0  ;;  %v1099_v21 = vadd.f32 %v1098_v17, %v1097_v12 }
 0x116   : > { %999 = vst [vmem:[%s1360_s10 + $0x18] sm:$0xff] %v985_v14   ;;  %v655_v20 = vadd.f32 %v1047_v16, %v1351_v58  ;;  %v1100_v22 = vpop.f32.mrf.mxu1  ;;  %v755_v28 = vmax.f32 %v733_v19, 0.0 }
 0x117   : > { %v1049_v23 = vpop.f32.mrf.mxu0 }
 0x118   : > { %v736_v24 = vadd.f32 %v1099_v21, %v655_v20  ;;  %v1050_v25 = vadd.f32 %v1049_v23, %v1048_v18  ;;  %v1101_v26 = vpop.f32.mrf.mxu1 }
 0x119   : > { %v1051_v27 = vpop.f32.mrf.mxu0  ;;  %v1102_v34 = vadd.f32 %v1101_v26, %v1100_v22 }
 0x11a   : > { %v756_v29 = vmax.f32 %v736_v24, 0.0  ;;  %v660_v30 = vadd.f32 %v1050_v25, %v1351_v58  ;;  %v1103_v31 = vpop.f32.mrf.mxu1 }
 0x11b   : > { %v1052_v32 = vpop.f32.mrf.mxu0 }
 0x11c   : > { %v990_v33 = vpack.c.bf16 %v756_v29, %v755_v28  ;;  %v1053_v35 = vadd.f32 %v1052_v32, %v1051_v27  ;;  %v1104_v36 = vpop.f32.mrf.mxu1  ;;  %v741_v37 = vadd.f32 %v1102_v34, %v660_v30 }
 0x11d   : > { %v1105_v39 = vadd.f32 %v1104_v36, %v1103_v31 }
 0x11e   : > { %1000 = vst [vmem:[%s1360_s10 + $0x20] sm:$0xff] %v990_v33   ;;  %v663_v38 = vadd.f32 %v1053_v35, %v1351_v58  ;;  %v757_v41 = vmax.f32 %v741_v37, 0.0 }
 0x120   : > { %v744_v40 = vadd.f32 %v1105_v39, %v663_v38 }
 0x122   : > { %v758_v42 = vmax.f32 %v744_v40, 0.0 }
 0x124   : > { %v995_v43 = vpack.c.bf16 %v758_v42, %v757_v41 }
 0x126   : > { %1001 = vst [vmem:[%s1360_s10 + $0x28] sm:$0xff] %v995_v43  }
 0x127 PF: > { %s13_s12 = sadd.s32 1, %s1188_s12  }
 0x128   : > { %p10_p4 = scmp.ge.s32.totalorder %s13_s12, 4  }
 0x12a   :  { %12 = sbr.rel (!%p10_p4) target bundleno = 1 (0x1), region = 62 }

// kernel: policy_net_forward.6
= control target key start
LH: loop header
LB: loop body
LE: loop exit
PB: predicated region body
PF: predicated region fallthrough
CT: control target
= control target key end

     0   :  { %s1233_s12 = smov 0   ;;  %s1389_s0 = inlined_call_operand.vmem [shape: bf16[128,576], index: 0, kind: input, shape index: {}]   ;;  %s1390_s1 = inlined_call_operand.vmem [shape: bf16[576,128], index: 1, kind: input, shape index: {}]   ;;  %s1391_s2 = inlined_call_operand.vmem [shape: f32[1,128], index: 2, kind: input, shape index: {}]   ;;  %s1392_s3 = inlined_call_operand.vmem [shape: bf16[128,128], index: 3, kind: output, shape index: {}]  }
   0x1 LB: > { %s909_s13 = sadd.s32 4294967295, %s1211_s12   ;;  %p913_p0 = scmp.ge.s32.totalorder %s1211_s12, 1  ;;  %s1211_s12 = sphi %s1233_s12, %s13_s12  }
   0x2   : > { %p139_p1 = scmp.lt.s32.totalorder %s1211_s12, 3 }
   0x4   : > { %p140_p2 = pnand %p913_p0, %p139_p1 }
   0x5   : > { %s914_s19 = sshll.u32 (!%p140_p2), %s909_s13, 3 }
   0x6   : > { %143 = sbr.rel (%p140_p2) target bundleno = 284 (0x11c), region = 32  ;;  %p165_p3 = scmp.lt.s32.totalorder (!%p140_p2), %s914_s19, 15 }
   0xb   : > { %v1141_v0 = vld [vmem:[%s1390_s1 + $0x78] sm:$0xff]   ;;  %v1145_v4 = vld [vmem:[%s1390_s1 + $0x70] sm:$0xff]   ;;  %v1149_v8 = vld [vmem:[%s1390_s1 + $0x68] sm:$0xff]   ;;  %s1394_s19 = smov (!%p165_p3, %s914_s19), 15  ;;  %vm597_vm0 = vcmask 523264  }
   0xc   : > { %v1142_v1 = vld [vmem:[%s1390_s1 + $0xf8] sm:$0xff]   ;;  %1020 = vmatprep.subr.bf16.mxu0 %v1141_v0  ;;  %v1146_v5 = vld [vmem:[%s1390_s1 + $0xf0] sm:$0xff]   ;;  %v1150_v9 = vld [vmem:[%s1390_s1 + $0xe8] sm:$0xff]   ;;  %s1132_s16 = smul.u32 20, %s1394_s19  ;;  %s917_s17 = sshll.u32 %s1394_s19, 2 }
   0xd   : > { %v1143_v2 = vld [vmem:[%s1390_s1 + $0x38] sm:$0xff]   ;;  %1060 = vmatprep.subr.bf16.mxu1 %v1142_v1  ;;  %v1147_v6 = vld [vmem:[%s1390_s1 + $0x30] sm:$0xff]   ;;  %v1151_v10 = vld [vmem:[%s1390_s1 + $0x28] sm:$0xff]   ;;  %s175_s21 = scalar_lea.vmem %s1392_s3, %s917_s17 }
   0xe   : > { %v1144_v3 = vld [vmem:[%s1390_s1 + $0xb8] sm:$0xff]   ;;  %1021 = vmatpush3.bf16.msra.mxu0 %v1143_v2  ;;  %v1148_v7 = vld [vmem:[%s1390_s1 + $0xb0] sm:$0xff]   ;;  %v1152_v11 = vld [vmem:[%s1390_s1 + $0xa8] sm:$0xff]   ;;  %s1339_s13 = scalar_lea.vmem %s1389_s0, %s1132_s16 }
   0xf   : > { %1061 = vmatpush3.bf16.msra.mxu1 %v1144_v3  ;;  %1022 = vmatprep.subr.bf16.mxu0 %v1145_v4  ;;  %v1153_v12 = vld [vmem:[%s1390_s1 + $0x60] sm:$0xff]   ;;  %v1157_v16 = vld [vmem:[%s1390_s1 + $0x58] sm:$0xff]   ;;  %v1161_v20 = vld [vmem:[%s1390_s1 + $0x50] sm:$0xff]  }
  0x10   : > { %1062 = vmatprep.subr.bf16.mxu1 %v1146_v5  ;;  %v1154_v13 = vld [vmem:[%s1390_s1 + $0xe0] sm:$0xff]   ;;  %v1158_v17 = vld [vmem:[%s1390_s1 + $0xd8] sm:$0xff]   ;;  %v1162_v21 = vld [vmem:[%s1390_s1 + $0xd0] sm:$0xff]  }
  0x11   : > { %v1155_v14 = vld [vmem:[%s1390_s1 + $0x20] sm:$0xff]   ;;  %v1159_v18 = vld [vmem:[%s1390_s1 + $0x18] sm:$0xff]   ;;  %v1163_v22 = vld [vmem:[%s1390_s1 + $0x10] sm:$0xff]  }
  0x12   : > { %1023 = vmatpush3.bf16.msra.mxu0 %v1147_v6  ;;  %v1156_v15 = vld [vmem:[%s1390_s1 + $0xa0] sm:$0xff]   ;;  %v1160_v19 = vld [vmem:[%s1390_s1 + $0x98] sm:$0xff]   ;;  %v1164_v23 = vld [vmem:[%s1390_s1 + $0x90] sm:$0xff]  }
  0x13   : > { %1063 = vmatpush3.bf16.msra.mxu1 %v1148_v7  ;;  %1024 = vmatprep.subr.bf16.mxu0 %v1149_v8  ;;  %v1165_v24 = vld [vmem:[%s1390_s1 + $0x48] sm:$0xff]   ;;  %v1169_v28 = vld [vmem:[%s1390_s1 + $0x40] sm:$0xff]   ;;  %v1179_v36 = vld [vmem:[%s1390_s1 + $0x118] sm:$0xff]  }
  0x14   : > { %1064 = vmatprep.subr.bf16.mxu1 %v1150_v9  ;;  %v1166_v25 = vld [vmem:[%s1390_s1 + $0xc8] sm:$0xff]   ;;  %v1170_v29 = vld [vmem:[%s1390_s1 + $0xc0] sm:$0xff]   ;;  %v1186_v39 = vld [vmem:[%s1390_s1 + $0x110] sm:$0xff]  }
  0x15   : > { %v1167_v26 = vld [vmem:[%s1390_s1 + $0x8] sm:$0xff]   ;;  %v1171_v30 = vld [vmem:[%s1390_s1] sm:$0xff]   ;;  %v1189_v43 = vld [vmem:[%s1339_s13 + $0x5c] ss:$20 sps:$4 sm:$0xff]  }
  0x16   : > { %1025 = vmatpush3.bf16.msra.mxu0 %v1151_v10  ;;  %v1168_v27 = vld [vmem:[%s1390_s1 + $0x88] sm:$0xff]   ;;  %v1172_v31 = vld [vmem:[%s1390_s1 + $0x80] sm:$0xff]   ;;  %v1194_v48 = vld [vmem:[%s1339_s13 + $0x7c] ss:$20 sps:$4 sm:$0xff]  }
  0x17   : > { %1065 = vmatpush3.bf16.msra.mxu1 %v1152_v11  ;;  %1026 = vmatprep.subr.bf16.mxu0 %v1153_v12  ;;  %v1173_v32 = vld [vmem:[%s1339_s13] ss:$20 sps:$4 sm:$0xff]   ;;  %v1175_v33 = vld [vmem:[%s1339_s13 + $0x4] ss:$20 sps:$4 sm:$0xff]   ;;  %v1176_v34 = vld [vmem:[%s1339_s13 + $0x8] ss:$20 sps:$4 sm:$0xff]  }
  0x18   : > { %1066 = vmatprep.subr.bf16.mxu1 %v1154_v13  ;;  %v1178_v35 = vld [vmem:[%s1339_s13 + $0xc] ss:$20 sps:$4 sm:$0xff]   ;;  %642 = vmatprep.mubr.bf16.mxu0 %v1175_v33  ;;  %v1182_v38 = vld [vmem:[%s1339_s13 + $0x34] ss:$20 sps:$4 sm:$0xff]   ;;  %v1185_v41 = vld [vmem:[%s1339_s13 + $0x30] ss:$20 sps:$4 sm:$0xff]  }
  0x19   : > { %707 = vmatprep.mubr.bf16.mxu1 %v1178_v35  ;;  %v1180_v37 = vld [vmem:[%s1339_s13 + $0x2c] ss:$20 sps:$4 sm:$0xff]   ;;  %v1184_v40 = vld [vmem:[%s1339_s13 + $0x28] ss:$20 sps:$4 sm:$0xff]   ;;  %v1191_v46 = vld [vmem:[%s1339_s13 + $0x50] ss:$20 sps:$4 sm:$0xff]  }
  0x1a   : > { %1027 = vmatpush3.bf16.msra.mxu0 %v1155_v14  ;;  %v1187_v42 = vld [vmem:[%s1339_s13 + $0x54] ss:$20 sps:$4 sm:$0xff]   ;;  %v1200_v45 = vld [vmem:[%s1390_s1 + $0x100] sm:$0xff]   ;;  %v1192_v47 = vld [vmem:[%s1339_s13 + $0x58] ss:$20 sps:$4 sm:$0xff]  }
  0x1b   : > { %1067 = vmatpush3.bf16.msra.mxu1 %v1156_v15  ;;  %1028 = vmatprep.subr.bf16.mxu0 %v1157_v16  ;;  %v1193_v44 = vld [vmem:[%s1390_s1 + $0x108] sm:$0xff]   ;;  %v1196_v49 = vld [vmem:[%s1339_s13 + $0x84] ss:$20 sps:$4 sm:$0xff]   ;;  %v1199_v51 = vld [vmem:[%s1339_s13 + $0x80] ss:$20 sps:$4 sm:$0xff]  }
  0x1c   : > { %1068 = vmatprep.subr.bf16.mxu1 %v1158_v17  ;;  %v1198_v50 = vld [vmem:[%s1339_s13 + $0x78] ss:$20 sps:$4 sm:$0xff]   ;;  %v1201_v52 = vld [vmem:[%s1339_s13 + $0x10] ss:$20 sps:$4 sm:$0xff]   ;;  %v1202_v53 = vld [vmem:[%s1339_s13 + $0x60] ss:$20 sps:$4 sm:$0xff]  }
  0x1d   : > { %v1203_v54 = vld [vmem:[%s1339_s13 + $0x38] ss:$20 sps:$4 sm:$0xff]   ;;  %v1204_v55 = vld [vmem:[%s1339_s13 + $0x88] ss:$20 sps:$4 sm:$0xff]  }
  0x1e   : > { %1029 = vmatpush3.bf16.msra.mxu0 %v1159_v18 }
  0x1f   : > { %1069 = vmatpush3.bf16.msra.mxu1 %v1160_v19  ;;  %1030 = vmatprep.subr.bf16.mxu0 %v1161_v20 }
  0x20   : > { %1070 = vmatprep.subr.bf16.mxu1 %v1162_v21  ;;  %v918_v21 = vld [vmem:[%s1391_s2] ss:$0 sm:$0xff] }
  0x22   : > { %1031 = vmatpush3.bf16.msra.mxu0 %v1163_v22 }
  0x23   : > { %1071 = vmatpush3.bf16.msra.mxu1 %v1164_v23  ;;  %1032 = vmatprep.subr.bf16.mxu0 %v1165_v24 }
  0x24   : > { %1072 = vmatprep.subr.bf16.mxu1 %v1166_v25 }
  0x26   : > { %1033 = vmatpush3.bf16.msra.mxu0 %v1167_v26 }
  0x27   : > { %1073 = vmatpush3.bf16.msra.mxu1 %v1168_v27  ;;  %1034 = vmatprep.subr.bf16.mxu0 %v1169_v28 }
  0x28   : > { %1074 = vmatprep.subr.bf16.mxu1 %v1170_v29 }
  0x2a   : > { %1035 = vmatpush3.bf16.msra.mxu0 %v1171_v30 }
  0x2b   : > { %1075 = vmatpush3.bf16.msra.mxu1 %v1172_v31  ;;  %1108 = vmatprep.subr.bf16.mxu0 %v1179_v36 }
  0x2c   : > { %1124 = vmatprep.subr.bf16.mxu1 %v1179_v36 }
  0x2d   : > { %643 = vmatmul.mubr.bf16.vlgmr.msra.gmra.mxu0 %v1173_v32 }
  0x2e   : > { %708 = vmatmul.mubr.bf16.vlgmr.msra.gmra.mxu1 %v1176_v34  ;;  %1109 = vmatpush3.bf16.msra.mxu0 %v1179_v36 }
  0x2f   : > { %1128 = vmatpush3.bf16.msra.mxu1 %v1179_v36  ;;  %650 = vmatprep.mubr.bf16.mxu0 %v1180_v37 }
  0x30   : > { %715 = vmatprep.mubr.bf16.mxu1 %v1182_v38  ;;  %1110 = vmatprep.subr.bf16.mxu0 %v1186_v39 }
  0x31   : > { %1125 = vmatprep.subr.bf16.mxu1 %v1186_v39 }
  0x32   : > { %1111 = vmatpush3.bf16.msra.mxu0 %v1186_v39 }
  0x33   : > { %1129 = vmatpush3.bf16.msra.mxu1 %v1186_v39  ;;  %1112 = vmatprep.subr.bf16.mxu0 %v1193_v44 }
  0x34   : > { %1126 = vmatprep.subr.bf16.mxu1 %v1193_v44 }
  0x35   : > { %651 = vmatmul.mubr.bf16.gmra.mxu0 %v1184_v40 }
  0x36   : > { %716 = vmatmul.mubr.bf16.gmra.mxu1 %v1185_v41  ;;  %658 = vmatprep.mubr.bf16.mxu0 %v1187_v42 }
  0x37   : > { %723 = vmatprep.mubr.bf16.mxu1 %v1189_v43  ;;  %1113 = vmatpush3.bf16.msra.mxu0 %v1193_v44 }
  0x38   : > { %1130 = vmatpush3.bf16.msra.mxu1 %v1193_v44  ;;  %1114 = vmatprep.subr.bf16.mxu0 %v1200_v45 }
  0x39   : > { %1127 = vmatprep.subr.bf16.mxu1 %v1200_v45 }
  0x3b   : > { %1115 = vmatpush3.bf16.msra.mxu0 %v1200_v45 }
  0x3c   : > { %1131 = vmatpush3.bf16.msra.mxu1 %v1200_v45 }
  0x3d   : > { %659 = vmatmul.mubr.bf16.gmra.mxu0 %v1191_v46 }
  0x3e   : > { %724 = vmatmul.mubr.bf16.gmra.mxu1 %v1192_v47  ;;  %666 = vmatprep.mubr.bf16.mxu0 %v1194_v48 }
  0x3f   : > { %731 = vmatprep.mubr.bf16.mxu1 %v1196_v49 }
  0x45   : > { %667 = vmatmul.mubr.bf16.gmra.mxu0 %v1198_v50 }
  0x46   : > { %732 = vmatmul.mubr.bf16.gmra.mxu1 %v1199_v51  ;;  %1116 = vmatprep.mubr.msk.bf16.mxu0 %vm597_vm0, %v1201_v52 }
  0x47   : > { %1120 = vmatprep.mubr.msk.bf16.mxu1 %vm597_vm0, %v1202_v53 }
  0x4d   : > { %1117 = vmatmul.mubr.msk.bf16.vlgmr.msra.gmra.mxu0 %vm597_vm0, %v1203_v54 }
  0x4e   : > { %1121 = vmatmul.mubr.msk.bf16.vlgmr.msra.gmra.mxu1 %vm597_vm0, %v1204_v55 }
  0xed   : > { %v1036_v56 = vpop.f32.mrf.mxu0 }
  0xee   : > { %v1076_v57 = vpop.f32.mrf.mxu1 }
  0xef   : > { %v1037_v58 = vpop.f32.mrf.mxu0 }
  0xf0   : > { %v1077_v59 = vpop.f32.mrf.mxu1  ;;  %v1038_v19 = vadd.f32 %v1037_v58, %v1036_v56 }
  0xf1   : > { %v1039_v60 = vpop.f32.mrf.mxu0  ;;  %v1078_v39 = vadd.f32 %v1077_v59, %v1076_v57 }
  0xf2   : > { %v1079_v61 = vpop.f32.mrf.mxu1  ;;  %v645_v31 = vadd.f32 %v1038_v19, %v918_v21 }
  0xf3   : > { %v1040_v62 = vpop.f32.mrf.mxu0 }
  0xf4   : > { %v1080_v63 = vpop.f32.mrf.mxu1  ;;  %v1041_v25 = vadd.f32 %v1040_v62, %v1039_v60  ;;  %v710_v51 = vadd.f32 %v1078_v39, %v645_v31 }
  0xf5   : > { %v1042_v0 = vpop.f32.mrf.mxu0  ;;  %v1081_v53 = vadd.f32 %v1080_v63, %v1079_v61 }
  0xf6   : > { %v1082_v1 = vpop.f32.mrf.mxu1  ;;  %v648_v40 = vadd.f32 %v1041_v25, %v918_v21 }
  0xf7   : > { %v1043_v2 = vpop.f32.mrf.mxu0 }
  0xf8   : > { %v1083_v3 = vpop.f32.mrf.mxu1  ;;  %v1044_v17 = vadd.f32 %v1043_v2, %v1042_v0 }
  0xf9   : > { %v1045_v4 = vpop.f32.mrf.mxu0  ;;  %v1084_v35 = vadd.f32 %v1083_v3, %v1082_v1  ;;  %v713_v3 = vadd.f32 %v1081_v53, %v648_v40 }
  0xfa   : > { %v1085_v5 = vpop.f32.mrf.mxu1  ;;  %v653_v28 = vadd.f32 %v1044_v17, %v918_v21 }
  0xfb   : > { %v1046_v6 = vpop.f32.mrf.mxu0 }
  0xfc   : > { %v1086_v7 = vpop.f32.mrf.mxu1  ;;  %v1047_v22 = vadd.f32 %v1046_v6, %v1045_v4  ;;  %v718_v47 = vadd.f32 %v1084_v35, %v653_v28 }
  0xfd   : > { %v1048_v8 = vpop.f32.mrf.mxu0  ;;  %v1087_v44 = vadd.f32 %v1086_v7, %v1085_v5 }
  0xfe   : > { %v1088_v9 = vpop.f32.mrf.mxu1  ;;  %v656_v36 = vadd.f32 %v1047_v22, %v918_v21 }
  0xff   : > { %v1049_v10 = vpop.f32.mrf.mxu0 }
 0x100   : > { %v1089_v11 = vpop.f32.mrf.mxu1  ;;  %v1050_v26 = vadd.f32 %v1049_v10, %v1048_v8  ;;  %v721_v56 = vadd.f32 %v1087_v44, %v656_v36 }
 0x101   : > { %v1051_v12 = vpop.f32.mrf.mxu0  ;;  %v1090_v49 = vadd.f32 %v1089_v11, %v1088_v9 }
 0x102   : > { %v1091_v13 = vpop.f32.mrf.mxu1  ;;  %v661_v41 = vadd.f32 %v1050_v26, %v918_v21 }
 0x103   : > { %v1052_v14 = vpop.f32.mrf.mxu0 }
 0x104   : > { %v1092_v15 = vpop.f32.mrf.mxu1  ;;  %v1053_v32 = vadd.f32 %v1052_v14, %v1051_v12  ;;  %v726_v60 = vadd.f32 %v1090_v49, %v661_v41 }
 0x105   : > { %v1054_v16 = vpop.f32.mrf.mxu0  ;;  %v1093_v57 = vadd.f32 %v1092_v15, %v1091_v13 }
 0x106   : > { %v1094_v18 = vpop.f32.mrf.mxu1  ;;  %v664_v50 = vadd.f32 %v1053_v32, %v918_v21 }
 0x107   : > { %v1055_v20 = vpop.f32.mrf.mxu0 }
 0x108   : > { %v1056_v23 = vadd.f32 %v1055_v20, %v1054_v16  ;;  %v1095_v24 = vpop.f32.mrf.mxu1  ;;  %v729_v7 = vadd.f32 %v1093_v57, %v664_v50 }
 0x109   : > { %v1057_v27 = vpop.f32.mrf.mxu0  ;;  %v1096_v33 = vadd.f32 %v1095_v24, %v1094_v18 }
 0x10a   : > { %v669_v29 = vadd.f32 %v1056_v23, %v918_v21  ;;  %v1097_v30 = vpop.f32.mrf.mxu1 }
 0x10b   : > { %v1058_v34 = vpop.f32.mrf.mxu0 }
 0x10c   : > { %v1059_v37 = vadd.f32 %v1058_v34, %v1057_v27  ;;  %v1098_v38 = vpop.f32.mrf.mxu1  ;;  %v734_v43 = vadd.f32 %v1096_v33, %v669_v29 }
 0x10d   : > { %v1118_v42 = vpop.f32.mrf.mxu0  ;;  %v1099_v46 = vadd.f32 %v1098_v38, %v1097_v30 }
 0x10e   : > { %v672_v45 = vadd.f32 %v1059_v37, %v918_v21  ;;  %v1122_v48 = vpop.f32.mrf.mxu1  ;;  %v783_v54 = vadd.f32 %v1118_v42, %v718_v47 }
 0x10f   : > { %v774_v52 = vpop.f32.mrf.mxu0  ;;  %v799_v59 = vadd.f32 %v1122_v48, %v734_v43 }
 0x110   : > { %v790_v55 = vpop.f32.mrf.mxu1  ;;  %v737_v58 = vadd.f32 %v1099_v46, %v672_v45  ;;  %v775_v0 = vadd.f32 %v774_v52, %v710_v51  ;;  %v807_v8 = vmax.f32 %v783_v54, 0.0 }
 0x111   : > { %v1119_v62 = vpop.f32.mrf.mxu0  ;;  %v791_v4 = vadd.f32 %v790_v55, %v726_v60  ;;  %v811_v10 = vmax.f32 %v799_v59, 0.0 }
 0x112   : > { %v786_v1 = vadd.f32 %v1119_v62, %v721_v56  ;;  %v1123_v2 = vpop.f32.mrf.mxu1  ;;  %v805_v13 = vmax.f32 %v775_v0, 0.0 }
 0x113   : > { %v802_v5 = vadd.f32 %v1123_v2, %v737_v58  ;;  %v777_v6 = vpop.f32.mrf.mxu0  ;;  %v809_v16 = vmax.f32 %v791_v4, 0.0 }
 0x114   : > { %v808_v9 = vmax.f32 %v786_v1, 0.0  ;;  %v778_v61 = vadd.f32 %v777_v6, %v713_v3  ;;  %v793_v63 = vpop.f32.mrf.mxu1 }
 0x115   : > { %v812_v11 = vmax.f32 %v802_v5, 0.0  ;;  %v794_v12 = vadd.f32 %v793_v63, %v729_v7 }
 0x116   : > { %v1005_v14 = vpack.c.bf16 %v808_v9, %v807_v8  ;;  %v806_v15 = vmax.f32 %v778_v61, 0.0 }
 0x117   : > { %v1015_v17 = vpack.c.bf16 %v812_v11, %v811_v10  ;;  %v810_v18 = vmax.f32 %v794_v12, 0.0 }
 0x118   : > { %1017 = vst [vmem:[%s175_s21 + $0x8] sm:$0xff] %v1005_v14   ;;  %v1000_v19 = vpack.c.bf16 %v806_v15, %v805_v13 }
 0x119   : > { %1019 = vst [vmem:[%s175_s21 + $0x18] sm:$0xff] %v1015_v17   ;;  %v1010_v20 = vpack.c.bf16 %v810_v18, %v809_v16 }
 0x11a   : > { %1001 = vst [vmem:[%s175_s21] sm:$0xff] %v1000_v19  }
 0x11b   : > { %1018 = vst [vmem:[%s175_s21 + $0x10] sm:$0xff] %v1010_v20  }
 0x11c PF: > { %s13_s12 = sadd.s32 1, %s1211_s12  }
 0x11d   : > { %p10_p4 = scmp.ge.s32.totalorder %s13_s12, 4  }
 0x11f   :  { %12 = sbr.rel (!%p10_p4) target bundleno = 1 (0x1), region = 62 }

// kernel: policy_net_forward.7
= control target key start
LH: loop header
LB: loop body
LE: loop exit
PB: predicated region body
PF: predicated region fallthrough
CT: control target
= control target key end

     0   :  { %vm2542_vm0 = vcmask 523264   ;;  %s6204_s1 = inlined_call_operand.vmem [shape: bf16[3136,256], index: 1, kind: input, shape index: {}]   ;;  %s6205_s0 = inlined_call_operand.vmem [shape: bf16[16,3136], index: 0, kind: input, shape index: {}]   ;;  %s6206_s3 = inlined_call_operand.vmem [shape: bf16[256,256], index: 3, kind: input, shape index: {}]   ;;  %s6207_s5 = inlined_call_operand.vmem [shape: bf16[256,128], index: 5, kind: input, shape index: {}]   ;;  %s6208_s2 = inlined_call_operand.vmem [shape: f32[1,256], index: 2, kind: input, shape index: {}]   ;;  %s6209_s4 = inlined_call_operand.vmem [shape: f32[1,256], index: 4, kind: input, shape index: {}]   ;;  %s6210_s6 = inlined_call_operand.vmem [shape: f32[1,128], index: 6, kind: input, shape index: {}]   ;;  %s6211_s7 = inlined_call_operand.vmem [shape: f32[16,128], index: 7, kind: output, shape index: {}]  }
   0x1   :  { %v4036_v0 = vld [vmem:[%s6204_s1 + $0x74] ss:$8 sps:$4 sm:$0xff]   ;;  %v4038_v1 = vld [vmem:[%s6204_s1 + $0x70] ss:$8 sps:$4 sm:$0xff]   ;;  %v4042_v4 = vld [vmem:[%s6204_s1 + $0x64] ss:$8 sps:$4 sm:$0xff]  }
   0x2   :  { %2546 = vmatprep.subr.bf16.mxu0 %v4036_v0  ;;  %v4039_v2 = vld [vmem:[%s6204_s1 + $0x174] ss:$8 sps:$4 sm:$0xff]   ;;  %v4041_v3 = vld [vmem:[%s6204_s1 + $0x170] ss:$8 sps:$4 sm:$0xff]   ;;  %v4044_v5 = vld [vmem:[%s6204_s1 + $0x60] ss:$8 sps:$4 sm:$0xff]  }
   0x3   :  { %2547 = vmatpush1.bf16.msra.mxu0 %v4038_v1  ;;  %2589 = vmatprep.subr.bf16.mxu1 %v4039_v2  ;;  %v4045_v6 = vld [vmem:[%s6204_s1 + $0x164] ss:$8 sps:$4 sm:$0xff]   ;;  %v4047_v7 = vld [vmem:[%s6204_s1 + $0x160] ss:$8 sps:$4 sm:$0xff]   ;;  %v4048_v8 = vld [vmem:[%s6204_s1 + $0x54] ss:$8 sps:$4 sm:$0xff]  }
   0x4   :  { %2590 = vmatpush1.bf16.msra.mxu1 %v4041_v3  ;;  %2548 = vmatprep.subr.bf16.mxu0 %v4042_v4  ;;  %v4050_v9 = vld [vmem:[%s6204_s1 + $0x50] ss:$8 sps:$4 sm:$0xff]   ;;  %v4051_v10 = vld [vmem:[%s6204_s1 + $0x154] ss:$8 sps:$4 sm:$0xff]   ;;  %v4054_v11 = vld [vmem:[%s6204_s1 + $0x44] ss:$8 sps:$4 sm:$0xff]  }
   0x5   :  { %2591 = vmatprep.subr.bf16.mxu1 %v4045_v6  ;;  %v4053_v12 = vld [vmem:[%s6204_s1 + $0x150] ss:$8 sps:$4 sm:$0xff]   ;;  %v4057_v13 = vld [vmem:[%s6204_s1 + $0x144] ss:$8 sps:$4 sm:$0xff]   ;;  %v4056_v14 = vld [vmem:[%s6204_s1 + $0x40] ss:$8 sps:$4 sm:$0xff]  }
   0x6   :  { %v4060_v15 = vld [vmem:[%s6204_s1 + $0x34] ss:$8 sps:$4 sm:$0xff]   ;;  %v4059_v16 = vld [vmem:[%s6204_s1 + $0x140] ss:$8 sps:$4 sm:$0xff]   ;;  %v4062_v18 = vld [vmem:[%s6204_s1 + $0x30] ss:$8 sps:$4 sm:$0xff]  }
   0x7   :  { %2549 = vmatpush1.bf16.msra.mxu0 %v4044_v5  ;;  %v4063_v17 = vld [vmem:[%s6204_s1 + $0x134] ss:$8 sps:$4 sm:$0xff]   ;;  %v4066_v19 = vld [vmem:[%s6204_s1 + $0x24] ss:$8 sps:$4 sm:$0xff]   ;;  %v4065_v20 = vld [vmem:[%s6204_s1 + $0x130] ss:$8 sps:$4 sm:$0xff]  }
   0x8   :  { %2550 = vmatprep.subr.bf16.mxu0 %v4048_v8  ;;  %2592 = vmatpush1.bf16.msra.mxu1 %v4047_v7  ;;  %v4069_v21 = vld [vmem:[%s6204_s1 + $0x124] ss:$8 sps:$4 sm:$0xff]   ;;  %v4068_v22 = vld [vmem:[%s6204_s1 + $0x20] ss:$8 sps:$4 sm:$0xff]   ;;  %v4072_v23 = vld [vmem:[%s6204_s1 + $0x14] ss:$8 sps:$4 sm:$0xff]  }
   0x9   :  { %2593 = vmatprep.subr.bf16.mxu1 %v4051_v10  ;;  %v4071_v24 = vld [vmem:[%s6204_s1 + $0x120] ss:$8 sps:$4 sm:$0xff]   ;;  %v4075_v25 = vld [vmem:[%s6204_s1 + $0x114] ss:$8 sps:$4 sm:$0xff]   ;;  %v4074_v26 = vld [vmem:[%s6204_s1 + $0x10] ss:$8 sps:$4 sm:$0xff]  }
   0xa   :  { %v4078_v27 = vld [vmem:[%s6204_s1 + $0x4] ss:$8 sps:$4 sm:$0xff]   ;;  %v4077_v28 = vld [vmem:[%s6204_s1 + $0x110] ss:$8 sps:$4 sm:$0xff]   ;;  %v4080_v30 = vld [vmem:[%s6204_s1] ss:$8 sps:$4 sm:$0xff]  }
   0xb   :  { %2551 = vmatpush1.bf16.msra.mxu0 %v4050_v9  ;;  %v4081_v29 = vld [vmem:[%s6204_s1 + $0x104] ss:$8 sps:$4 sm:$0xff]   ;;  %v4084_v31 = vld [vmem:[%s6204_s1 + $0xf4] ss:$8 sps:$4 sm:$0xff]   ;;  %v4083_v32 = vld [vmem:[%s6204_s1 + $0x100] ss:$8 sps:$4 sm:$0xff]  }
   0xc   :  { %2552 = vmatprep.subr.bf16.mxu0 %v4054_v11  ;;  %2594 = vmatpush1.bf16.msra.mxu1 %v4053_v12  ;;  %v4087_v33 = vld [vmem:[%s6204_s1 + $0x1f4] ss:$8 sps:$4 sm:$0xff]   ;;  %v4086_v34 = vld [vmem:[%s6204_s1 + $0xf0] ss:$8 sps:$4 sm:$0xff]   ;;  %v4090_v35 = vld [vmem:[%s6204_s1 + $0xe4] ss:$8 sps:$4 sm:$0xff]  }
   0xd   :  { %2595 = vmatprep.subr.bf16.mxu1 %v4057_v13  ;;  %v4089_v36 = vld [vmem:[%s6204_s1 + $0x1f0] ss:$8 sps:$4 sm:$0xff]   ;;  %v4093_v37 = vld [vmem:[%s6204_s1 + $0x1e4] ss:$8 sps:$4 sm:$0xff]   ;;  %v4092_v38 = vld [vmem:[%s6204_s1 + $0xe0] ss:$8 sps:$4 sm:$0xff]  }
   0xe   :  { %v4096_v39 = vld [vmem:[%s6204_s1 + $0xd4] ss:$8 sps:$4 sm:$0xff]   ;;  %v4095_v40 = vld [vmem:[%s6204_s1 + $0x1e0] ss:$8 sps:$4 sm:$0xff]   ;;  %v4098_v42 = vld [vmem:[%s6204_s1 + $0xd0] ss:$8 sps:$4 sm:$0xff]  }
   0xf   :  { %2553 = vmatpush1.bf16.msra.mxu0 %v4056_v14  ;;  %v4099_v41 = vld [vmem:[%s6204_s1 + $0x1d4] ss:$8 sps:$4 sm:$0xff]   ;;  %v4102_v43 = vld [vmem:[%s6204_s1 + $0xc4] ss:$8 sps:$4 sm:$0xff]   ;;  %v4101_v44 = vld [vmem:[%s6204_s1 + $0x1d0] ss:$8 sps:$4 sm:$0xff]  }
  0x10   :  { %2554 = vmatprep.subr.bf16.mxu0 %v4060_v15  ;;  %2596 = vmatpush1.bf16.msra.mxu1 %v4059_v16  ;;  %v4105_v45 = vld [vmem:[%s6204_s1 + $0x1c4] ss:$8 sps:$4 sm:$0xff]   ;;  %v4104_v46 = vld [vmem:[%s6204_s1 + $0xc0] ss:$8 sps:$4 sm:$0xff]   ;;  %v4108_v48 = vld [vmem:[%s6204_s1 + $0xb4] ss:$8 sps:$4 sm:$0xff]  }
  0x11   :  { %2597 = vmatprep.subr.bf16.mxu1 %v4063_v17  ;;  %v4133_v47 = vld [vmem:[%s6205_s0 + $0x4] ss:$100 sps:$4 sm:$0xff]   ;;  %v4111_v50 = vld [vmem:[%s6204_s1 + $0x1b4] ss:$8 sps:$4 sm:$0xff]   ;;  %v4140_v51 = vld [vmem:[%s6205_s0 + $0xc] ss:$100 sps:$4 sm:$0xff]  }
  0x12   :  { %v4107_v49 = vld [vmem:[%s6204_s1 + $0x1c0] ss:$8 sps:$4 sm:$0xff]   ;;  %2578 = vmatprep.mubr.bf16.mxu0 %v4133_v47  ;;  %v4110_v52 = vld [vmem:[%s6204_s1 + $0xb0] ss:$8 sps:$4 sm:$0xff]   ;;  %v4114_v53 = vld [vmem:[%s6204_s1 + $0xa4] ss:$8 sps:$4 sm:$0xff]   ;;  %2621 = vmatprep.mubr.bf16.mxu1 %v4140_v51 }
  0x13   :  { %2555 = vmatpush1.bf16.msra.mxu0 %v4062_v18  ;;  %v4113_v54 = vld [vmem:[%s6204_s1 + $0x1b0] ss:$8 sps:$4 sm:$0xff]   ;;  %v4117_v55 = vld [vmem:[%s6204_s1 + $0x1a4] ss:$8 sps:$4 sm:$0xff]   ;;  %v4116_v56 = vld [vmem:[%s6204_s1 + $0xa0] ss:$8 sps:$4 sm:$0xff]  }
  0x14   :  { %2556 = vmatprep.subr.bf16.mxu0 %v4066_v19  ;;  %2598 = vmatpush1.bf16.msra.mxu1 %v4065_v20  ;;  %v4120_v57 = vld [vmem:[%s6204_s1 + $0x94] ss:$8 sps:$4 sm:$0xff]   ;;  %v4119_v58 = vld [vmem:[%s6204_s1 + $0x1a0] ss:$8 sps:$4 sm:$0xff]   ;;  %v4122_v60 = vld [vmem:[%s6204_s1 + $0x90] ss:$8 sps:$4 sm:$0xff]  }
  0x15   :  { %2599 = vmatprep.subr.bf16.mxu1 %v4069_v21  ;;  %v4123_v59 = vld [vmem:[%s6204_s1 + $0x194] ss:$8 sps:$4 sm:$0xff]   ;;  %v4126_v61 = vld [vmem:[%s6204_s1 + $0x84] ss:$8 sps:$4 sm:$0xff]   ;;  %v4125_v62 = vld [vmem:[%s6204_s1 + $0x190] ss:$8 sps:$4 sm:$0xff]  }
  0x16   :  { %v4129_v63 = vld [vmem:[%s6204_s1 + $0x184] ss:$8 sps:$4 sm:$0xff]   ;;  %v4128_v0 = vld [vmem:[%s6204_s1 + $0x80] ss:$8 sps:$4 sm:$0xff]   ;;  %v4137_v1 = vld [vmem:[%s6204_s1 + $0x274] ss:$8 sps:$4 sm:$0xff]  }
  0x17   :  { %2557 = vmatpush1.bf16.msra.mxu0 %v4068_v22  ;;  %v4134_v2 = vld [vmem:[%s6204_s1 + $0x180] ss:$8 sps:$4 sm:$0xff]   ;;  %v4143_v4 = vld [vmem:[%s6204_s1 + $0x374] ss:$8 sps:$4 sm:$0xff]   ;;  %v4135_v5 = vld [vmem:[%s6204_s1 + $0x270] ss:$8 sps:$4 sm:$0xff]  }
  0x18   :  { %2558 = vmatprep.subr.bf16.mxu0 %v4072_v23  ;;  %2600 = vmatpush1.bf16.msra.mxu1 %v4071_v24  ;;  %v4131_v3 = vld [vmem:[%s6205_s0] ss:$100 sps:$4 sm:$0xff]   ;;  %v4138_v6 = vld [vmem:[%s6205_s0 + $0x8] ss:$100 sps:$4 sm:$0xff]   ;;  %v4141_v8 = vld [vmem:[%s6204_s1 + $0x370] ss:$8 sps:$4 sm:$0xff]  }
  0x19   :  { %2601 = vmatprep.subr.bf16.mxu1 %v4075_v25  ;;  %v4146_v7 = vld [vmem:[%s6204_s1 + $0x264] ss:$8 sps:$4 sm:$0xff]   ;;  %v4144_v10 = vld [vmem:[%s6204_s1 + $0x260] ss:$8 sps:$4 sm:$0xff]   ;;  %v4152_v11 = vld [vmem:[%s6204_s1 + $0x254] ss:$8 sps:$4 sm:$0xff]  }
  0x1a   :  { %v4149_v9 = vld [vmem:[%s6204_s1 + $0x364] ss:$8 sps:$4 sm:$0xff]   ;;  %v4147_v12 = vld [vmem:[%s6204_s1 + $0x360] ss:$8 sps:$4 sm:$0xff]   ;;  %v4155_v13 = vld [vmem:[%s6204_s1 + $0x354] ss:$8 sps:$4 sm:$0xff]  }
  0x1b   :  { %2559 = vmatpush1.bf16.msra.mxu0 %v4074_v26  ;;  %v4150_v14 = vld [vmem:[%s6204_s1 + $0x250] ss:$8 sps:$4 sm:$0xff]   ;;  %v4158_v15 = vld [vmem:[%s6204_s1 + $0x244] ss:$8 sps:$4 sm:$0xff]   ;;  %v4156_v18 = vld [vmem:[%s6204_s1 + $0x240] ss:$8 sps:$4 sm:$0xff]  }
  0x1c   :  { %2560 = vmatprep.subr.bf16.mxu0 %v4078_v27  ;;  %2602 = vmatpush1.bf16.msra.mxu1 %v4077_v28  ;;  %v4153_v16 = vld [vmem:[%s6204_s1 + $0x350] ss:$8 sps:$4 sm:$0xff]   ;;  %v4161_v17 = vld [vmem:[%s6204_s1 + $0x344] ss:$8 sps:$4 sm:$0xff]   ;;  %v4164_v19 = vld [vmem:[%s6204_s1 + $0x234] ss:$8 sps:$4 sm:$0xff]  }
  0x1d   :  { %2603 = vmatprep.subr.bf16.mxu1 %v4081_v29  ;;  %v4159_v20 = vld [vmem:[%s6204_s1 + $0x340] ss:$8 sps:$4 sm:$0xff]   ;;  %v4167_v21 = vld [vmem:[%s6204_s1 + $0x334] ss:$8 sps:$4 sm:$0xff]   ;;  %v4162_v22 = vld [vmem:[%s6204_s1 + $0x230] ss:$8 sps:$4 sm:$0xff]  }
  0x1e   :  { %v4170_v23 = vld [vmem:[%s6204_s1 + $0x224] ss:$8 sps:$4 sm:$0xff]   ;;  %v4165_v24 = vld [vmem:[%s6204_s1 + $0x330] ss:$8 sps:$4 sm:$0xff]   ;;  %v4168_v26 = vld [vmem:[%s6204_s1 + $0x220] ss:$8 sps:$4 sm:$0xff]  }
  0x1f   :  { %2561 = vmatpush1.bf16.msra.mxu0 %v4080_v30  ;;  %v4173_v25 = vld [vmem:[%s6204_s1 + $0x324] ss:$8 sps:$4 sm:$0xff]   ;;  %v4176_v27 = vld [vmem:[%s6204_s1 + $0x214] ss:$8 sps:$4 sm:$0xff]   ;;  %v4171_v28 = vld [vmem:[%s6204_s1 + $0x320] ss:$8 sps:$4 sm:$0xff]  }
  0x20   :  { %2562 = vmatprep.subr.bf16.mxu0 %v4084_v31  ;;  %2604 = vmatpush1.bf16.msra.mxu1 %v4083_v32  ;;  %v4179_v29 = vld [vmem:[%s6204_s1 + $0x314] ss:$8 sps:$4 sm:$0xff]   ;;  %v4174_v30 = vld [vmem:[%s6204_s1 + $0x210] ss:$8 sps:$4 sm:$0xff]   ;;  %v4182_v32 = vld [vmem:[%s6204_s1 + $0x204] ss:$8 sps:$4 sm:$0xff]  }
  0x21   :  { %2605 = vmatprep.subr.bf16.mxu1 %v4087_v33  ;;  %v4177_v31 = vld [vmem:[%s6204_s1 + $0x310] ss:$8 sps:$4 sm:$0xff]   ;;  %v4203_v47 = vld [vmem:[%s6204_s1 + $0x3d4] ss:$8 sps:$4 sm:$0xff]   ;;  %v4209_v51 = vld [vmem:[%s6204_s1 + $0x3c4] ss:$8 sps:$4 sm:$0xff]  }
  0x22   :  { %v4236_v33 = vld [vmem:[%s6205_s0 + $0x14] ss:$100 sps:$4 sm:$0xff]  }
  0x23   :  { %2563 = vmatpush2.bf16.msra.mxu0 %v4086_v34  ;;  %v4185_v34 = vld [vmem:[%s6204_s1 + $0x304] ss:$8 sps:$4 sm:$0xff]  }
  0x24   :  { %2564 = vmatprep.subr.bf16.mxu0 %v4090_v35  ;;  %2606 = vmatpush2.bf16.msra.mxu1 %v4089_v36  ;;  %v4180_v35 = vld [vmem:[%s6204_s1 + $0x200] ss:$8 sps:$4 sm:$0xff]  }
  0x25   :  { %2607 = vmatprep.subr.bf16.mxu1 %v4093_v37  ;;  %v4242_v36 = vld [vmem:[%s6205_s0 + $0x1c] ss:$100 sps:$4 sm:$0xff]  }
  0x26   :  { %v4188_v37 = vld [vmem:[%s6204_s1 + $0x2f4] ss:$8 sps:$4 sm:$0xff]  }
  0x27   :  { %2565 = vmatpush2.bf16.msra.mxu0 %v4092_v38  ;;  %v4183_v38 = vld [vmem:[%s6204_s1 + $0x300] ss:$8 sps:$4 sm:$0xff]  }
  0x28   :  { %2566 = vmatprep.subr.bf16.mxu0 %v4096_v39  ;;  %2608 = vmatpush2.bf16.msra.mxu1 %v4095_v40  ;;  %v4191_v39 = vld [vmem:[%s6204_s1 + $0x3f4] ss:$8 sps:$4 sm:$0xff]   ;;  %v4186_v40 = vld [vmem:[%s6204_s1 + $0x2f0] ss:$8 sps:$4 sm:$0xff]  }
  0x29   :  { %2609 = vmatprep.subr.bf16.mxu1 %v4099_v41  ;;  %v4194_v41 = vld [vmem:[%s6204_s1 + $0x2e4] ss:$8 sps:$4 sm:$0xff]  }
  0x2b   :  { %2567 = vmatpush2.bf16.msra.mxu0 %v4098_v42  ;;  %v4189_v42 = vld [vmem:[%s6204_s1 + $0x3f0] ss:$8 sps:$4 sm:$0xff]  }
  0x2c   :  { %2568 = vmatprep.subr.bf16.mxu0 %v4102_v43  ;;  %2610 = vmatpush2.bf16.msra.mxu1 %v4101_v44  ;;  %v4197_v43 = vld [vmem:[%s6204_s1 + $0x3e4] ss:$8 sps:$4 sm:$0xff]   ;;  %v4192_v44 = vld [vmem:[%s6204_s1 + $0x2e0] ss:$8 sps:$4 sm:$0xff]  }
  0x2d   :  { %2611 = vmatprep.subr.bf16.mxu1 %v4105_v45  ;;  %v4200_v45 = vld [vmem:[%s6204_s1 + $0x2d4] ss:$8 sps:$4 sm:$0xff]  }
  0x2f   :  { %2569 = vmatpush2.bf16.msra.mxu0 %v4104_v46  ;;  %v4195_v46 = vld [vmem:[%s6204_s1 + $0x3e0] ss:$8 sps:$4 sm:$0xff]  }
  0x30   :  { %2570 = vmatprep.subr.bf16.mxu0 %v4108_v48  ;;  %2612 = vmatpush2.bf16.msra.mxu1 %v4107_v49  ;;  %v4198_v48 = vld [vmem:[%s6204_s1 + $0x2d0] ss:$8 sps:$4 sm:$0xff]   ;;  %v4206_v49 = vld [vmem:[%s6204_s1 + $0x2c4] ss:$8 sps:$4 sm:$0xff]  }
  0x31   :  { %2613 = vmatprep.subr.bf16.mxu1 %v4111_v50  ;;  %v4201_v50 = vld [vmem:[%s6204_s1 + $0x3d0] ss:$8 sps:$4 sm:$0xff]  }
  0x33   :  { %2571 = vmatpush2.bf16.msra.mxu0 %v4110_v52  ;;  %v4204_v52 = vld [vmem:[%s6204_s1 + $0x2c0] ss:$8 sps:$4 sm:$0xff]  }
  0x34   :  { %2572 = vmatprep.subr.bf16.mxu0 %v4114_v53  ;;  %2614 = vmatpush2.bf16.msra.mxu1 %v4113_v54  ;;  %v4212_v53 = vld [vmem:[%s6204_s1 + $0x2b4] ss:$8 sps:$4 sm:$0xff]   ;;  %v4207_v54 = vld [vmem:[%s6204_s1 + $0x3c0] ss:$8 sps:$4 sm:$0xff]  }
  0x35   :  { %2615 = vmatprep.subr.bf16.mxu1 %v4117_v55  ;;  %v4215_v55 = vld [vmem:[%s6204_s1 + $0x3b4] ss:$8 sps:$4 sm:$0xff]  }
  0x37   :  { %2573 = vmatpush2.bf16.msra.mxu0 %v4116_v56  ;;  %v4210_v56 = vld [vmem:[%s6204_s1 + $0x2b0] ss:$8 sps:$4 sm:$0xff]  }
  0x38   :  { %2574 = vmatprep.subr.bf16.mxu0 %v4120_v57  ;;  %2616 = vmatpush2.bf16.msra.mxu1 %v4119_v58  ;;  %v4218_v57 = vld [vmem:[%s6204_s1 + $0x2a4] ss:$8 sps:$4 sm:$0xff]   ;;  %v4213_v58 = vld [vmem:[%s6204_s1 + $0x3b0] ss:$8 sps:$4 sm:$0xff]  }
  0x39   :  { %2617 = vmatprep.subr.bf16.mxu1 %v4123_v59  ;;  %v4221_v59 = vld [vmem:[%s6204_s1 + $0x3a4] ss:$8 sps:$4 sm:$0xff]  }
  0x3b   :  { %2575 = vmatpush2.bf16.msra.mxu0 %v4122_v60  ;;  %v4216_v60 = vld [vmem:[%s6204_s1 + $0x2a0] ss:$8 sps:$4 sm:$0xff]  }
  0x3c   :  { %2576 = vmatprep.subr.bf16.mxu0 %v4126_v61  ;;  %2618 = vmatpush2.bf16.msra.mxu1 %v4125_v62  ;;  %v4224_v61 = vld [vmem:[%s6204_s1 + $0x294] ss:$8 sps:$4 sm:$0xff]   ;;  %v4219_v62 = vld [vmem:[%s6204_s1 + $0x3a0] ss:$8 sps:$4 sm:$0xff]  }
  0x3d   :  { %2619 = vmatprep.subr.bf16.mxu1 %v4129_v63  ;;  %v4227_v63 = vld [vmem:[%s6204_s1 + $0x394] ss:$8 sps:$4 sm:$0xff]  }
  0x3f   :  { %2577 = vmatpush2.bf16.msra.mxu0 %v4128_v0  ;;  %v4222_v0 = vld [vmem:[%s6204_s1 + $0x290] ss:$8 sps:$4 sm:$0xff]  }
  0x40   :  { %2632 = vmatprep.subr.bf16.mxu0 %v4137_v1  ;;  %2620 = vmatpush2.bf16.msra.mxu1 %v4134_v2  ;;  %v4230_v1 = vld [vmem:[%s6204_s1 + $0x284] ss:$8 sps:$4 sm:$0xff]   ;;  %v4225_v2 = vld [vmem:[%s6204_s1 + $0x390] ss:$8 sps:$4 sm:$0xff]  }
  0x41   :  { %2675 = vmatprep.subr.bf16.mxu1 %v4143_v4  ;;  %v4228_v4 = vld [vmem:[%s6204_s1 + $0x280] ss:$8 sps:$4 sm:$0xff]  }
  0x42   :  { %2579 = vmatmul.mubr.bf16.vlgmr.msra.gmra.mxu0 %v4131_v3  ;;  %v4233_v3 = vld [vmem:[%s6204_s1 + $0x384] ss:$8 sps:$4 sm:$0xff]  }
  0x43   :  { %2633 = vmatpush1.bf16.msra.mxu0 %v4135_v5  ;;  %2622 = vmatmul.mubr.bf16.vlgmr.msra.gmra.mxu1 %v4138_v6  ;;  %v4239_v5 = vld [vmem:[%s6204_s1 + $0x474] ss:$8 sps:$4 sm:$0xff]   ;;  %v4231_v6 = vld [vmem:[%s6204_s1 + $0x380] ss:$8 sps:$4 sm:$0xff]  }
  0x44   :  { %2634 = vmatprep.subr.bf16.mxu0 %v4146_v7  ;;  %2676 = vmatpush1.bf16.msra.mxu1 %v4141_v8  ;;  %v4234_v7 = vld [vmem:[%s6205_s0 + $0x10] ss:$100 sps:$4 sm:$0xff]  }
  0x45   :  { %2677 = vmatprep.subr.bf16.mxu1 %v4149_v9  ;;  %2664 = vmatprep.mubr.bf16.mxu0 %v4236_v33  ;;  %v4245_v8 = vld [vmem:[%s6204_s1 + $0x574] ss:$8 sps:$4 sm:$0xff]   ;;  %v4237_v9 = vld [vmem:[%s6204_s1 + $0x470] ss:$8 sps:$4 sm:$0xff]  }
  0x46   :  { %2707 = vmatprep.mubr.bf16.mxu1 %v4242_v36  ;;  %v4278_v33 = vld [vmem:[%s6204_s1 + $0x414] ss:$8 sps:$4 sm:$0xff]   ;;  %v4276_v36 = vld [vmem:[%s6204_s1 + $0x410] ss:$8 sps:$4 sm:$0xff]  }
  0x47   :  { %2635 = vmatpush1.bf16.msra.mxu0 %v4144_v10  ;;  %v4240_v10 = vld [vmem:[%s6205_s0 + $0x18] ss:$100 sps:$4 sm:$0xff]  }
  0x48   :  { %2636 = vmatprep.subr.bf16.mxu0 %v4152_v11  ;;  %2678 = vmatpush1.bf16.msra.mxu1 %v4147_v12  ;;  %v4248_v11 = vld [vmem:[%s6204_s1 + $0x464] ss:$8 sps:$4 sm:$0xff]   ;;  %v4243_v12 = vld [vmem:[%s6204_s1 + $0x570] ss:$8 sps:$4 sm:$0xff]  }
  0x49   :  { %2679 = vmatprep.subr.bf16.mxu1 %v4155_v13  ;;  %v4251_v13 = vld [vmem:[%s6204_s1 + $0x564] ss:$8 sps:$4 sm:$0xff]  }
  0x4b   :  { %2637 = vmatpush1.bf16.msra.mxu0 %v4150_v14  ;;  %v4246_v14 = vld [vmem:[%s6204_s1 + $0x460] ss:$8 sps:$4 sm:$0xff]  }
  0x4c   :  { %2638 = vmatprep.subr.bf16.mxu0 %v4158_v15  ;;  %2680 = vmatpush1.bf16.msra.mxu1 %v4153_v16  ;;  %v4254_v15 = vld [vmem:[%s6204_s1 + $0x454] ss:$8 sps:$4 sm:$0xff]   ;;  %v4249_v16 = vld [vmem:[%s6204_s1 + $0x560] ss:$8 sps:$4 sm:$0xff]  }
  0x4d   :  { %2681 = vmatprep.subr.bf16.mxu1 %v4161_v17  ;;  %v4257_v17 = vld [vmem:[%s6204_s1 + $0x554] ss:$8 sps:$4 sm:$0xff]  }
  0x4f   :  { %2639 = vmatpush1.bf16.msra.mxu0 %v4156_v18  ;;  %v4338_v18 = vld [vmem:[%s6205_s0 + $0x24] ss:$100 sps:$4 sm:$0xff]  }
  0x50   :  { %2640 = vmatprep.subr.bf16.mxu0 %v4164_v19  ;;  %2682 = vmatpush1.bf16.msra.mxu1 %v4159_v20  ;;  %v4252_v19 = vld [vmem:[%s6204_s1 + $0x450] ss:$8 sps:$4 sm:$0xff]  }
  0x51   :  { %2683 = vmatprep.subr.bf16.mxu1 %v4167_v21  ;;  %v4255_v20 = vld [vmem:[%s6204_s1 + $0x550] ss:$8 sps:$4 sm:$0xff]   ;;  %v4260_v21 = vld [vmem:[%s6204_s1 + $0x444] ss:$8 sps:$4 sm:$0xff]  }
  0x53   :  { %2641 = vmatpush1.bf16.msra.mxu0 %v4162_v22  ;;  %v4344_v22 = vld [vmem:[%s6205_s0 + $0x2c] ss:$100 sps:$4 sm:$0xff]  }
  0x54   :  { %2642 = vmatprep.subr.bf16.mxu0 %v4170_v23  ;;  %2684 = vmatpush1.bf16.msra.mxu1 %v4165_v24  ;;  %v4263_v23 = vld [vmem:[%s6204_s1 + $0x544] ss:$8 sps:$4 sm:$0xff]   ;;  %v4258_v24 = vld [vmem:[%s6204_s1 + $0x440] ss:$8 sps:$4 sm:$0xff]  }
  0x55   :  { %2685 = vmatprep.subr.bf16.mxu1 %v4173_v25  ;;  %v4266_v25 = vld [vmem:[%s6204_s1 + $0x434] ss:$8 sps:$4 sm:$0xff]  }
  0x57   :  { %2643 = vmatpush1.bf16.msra.mxu0 %v4168_v26  ;;  %v4261_v26 = vld [vmem:[%s6204_s1 + $0x540] ss:$8 sps:$4 sm:$0xff]  }
  0x58   :  { %2644 = vmatprep.subr.bf16.mxu0 %v4176_v27  ;;  %2686 = vmatpush1.bf16.msra.mxu1 %v4171_v28  ;;  %v4269_v27 = vld [vmem:[%s6204_s1 + $0x534] ss:$8 sps:$4 sm:$0xff]   ;;  %v4264_v28 = vld [vmem:[%s6204_s1 + $0x430] ss:$8 sps:$4 sm:$0xff]  }
  0x59   :  { %2687 = vmatprep.subr.bf16.mxu1 %v4179_v29  ;;  %v4272_v29 = vld [vmem:[%s6204_s1 + $0x424] ss:$8 sps:$4 sm:$0xff]  }
  0x5b   :  { %2645 = vmatpush1.bf16.msra.mxu0 %v4174_v30  ;;  %v4267_v30 = vld [vmem:[%s6204_s1 + $0x530] ss:$8 sps:$4 sm:$0xff]  }
  0x5c   :  { %2646 = vmatprep.subr.bf16.mxu0 %v4182_v32  ;;  %2688 = vmatpush1.bf16.msra.mxu1 %v4177_v31  ;;  %v4275_v31 = vld [vmem:[%s6204_s1 + $0x524] ss:$8 sps:$4 sm:$0xff]   ;;  %v4270_v32 = vld [vmem:[%s6204_s1 + $0x420] ss:$8 sps:$4 sm:$0xff]  }
  0x5d   :  { %2689 = vmatprep.subr.bf16.mxu1 %v4185_v34  ;;  %v4273_v34 = vld [vmem:[%s6204_s1 + $0x520] ss:$8 sps:$4 sm:$0xff]  }
  0x5f   :  { %2647 = vmatpush1.bf16.msra.mxu0 %v4180_v35  ;;  %v4281_v35 = vld [vmem:[%s6204_s1 + $0x514] ss:$8 sps:$4 sm:$0xff]  }
  0x60   :  { %2648 = vmatprep.subr.bf16.mxu0 %v4188_v37  ;;  %2690 = vmatpush1.bf16.msra.mxu1 %v4183_v38  ;;  %v4284_v37 = vld [vmem:[%s6204_s1 + $0x404] ss:$8 sps:$4 sm:$0xff]   ;;  %v4279_v38 = vld [vmem:[%s6204_s1 + $0x510] ss:$8 sps:$4 sm:$0xff]  }
  0x61   :  { %2691 = vmatprep.subr.bf16.mxu1 %v4191_v39  ;;  %v4287_v39 = vld [vmem:[%s6204_s1 + $0x504] ss:$8 sps:$4 sm:$0xff]  }
  0x63   :  { %2649 = vmatpush2.bf16.msra.mxu0 %v4186_v40  ;;  %v4282_v40 = vld [vmem:[%s6204_s1 + $0x400] ss:$8 sps:$4 sm:$0xff]  }
  0x64   :  { %2650 = vmatprep.subr.bf16.mxu0 %v4194_v41  ;;  %2692 = vmatpush2.bf16.msra.mxu1 %v4189_v42  ;;  %v4290_v41 = vld [vmem:[%s6204_s1 + $0x4f4] ss:$8 sps:$4 sm:$0xff]   ;;  %v4285_v42 = vld [vmem:[%s6204_s1 + $0x500] ss:$8 sps:$4 sm:$0xff]  }
  0x65   :  { %2693 = vmatprep.subr.bf16.mxu1 %v4197_v43  ;;  %v4293_v43 = vld [vmem:[%s6204_s1 + $0x5f4] ss:$8 sps:$4 sm:$0xff]  }
  0x67   :  { %2651 = vmatpush2.bf16.msra.mxu0 %v4192_v44  ;;  %v4288_v44 = vld [vmem:[%s6204_s1 + $0x4f0] ss:$8 sps:$4 sm:$0xff]  }
  0x68   :  { %2652 = vmatprep.subr.bf16.mxu0 %v4200_v45  ;;  %2694 = vmatpush2.bf16.msra.mxu1 %v4195_v46  ;;  %v4296_v45 = vld [vmem:[%s6204_s1 + $0x4e4] ss:$8 sps:$4 sm:$0xff]   ;;  %v4291_v46 = vld [vmem:[%s6204_s1 + $0x5f0] ss:$8 sps:$4 sm:$0xff]  }
  0x69   :  { %2695 = vmatprep.subr.bf16.mxu1 %v4203_v47  ;;  %v4299_v47 = vld [vmem:[%s6204_s1 + $0x5e4] ss:$8 sps:$4 sm:$0xff]  }
  0x6b   :  { %2653 = vmatpush2.bf16.msra.mxu0 %v4198_v48  ;;  %v4294_v48 = vld [vmem:[%s6204_s1 + $0x4e0] ss:$8 sps:$4 sm:$0xff]  }
  0x6c   :  { %2654 = vmatprep.subr.bf16.mxu0 %v4206_v49  ;;  %2696 = vmatpush2.bf16.msra.mxu1 %v4201_v50  ;;  %v4302_v49 = vld [vmem:[%s6204_s1 + $0x4d4] ss:$8 sps:$4 sm:$0xff]   ;;  %v4297_v50 = vld [vmem:[%s6204_s1 + $0x5e0] ss:$8 sps:$4 sm:$0xff]  }
  0x6d   :  { %2697 = vmatprep.subr.bf16.mxu1 %v4209_v51  ;;  %v4305_v51 = vld [vmem:[%s6204_s1 + $0x5d4] ss:$8 sps:$4 sm:$0xff]  }
  0x6f   :  { %2655 = vmatpush2.bf16.msra.mxu0 %v4204_v52  ;;  %v4300_v52 = vld [vmem:[%s6204_s1 + $0x4d0] ss:$8 sps:$4 sm:$0xff]  }
  0x70   :  { %2656 = vmatprep.subr.bf16.mxu0 %v4212_v53  ;;  %2698 = vmatpush2.bf16.msra.mxu1 %v4207_v54  ;;  %v4308_v53 = vld [vmem:[%s6204_s1 + $0x4c4] ss:$8 sps:$4 sm:$0xff]   ;;  %v4303_v54 = vld [vmem:[%s6204_s1 + $0x5d0] ss:$8 sps:$4 sm:$0xff]  }
  0x71   :  { %2699 = vmatprep.subr.bf16.mxu1 %v4215_v55  ;;  %v4311_v55 = vld [vmem:[%s6204_s1 + $0x5c4] ss:$8 sps:$4 sm:$0xff]  }
  0x73   :  { %2657 = vmatpush2.bf16.msra.mxu0 %v4210_v56  ;;  %v4306_v56 = vld [vmem:[%s6204_s1 + $0x4c0] ss:$8 sps:$4 sm:$0xff]  }
  0x74   :  { %2658 = vmatprep.subr.bf16.mxu0 %v4218_v57  ;;  %2700 = vmatpush2.bf16.msra.mxu1 %v4213_v58  ;;  %v4314_v57 = vld [vmem:[%s6204_s1 + $0x4b4] ss:$8 sps:$4 sm:$0xff]   ;;  %v4309_v58 = vld [vmem:[%s6204_s1 + $0x5c0] ss:$8 sps:$4 sm:$0xff]  }
  0x75   :  { %2701 = vmatprep.subr.bf16.mxu1 %v4221_v59  ;;  %v4317_v59 = vld [vmem:[%s6204_s1 + $0x5b4] ss:$8 sps:$4 sm:$0xff]  }
  0x77   :  { %2659 = vmatpush2.bf16.msra.mxu0 %v4216_v60  ;;  %v4312_v60 = vld [vmem:[%s6204_s1 + $0x4b0] ss:$8 sps:$4 sm:$0xff]  }
  0x78   :  { %2660 = vmatprep.subr.bf16.mxu0 %v4224_v61  ;;  %2702 = vmatpush2.bf16.msra.mxu1 %v4219_v62  ;;  %v4320_v61 = vld [vmem:[%s6204_s1 + $0x4a4] ss:$8 sps:$4 sm:$0xff]   ;;  %v4315_v62 = vld [vmem:[%s6204_s1 + $0x5b0] ss:$8 sps:$4 sm:$0xff]  }
  0x79   :  { %2703 = vmatprep.subr.bf16.mxu1 %v4227_v63  ;;  %v4323_v63 = vld [vmem:[%s6204_s1 + $0x5a4] ss:$8 sps:$4 sm:$0xff]  }
  0x7b   :  { %2661 = vmatpush2.bf16.msra.mxu0 %v4222_v0  ;;  %v4318_v0 = vld [vmem:[%s6204_s1 + $0x4a0] ss:$8 sps:$4 sm:$0xff]  }
  0x7c   :  { %2662 = vmatprep.subr.bf16.mxu0 %v4230_v1  ;;  %2704 = vmatpush2.bf16.msra.mxu1 %v4225_v2  ;;  %v4326_v1 = vld [vmem:[%s6204_s1 + $0x494] ss:$8 sps:$4 sm:$0xff]   ;;  %v4321_v2 = vld [vmem:[%s6204_s1 + $0x5a0] ss:$8 sps:$4 sm:$0xff]  }
  0x7d   :  { %2705 = vmatprep.subr.bf16.mxu1 %v4233_v3  ;;  %v4329_v3 = vld [vmem:[%s6204_s1 + $0x594] ss:$8 sps:$4 sm:$0xff]  }
  0x7f   :  { %2663 = vmatpush2.bf16.msra.mxu0 %v4228_v4  ;;  %v4324_v4 = vld [vmem:[%s6204_s1 + $0x490] ss:$8 sps:$4 sm:$0xff]  }
  0x80   :  { %2718 = vmatprep.subr.bf16.mxu0 %v4239_v5  ;;  %2706 = vmatpush2.bf16.msra.mxu1 %v4231_v6  ;;  %v4332_v5 = vld [vmem:[%s6204_s1 + $0x484] ss:$8 sps:$4 sm:$0xff]   ;;  %v4327_v6 = vld [vmem:[%s6204_s1 + $0x590] ss:$8 sps:$4 sm:$0xff]  }
  0x81   :  { %2761 = vmatprep.subr.bf16.mxu1 %v4245_v8  ;;  %v4335_v8 = vld [vmem:[%s6204_s1 + $0x584] ss:$8 sps:$4 sm:$0xff]  }
  0x82   :  { %2665 = vmatmul.mubr.bf16.vlgmr.msra.gmra.mxu0 %v4234_v7  ;;  %v4330_v7 = vld [vmem:[%s6204_s1 + $0x480] ss:$8 sps:$4 sm:$0xff]  }
  0x83   :  { %2719 = vmatpush1.bf16.msra.mxu0 %v4237_v9  ;;  %2708 = vmatmul.mubr.bf16.vlgmr.msra.gmra.mxu1 %v4240_v10  ;;  %v4333_v9 = vld [vmem:[%s6204_s1 + $0x580] ss:$8 sps:$4 sm:$0xff]   ;;  %v4341_v10 = vld [vmem:[%s6204_s1 + $0x674] ss:$8 sps:$4 sm:$0xff]  }
  0x84   :  { %2720 = vmatprep.subr.bf16.mxu0 %v4248_v11  ;;  %2762 = vmatpush1.bf16.msra.mxu1 %v4243_v12  ;;  %v4336_v11 = vld [vmem:[%s6205_s0 + $0x20] ss:$100 sps:$4 sm:$0xff]   ;;  %v4339_v12 = vld [vmem:[%s6204_s1 + $0x670] ss:$8 sps:$4 sm:$0xff]  }
  0x85   :  { %2763 = vmatprep.subr.bf16.mxu1 %v4251_v13  ;;  %2750 = vmatprep.mubr.bf16.mxu0 %v4338_v18  ;;  %v4342_v13 = vld [vmem:[%s6205_s0 + $0x28] ss:$100 sps:$4 sm:$0xff]   ;;  %v4446_v18 = vld [vmem:[%s6205_s0 + $0x3c] ss:$100 sps:$4 sm:$0xff]  }
  0x86   :  { %2793 = vmatprep.mubr.bf16.mxu1 %v4344_v22  ;;  %v4351_v22 = vld [vmem:[%s6204_s1 + $0x760] ss:$8 sps:$4 sm:$0xff]  }
  0x87   :  { %2721 = vmatpush1.bf16.msra.mxu0 %v4246_v14  ;;  %v4347_v14 = vld [vmem:[%s6204_s1 + $0x774] ss:$8 sps:$4 sm:$0xff]  }
  0x88   :  { %2722 = vmatprep.subr.bf16.mxu0 %v4254_v15  ;;  %2764 = vmatpush1.bf16.msra.mxu1 %v4249_v16  ;;  %v4440_v15 = vld [vmem:[%s6205_s0 + $0x34] ss:$100 sps:$4 sm:$0xff]   ;;  %v4350_v16 = vld [vmem:[%s6204_s1 + $0x664] ss:$8 sps:$4 sm:$0xff]  }
  0x89   :  { %2765 = vmatprep.subr.bf16.mxu1 %v4257_v17  ;;  %v4345_v17 = vld [vmem:[%s6204_s1 + $0x770] ss:$8 sps:$4 sm:$0xff]  }
  0x8b   :  { %2723 = vmatpush1.bf16.msra.mxu0 %v4252_v19  ;;  %v4353_v19 = vld [vmem:[%s6204_s1 + $0x764] ss:$8 sps:$4 sm:$0xff]  }
  0x8c   :  { %2724 = vmatprep.subr.bf16.mxu0 %v4260_v21  ;;  %2766 = vmatpush1.bf16.msra.mxu1 %v4255_v20  ;;  %v4348_v20 = vld [vmem:[%s6204_s1 + $0x660] ss:$8 sps:$4 sm:$0xff]   ;;  %v4356_v21 = vld [vmem:[%s6204_s1 + $0x654] ss:$8 sps:$4 sm:$0xff]  }
  0x8d   :  { %2767 = vmatprep.subr.bf16.mxu1 %v4263_v23  ;;  %v4359_v23 = vld [vmem:[%s6204_s1 + $0x754] ss:$8 sps:$4 sm:$0xff]  }
  0x8f   :  { %2725 = vmatpush1.bf16.msra.mxu0 %v4258_v24  ;;  %v4354_v24 = vld [vmem:[%s6204_s1 + $0x650] ss:$8 sps:$4 sm:$0xff]  }
  0x90   :  { %2726 = vmatprep.subr.bf16.mxu0 %v4266_v25  ;;  %2768 = vmatpush1.bf16.msra.mxu1 %v4261_v26  ;;  %v4362_v25 = vld [vmem:[%s6204_s1 + $0x644] ss:$8 sps:$4 sm:$0xff]   ;;  %v4357_v26 = vld [vmem:[%s6204_s1 + $0x750] ss:$8 sps:$4 sm:$0xff]  }
  0x91   :  { %2769 = vmatprep.subr.bf16.mxu1 %v4269_v27  ;;  %v4365_v27 = vld [vmem:[%s6204_s1 + $0x744] ss:$8 sps:$4 sm:$0xff]  }
  0x93   :  { %2727 = vmatpush1.bf16.msra.mxu0 %v4264_v28  ;;  %v4360_v28 = vld [vmem:[%s6204_s1 + $0x640] ss:$8 sps:$4 sm:$0xff]  }
  0x94   :  { %2728 = vmatprep.subr.bf16.mxu0 %v4272_v29  ;;  %2770 = vmatpush1.bf16.msra.mxu1 %v4267_v30  ;;  %v4368_v29 = vld [vmem:[%s6204_s1 + $0x634] ss:$8 sps:$4 sm:$0xff]   ;;  %v4363_v30 = vld [vmem:[%s6204_s1 + $0x740] ss:$8 sps:$4 sm:$0xff]  }
  0x95   :  { %2771 = vmatprep.subr.bf16.mxu1 %v4275_v31  ;;  %v4371_v31 = vld [vmem:[%s6204_s1 + $0x734] ss:$8 sps:$4 sm:$0xff]  }
  0x97   :  { %2729 = vmatpush1.bf16.msra.mxu0 %v4270_v32  ;;  %v4366_v32 = vld [vmem:[%s6204_s1 + $0x630] ss:$8 sps:$4 sm:$0xff]  }
  0x98   :  { %2730 = vmatprep.subr.bf16.mxu0 %v4278_v33  ;;  %2772 = vmatpush1.bf16.msra.mxu1 %v4273_v34  ;;  %v4374_v33 = vld [vmem:[%s6204_s1 + $0x624] ss:$8 sps:$4 sm:$0xff]   ;;  %v4369_v34 = vld [vmem:[%s6204_s1 + $0x730] ss:$8 sps:$4 sm:$0xff]  }
  0x99   :  { %2773 = vmatprep.subr.bf16.mxu1 %v4281_v35  ;;  %v4377_v35 = vld [vmem:[%s6204_s1 + $0x724] ss:$8 sps:$4 sm:$0xff]  }
  0x9b   :  { %2731 = vmatpush1.bf16.msra.mxu0 %v4276_v36  ;;  %v4372_v36 = vld [vmem:[%s6204_s1 + $0x620] ss:$8 sps:$4 sm:$0xff]  }
  0x9c   :  { %2732 = vmatprep.subr.bf16.mxu0 %v4284_v37  ;;  %2774 = vmatpush1.bf16.msra.mxu1 %v4279_v38  ;;  %v4380_v37 = vld [vmem:[%s6204_s1 + $0x614] ss:$8 sps:$4 sm:$0xff]   ;;  %v4375_v38 = vld [vmem:[%s6204_s1 + $0x720] ss:$8 sps:$4 sm:$0xff]  }
  0x9d   :  { %2775 = vmatprep.subr.bf16.mxu1 %v4287_v39  ;;  %v4383_v39 = vld [vmem:[%s6204_s1 + $0x714] ss:$8 sps:$4 sm:$0xff]  }
  0x9f   :  { %2733 = vmatpush1.bf16.msra.mxu0 %v4282_v40  ;;  %v4378_v40 = vld [vmem:[%s6204_s1 + $0x610] ss:$8 sps:$4 sm:$0xff]  }
  0xa0   :  { %2734 = vmatprep.subr.bf16.mxu0 %v4290_v41  ;;  %2776 = vmatpush1.bf16.msra.mxu1 %v4285_v42  ;;  %v4386_v41 = vld [vmem:[%s6204_s1 + $0x604] ss:$8 sps:$4 sm:$0xff]   ;;  %v4381_v42 = vld [vmem:[%s6204_s1 + $0x710] ss:$8 sps:$4 sm:$0xff]  }
  0xa1   :  { %2777 = vmatprep.subr.bf16.mxu1 %v4293_v43  ;;  %v4389_v43 = vld [vmem:[%s6204_s1 + $0x704] ss:$8 sps:$4 sm:$0xff]  }
  0xa3   :  { %2735 = vmatpush2.bf16.msra.mxu0 %v4288_v44  ;;  %v4384_v44 = vld [vmem:[%s6204_s1 + $0x600] ss:$8 sps:$4 sm:$0xff]  }
  0xa4   :  { %2736 = vmatprep.subr.bf16.mxu0 %v4296_v45  ;;  %2778 = vmatpush2.bf16.msra.mxu1 %v4291_v46  ;;  %v4392_v45 = vld [vmem:[%s6204_s1 + $0x6f4] ss:$8 sps:$4 sm:$0xff]   ;;  %v4387_v46 = vld [vmem:[%s6204_s1 + $0x700] ss:$8 sps:$4 sm:$0xff]  }
  0xa5   :  { %2779 = vmatprep.subr.bf16.mxu1 %v4299_v47  ;;  %v4395_v47 = vld [vmem:[%s6204_s1 + $0x7f4] ss:$8 sps:$4 sm:$0xff]  }
  0xa7   :  { %2737 = vmatpush2.bf16.msra.mxu0 %v4294_v48  ;;  %v4390_v48 = vld [vmem:[%s6204_s1 + $0x6f0] ss:$8 sps:$4 sm:$0xff]  }
  0xa8   :  { %2738 = vmatprep.subr.bf16.mxu0 %v4302_v49  ;;  %2780 = vmatpush2.bf16.msra.mxu1 %v4297_v50  ;;  %v4398_v49 = vld [vmem:[%s6204_s1 + $0x6e4] ss:$8 sps:$4 sm:$0xff]   ;;  %v4393_v50 = vld [vmem:[%s6204_s1 + $0x7f0] ss:$8 sps:$4 sm:$0xff]  }
  0xa9   :  { %2781 = vmatprep.subr.bf16.mxu1 %v4305_v51  ;;  %v4401_v51 = vld [vmem:[%s6204_s1 + $0x7e4] ss:$8 sps:$4 sm:$0xff]  }
  0xab   :  { %2739 = vmatpush2.bf16.msra.mxu0 %v4300_v52  ;;  %v4396_v52 = vld [vmem:[%s6204_s1 + $0x6e0] ss:$8 sps:$4 sm:$0xff]  }
  0xac   :  { %2740 = vmatprep.subr.bf16.mxu0 %v4308_v53  ;;  %2782 = vmatpush2.bf16.msra.mxu1 %v4303_v54  ;;  %v4404_v53 = vld [vmem:[%s6204_s1 + $0x6d4] ss:$8 sps:$4 sm:$0xff]   ;;  %v4399_v54 = vld [vmem:[%s6204_s1 + $0x7e0] ss:$8 sps:$4 sm:$0xff]  }
  0xad   :  { %2783 = vmatprep.subr.bf16.mxu1 %v4311_v55  ;;  %v4407_v55 = vld [vmem:[%s6204_s1 + $0x7d4] ss:$8 sps:$4 sm:$0xff]  }
  0xaf   :  { %2741 = vmatpush2.bf16.msra.mxu0 %v4306_v56  ;;  %v4402_v56 = vld [vmem:[%s6204_s1 + $0x6d0] ss:$8 sps:$4 sm:$0xff]  }
  0xb0   :  { %2742 = vmatprep.subr.bf16.mxu0 %v4314_v57  ;;  %2784 = vmatpush2.bf16.msra.mxu1 %v4309_v58  ;;  %v4410_v57 = vld [vmem:[%s6204_s1 + $0x6c4] ss:$8 sps:$4 sm:$0xff]   ;;  %v4405_v58 = vld [vmem:[%s6204_s1 + $0x7d0] ss:$8 sps:$4 sm:$0xff]  }
  0xb1   :  { %2785 = vmatprep.subr.bf16.mxu1 %v4317_v59  ;;  %v4413_v59 = vld [vmem:[%s6204_s1 + $0x7c4] ss:$8 sps:$4 sm:$0xff]  }
  0xb3   :  { %2743 = vmatpush2.bf16.msra.mxu0 %v4312_v60  ;;  %v4408_v60 = vld [vmem:[%s6204_s1 + $0x6c0] ss:$8 sps:$4 sm:$0xff]  }
  0xb4   :  { %2744 = vmatprep.subr.bf16.mxu0 %v4320_v61  ;;  %2786 = vmatpush2.bf16.msra.mxu1 %v4315_v62  ;;  %v4416_v61 = vld [vmem:[%s6204_s1 + $0x6b4] ss:$8 sps:$4 sm:$0xff]   ;;  %v4411_v62 = vld [vmem:[%s6204_s1 + $0x7c0] ss:$8 sps:$4 sm:$0xff]  }
  0xb5   :  { %2787 = vmatprep.subr.bf16.mxu1 %v4323_v63  ;;  %v4419_v63 = vld [vmem:[%s6204_s1 + $0x7b4] ss:$8 sps:$4 sm:$0xff]  }
  0xb7   :  { %2745 = vmatpush2.bf16.msra.mxu0 %v4318_v0  ;;  %v4414_v0 = vld [vmem:[%s6204_s1 + $0x6b0] ss:$8 sps:$4 sm:$0xff]  }
  0xb8   :  { %2746 = vmatprep.subr.bf16.mxu0 %v4326_v1  ;;  %2788 = vmatpush2.bf16.msra.mxu1 %v4321_v2  ;;  %v4422_v1 = vld [vmem:[%s6204_s1 + $0x6a4] ss:$8 sps:$4 sm:$0xff]   ;;  %v4417_v2 = vld [vmem:[%s6204_s1 + $0x7b0] ss:$8 sps:$4 sm:$0xff]  }
  0xb9   :  { %2789 = vmatprep.subr.bf16.mxu1 %v4329_v3  ;;  %v4425_v3 = vld [vmem:[%s6204_s1 + $0x7a4] ss:$8 sps:$4 sm:$0xff]  }
  0xbb   :  { %2747 = vmatpush2.bf16.msra.mxu0 %v4324_v4  ;;  %v4420_v4 = vld [vmem:[%s6204_s1 + $0x6a0] ss:$8 sps:$4 sm:$0xff]  }
  0xbc   :  { %2748 = vmatprep.subr.bf16.mxu0 %v4332_v5  ;;  %2790 = vmatpush2.bf16.msra.mxu1 %v4327_v6  ;;  %v4428_v5 = vld [vmem:[%s6204_s1 + $0x694] ss:$8 sps:$4 sm:$0xff]   ;;  %v4423_v6 = vld [vmem:[%s6204_s1 + $0x7a0] ss:$8 sps:$4 sm:$0xff]  }
  0xbd   :  { %2791 = vmatprep.subr.bf16.mxu1 %v4335_v8  ;;  %v4426_v8 = vld [vmem:[%s6204_s1 + $0x690] ss:$8 sps:$4 sm:$0xff]  }
  0xbf   :  { %2749 = vmatpush2.bf16.msra.mxu0 %v4330_v7  ;;  %v4431_v7 = vld [vmem:[%s6204_s1 + $0x794] ss:$8 sps:$4 sm:$0xff]  }
  0xc0   :  { %2804 = vmatprep.subr.bf16.mxu0 %v4341_v10  ;;  %2792 = vmatpush2.bf16.msra.mxu1 %v4333_v9  ;;  %v4434_v9 = vld [vmem:[%s6204_s1 + $0x684] ss:$8 sps:$4 sm:$0xff]   ;;  %v4429_v10 = vld [vmem:[%s6204_s1 + $0x790] ss:$8 sps:$4 sm:$0xff]  }
  0xc1   :  { %2847 = vmatprep.subr.bf16.mxu1 %v4347_v14  ;;  %v4443_v14 = vld [vmem:[%s6204_s1 + $0x874] ss:$8 sps:$4 sm:$0xff]  }
  0xc2   :  { %2751 = vmatmul.mubr.bf16.vlgmr.msra.gmra.mxu0 %v4336_v11  ;;  %v4432_v11 = vld [vmem:[%s6204_s1 + $0x680] ss:$8 sps:$4 sm:$0xff]  }
  0xc3   :  { %2805 = vmatpush1.bf16.msra.mxu0 %v4339_v12  ;;  %2836 = vmatprep.mubr.bf16.mxu0 %v4440_v15  ;;  %v4437_v12 = vld [vmem:[%s6204_s1 + $0x784] ss:$8 sps:$4 sm:$0xff]   ;;  %v4438_v15 = vld [vmem:[%s6205_s0 + $0x30] ss:$100 sps:$4 sm:$0xff]  }
  0xc4   :  { %2794 = vmatmul.mubr.bf16.vlgmr.msra.gmra.mxu1 %v4342_v13  ;;  %2806 = vmatprep.subr.bf16.mxu0 %v4350_v16  ;;  %v4435_v13 = vld [vmem:[%s6204_s1 + $0x780] ss:$8 sps:$4 sm:$0xff]   ;;  %v4441_v16 = vld [vmem:[%s6204_s1 + $0x870] ss:$8 sps:$4 sm:$0xff]  }
  0xc5   :  { %2848 = vmatpush1.bf16.msra.mxu1 %v4345_v17  ;;  %2879 = vmatprep.mubr.bf16.mxu1 %v4446_v18  ;;  %v4444_v17 = vld [vmem:[%s6205_s0 + $0x38] ss:$100 sps:$4 sm:$0xff]  }
  0xc6   :  { %2849 = vmatprep.subr.bf16.mxu1 %v4353_v19  ;;  %v4449_v18 = vld [vmem:[%s6204_s1 + $0x974] ss:$8 sps:$4 sm:$0xff]   ;;  %v4542_v19 = vld [vmem:[%s6205_s0 + $0x44] ss:$100 sps:$4 sm:$0xff]  }
  0xc7   :  { %2807 = vmatpush1.bf16.msra.mxu0 %v4348_v20  ;;  %v4452_v20 = vld [vmem:[%s6204_s1 + $0x864] ss:$8 sps:$4 sm:$0xff]  }
  0xc8   :  { %2808 = vmatprep.subr.bf16.mxu0 %v4356_v21  ;;  %v4447_v21 = vld [vmem:[%s6204_s1 + $0x970] ss:$8 sps:$4 sm:$0xff]  }
  0xc9   :  { %2850 = vmatpush1.bf16.msra.mxu1 %v4351_v22  ;;  %v4548_v22 = vld [vmem:[%s6205_s0 + $0x4c] ss:$100 sps:$4 sm:$0xff]  }
  0xca   :  { %2851 = vmatprep.subr.bf16.mxu1 %v4359_v23  ;;  %v4455_v23 = vld [vmem:[%s6204_s1 + $0x964] ss:$8 sps:$4 sm:$0xff]  }
  0xcb   :  { %2809 = vmatpush1.bf16.msra.mxu0 %v4354_v24  ;;  %v4450_v24 = vld [vmem:[%s6204_s1 + $0x860] ss:$8 sps:$4 sm:$0xff]  }
  0xcc   :  { %2810 = vmatprep.subr.bf16.mxu0 %v4362_v25  ;;  %v4458_v25 = vld [vmem:[%s6204_s1 + $0x854] ss:$8 sps:$4 sm:$0xff]  }
  0xcd   :  { %2852 = vmatpush1.bf16.msra.mxu1 %v4357_v26  ;;  %v4453_v26 = vld [vmem:[%s6204_s1 + $0x960] ss:$8 sps:$4 sm:$0xff]  }
  0xce   :  { %2853 = vmatprep.subr.bf16.mxu1 %v4365_v27  ;;  %v4461_v27 = vld [vmem:[%s6204_s1 + $0x954] ss:$8 sps:$4 sm:$0xff]  }
  0xcf   :  { %2811 = vmatpush1.bf16.msra.mxu0 %v4360_v28  ;;  %v4456_v28 = vld [vmem:[%s6204_s1 + $0x850] ss:$8 sps:$4 sm:$0xff]  }
  0xd0   :  { %2812 = vmatprep.subr.bf16.mxu0 %v4368_v29  ;;  %v4464_v29 = vld [vmem:[%s6204_s1 + $0x844] ss:$8 sps:$4 sm:$0xff]  }
  0xd1   :  { %2854 = vmatpush1.bf16.msra.mxu1 %v4363_v30  ;;  %v4459_v30 = vld [vmem:[%s6204_s1 + $0x950] ss:$8 sps:$4 sm:$0xff]  }
  0xd2   :  { %2855 = vmatprep.subr.bf16.mxu1 %v4371_v31  ;;  %v4467_v31 = vld [vmem:[%s6204_s1 + $0x944] ss:$8 sps:$4 sm:$0xff]  }
  0xd3   :  { %2813 = vmatpush1.bf16.msra.mxu0 %v4366_v32  ;;  %v4462_v32 = vld [vmem:[%s6204_s1 + $0x840] ss:$8 sps:$4 sm:$0xff]  }
  0xd4   :  { %2814 = vmatprep.subr.bf16.mxu0 %v4374_v33  ;;  %v4470_v33 = vld [vmem:[%s6204_s1 + $0x834] ss:$8 sps:$4 sm:$0xff]  }
  0xd5   :  { %2856 = vmatpush1.bf16.msra.mxu1 %v4369_v34  ;;  %v4465_v34 = vld [vmem:[%s6204_s1 + $0x940] ss:$8 sps:$4 sm:$0xff]  }
  0xd6   :  { %2857 = vmatprep.subr.bf16.mxu1 %v4377_v35  ;;  %v4473_v35 = vld [vmem:[%s6204_s1 + $0x934] ss:$8 sps:$4 sm:$0xff]  }
  0xd7   :  { %2815 = vmatpush1.bf16.msra.mxu0 %v4372_v36  ;;  %v4468_v36 = vld [vmem:[%s6204_s1 + $0x830] ss:$8 sps:$4 sm:$0xff]  }
  0xd8   :  { %2816 = vmatprep.subr.bf16.mxu0 %v4380_v37  ;;  %v4476_v37 = vld [vmem:[%s6204_s1 + $0x824] ss:$8 sps:$4 sm:$0xff]  }
  0xd9   :  { %2858 = vmatpush1.bf16.msra.mxu1 %v4375_v38  ;;  %v4471_v38 = vld [vmem:[%s6204_s1 + $0x930] ss:$8 sps:$4 sm:$0xff]  }
  0xda   :  { %2859 = vmatprep.subr.bf16.mxu1 %v4383_v39  ;;  %v4479_v39 = vld [vmem:[%s6204_s1 + $0x924] ss:$8 sps:$4 sm:$0xff]  }
  0xdb   :  { %2817 = vmatpush1.bf16.msra.mxu0 %v4378_v40  ;;  %v4474_v40 = vld [vmem:[%s6204_s1 + $0x820] ss:$8 sps:$4 sm:$0xff]  }
  0xdc   :  { %2818 = vmatprep.subr.bf16.mxu0 %v4386_v41  ;;  %v4482_v41 = vld [vmem:[%s6204_s1 + $0x814] ss:$8 sps:$4 sm:$0xff]  }
  0xdd   :  { %2860 = vmatpush1.bf16.msra.mxu1 %v4381_v42  ;;  %v4477_v42 = vld [vmem:[%s6204_s1 + $0x920] ss:$8 sps:$4 sm:$0xff]  }
  0xde   :  { %2861 = vmatprep.subr.bf16.mxu1 %v4389_v43  ;;  %v4485_v43 = vld [vmem:[%s6204_s1 + $0x914] ss:$8 sps:$4 sm:$0xff]  }
  0xdf   :  { %2819 = vmatpush1.bf16.msra.mxu0 %v4384_v44  ;;  %v4480_v44 = vld [vmem:[%s6204_s1 + $0x810] ss:$8 sps:$4 sm:$0xff]  }
  0xe0   :  { %2820 = vmatprep.subr.bf16.mxu0 %v4392_v45  ;;  %v4488_v45 = vld [vmem:[%s6204_s1 + $0x804] ss:$8 sps:$4 sm:$0xff]  }
  0xe1   :  { %2862 = vmatpush1.bf16.msra.mxu1 %v4387_v46  ;;  %v4483_v46 = vld [vmem:[%s6204_s1 + $0x910] ss:$8 sps:$4 sm:$0xff]  }
  0xe2   :  { %2863 = vmatprep.subr.bf16.mxu1 %v4395_v47  ;;  %v4491_v47 = vld [vmem:[%s6204_s1 + $0x904] ss:$8 sps:$4 sm:$0xff]  }
  0xe3   :  { %2821 = vmatpush2.bf16.msra.mxu0 %v4390_v48  ;;  %v4486_v48 = vld [vmem:[%s6204_s1 + $0x800] ss:$8 sps:$4 sm:$0xff]  }
  0xe4   :  { %2822 = vmatprep.subr.bf16.mxu0 %v4398_v49  ;;  %v4494_v49 = vld [vmem:[%s6204_s1 + $0x8f4] ss:$8 sps:$4 sm:$0xff]  }
  0xe5   :  { %2864 = vmatpush2.bf16.msra.mxu1 %v4393_v50  ;;  %v4489_v50 = vld [vmem:[%s6204_s1 + $0x900] ss:$8 sps:$4 sm:$0xff]  }
  0xe6   :  { %2865 = vmatprep.subr.bf16.mxu1 %v4401_v51  ;;  %v4497_v51 = vld [vmem:[%s6204_s1 + $0x9f4] ss:$8 sps:$4 sm:$0xff]  }
  0xe7   :  { %2823 = vmatpush2.bf16.msra.mxu0 %v4396_v52  ;;  %v4492_v52 = vld [vmem:[%s6204_s1 + $0x8f0] ss:$8 sps:$4 sm:$0xff]  }
  0xe8   :  { %2824 = vmatprep.subr.bf16.mxu0 %v4404_v53  ;;  %v4500_v53 = vld [vmem:[%s6204_s1 + $0x8e4] ss:$8 sps:$4 sm:$0xff]  }
  0xe9   :  { %2866 = vmatpush2.bf16.msra.mxu1 %v4399_v54  ;;  %v4495_v54 = vld [vmem:[%s6204_s1 + $0x9f0] ss:$8 sps:$4 sm:$0xff]  }
  0xea   :  { %2867 = vmatprep.subr.bf16.mxu1 %v4407_v55  ;;  %v4503_v55 = vld [vmem:[%s6204_s1 + $0x9e4] ss:$8 sps:$4 sm:$0xff]  }
  0xeb   :  { %2825 = vmatpush2.bf16.msra.mxu0 %v4402_v56  ;;  %v4498_v56 = vld [vmem:[%s6204_s1 + $0x8e0] ss:$8 sps:$4 sm:$0xff]  }
  0xec   :  { %2826 = vmatprep.subr.bf16.mxu0 %v4410_v57  ;;  %v4506_v57 = vld [vmem:[%s6204_s1 + $0x8d4] ss:$8 sps:$4 sm:$0xff]  }
  0xed   :  { %2868 = vmatpush2.bf16.msra.mxu1 %v4405_v58  ;;  %v4501_v58 = vld [vmem:[%s6204_s1 + $0x9e0] ss:$8 sps:$4 sm:$0xff]  }
  0xee   :  { %2869 = vmatprep.subr.bf16.mxu1 %v4413_v59  ;;  %v4509_v59 = vld [vmem:[%s6204_s1 + $0x9d4] ss:$8 sps:$4 sm:$0xff]  }
  0xef   :  { %2827 = vmatpush2.bf16.msra.mxu0 %v4408_v60  ;;  %v4504_v60 = vld [vmem:[%s6204_s1 + $0x8d0] ss:$8 sps:$4 sm:$0xff]  }
  0xf0   :  { %2828 = vmatprep.subr.bf16.mxu0 %v4416_v61  ;;  %v4512_v61 = vld [vmem:[%s6204_s1 + $0x8c4] ss:$8 sps:$4 sm:$0xff]  }
  0xf1   :  { %2870 = vmatpush2.bf16.msra.mxu1 %v4411_v62  ;;  %v4507_v62 = vld [vmem:[%s6204_s1 + $0x9d0] ss:$8 sps:$4 sm:$0xff]  }
  0xf2   :  { %2871 = vmatprep.subr.bf16.mxu1 %v4419_v63  ;;  %v4515_v63 = vld [vmem:[%s6204_s1 + $0x9c4] ss:$8 sps:$4 sm:$0xff]  }
  0xf3   :  { %2829 = vmatpush2.bf16.msra.mxu0 %v4414_v0  ;;  %v4510_v0 = vld [vmem:[%s6204_s1 + $0x8c0] ss:$8 sps:$4 sm:$0xff]  }
  0xf4   :  { %2830 = vmatprep.subr.bf16.mxu0 %v4422_v1  ;;  %v4518_v1 = vld [vmem:[%s6204_s1 + $0x8b4] ss:$8 sps:$4 sm:$0xff]  }
  0xf5   :  { %2872 = vmatpush2.bf16.msra.mxu1 %v4417_v2  ;;  %v4513_v2 = vld [vmem:[%s6204_s1 + $0x9c0] ss:$8 sps:$4 sm:$0xff]  }
  0xf6   :  { %2873 = vmatprep.subr.bf16.mxu1 %v4425_v3  ;;  %v4521_v3 = vld [vmem:[%s6204_s1 + $0x9b4] ss:$8 sps:$4 sm:$0xff]  }
  0xf7   :  { %2831 = vmatpush2.bf16.msra.mxu0 %v4420_v4  ;;  %v4516_v4 = vld [vmem:[%s6204_s1 + $0x8b0] ss:$8 sps:$4 sm:$0xff]  }
  0xf8   :  { %2832 = vmatprep.subr.bf16.mxu0 %v4428_v5  ;;  %v4524_v5 = vld [vmem:[%s6204_s1 + $0x8a4] ss:$8 sps:$4 sm:$0xff]  }
  0xf9   :  { %2874 = vmatpush2.bf16.msra.mxu1 %v4423_v6  ;;  %v4519_v6 = vld [vmem:[%s6204_s1 + $0x9b0] ss:$8 sps:$4 sm:$0xff]  }
  0xfa   :  { %2875 = vmatprep.subr.bf16.mxu1 %v4431_v7  ;;  %v4527_v7 = vld [vmem:[%s6204_s1 + $0x9a4] ss:$8 sps:$4 sm:$0xff]  }
  0xfb   :  { %2833 = vmatpush2.bf16.msra.mxu0 %v4426_v8  ;;  %v4522_v8 = vld [vmem:[%s6204_s1 + $0x8a0] ss:$8 sps:$4 sm:$0xff]  }
  0xfc   :  { %2834 = vmatprep.subr.bf16.mxu0 %v4434_v9  ;;  %v4530_v9 = vld [vmem:[%s6204_s1 + $0x894] ss:$8 sps:$4 sm:$0xff]  }
  0xfd   :  { %2876 = vmatpush2.bf16.msra.mxu1 %v4429_v10  ;;  %v4525_v10 = vld [vmem:[%s6204_s1 + $0x9a0] ss:$8 sps:$4 sm:$0xff]  }
  0xfe   :  { %2877 = vmatprep.subr.bf16.mxu1 %v4437_v12  ;;  %v4528_v12 = vld [vmem:[%s6204_s1 + $0x890] ss:$8 sps:$4 sm:$0xff]  }
  0xff   :  { %2835 = vmatpush2.bf16.msra.mxu0 %v4432_v11  ;;  %v4533_v11 = vld [vmem:[%s6204_s1 + $0x994] ss:$8 sps:$4 sm:$0xff]  }
 0x100   :  { %2890 = vmatprep.subr.bf16.mxu0 %v4443_v14  ;;  %v4531_v14 = vld [vmem:[%s6204_s1 + $0x990] ss:$8 sps:$4 sm:$0xff]  }
 0x101   :  { %2878 = vmatpush2.bf16.msra.mxu1 %v4435_v13  ;;  %v4536_v13 = vld [vmem:[%s6204_s1 + $0x884] ss:$8 sps:$4 sm:$0xff]  }
 0x102   :  { %2837 = vmatmul.mubr.bf16.vlgmr.msra.gmra.mxu0 %v4438_v15  ;;  %2933 = vmatprep.subr.bf16.mxu1 %v4449_v18  ;;  %v4539_v15 = vld [vmem:[%s6204_s1 + $0x984] ss:$8 sps:$4 sm:$0xff]   ;;  %v4537_v18 = vld [vmem:[%s6204_s1 + $0x980] ss:$8 sps:$4 sm:$0xff]  }
 0x103   :  { %2891 = vmatpush1.bf16.msra.mxu0 %v4441_v16  ;;  %2922 = vmatprep.mubr.bf16.mxu0 %v4542_v19  ;;  %v4534_v16 = vld [vmem:[%s6204_s1 + $0x880] ss:$8 sps:$4 sm:$0xff]  }
 0x104   :  { %2880 = vmatmul.mubr.bf16.vlgmr.msra.gmra.mxu1 %v4444_v17  ;;  %2892 = vmatprep.subr.bf16.mxu0 %v4452_v20  ;;  %v4545_v17 = vld [vmem:[%s6204_s1 + $0xa74] ss:$8 sps:$4 sm:$0xff]   ;;  %v4540_v19 = vld [vmem:[%s6205_s0 + $0x40] ss:$100 sps:$4 sm:$0xff]  }
 0x105   :  { %2934 = vmatpush1.bf16.msra.mxu1 %v4447_v21  ;;  %2965 = vmatprep.mubr.bf16.mxu1 %v4548_v22  ;;  %v4551_v20 = vld [vmem:[%s6204_s1 + $0xb74] ss:$8 sps:$4 sm:$0xff]   ;;  %v4543_v21 = vld [vmem:[%s6204_s1 + $0xa70] ss:$8 sps:$4 sm:$0xff]  }
 0x106   :  { %2935 = vmatprep.subr.bf16.mxu1 %v4455_v23  ;;  %v4644_v22 = vld [vmem:[%s6205_s0 + $0x54] ss:$100 sps:$4 sm:$0xff]   ;;  %v4546_v23 = vld [vmem:[%s6205_s0 + $0x48] ss:$100 sps:$4 sm:$0xff]  }
 0x107   :  { %2893 = vmatpush1.bf16.msra.mxu0 %v4450_v24  ;;  %v4554_v24 = vld [vmem:[%s6204_s1 + $0xa64] ss:$8 sps:$4 sm:$0xff]  }
 0x108   :  { %2894 = vmatprep.subr.bf16.mxu0 %v4458_v25  ;;  %v4549_v25 = vld [vmem:[%s6204_s1 + $0xb70] ss:$8 sps:$4 sm:$0xff]  }
 0x109   :  { %2936 = vmatpush1.bf16.msra.mxu1 %v4453_v26  ;;  %v4650_v26 = vld [vmem:[%s6205_s0 + $0x5c] ss:$100 sps:$4 sm:$0xff]  }
 0x10a   :  { %2937 = vmatprep.subr.bf16.mxu1 %v4461_v27  ;;  %v4557_v27 = vld [vmem:[%s6204_s1 + $0xb64] ss:$8 sps:$4 sm:$0xff]  }
 0x10b   :  { %2895 = vmatpush1.bf16.msra.mxu0 %v4456_v28  ;;  %v4552_v28 = vld [vmem:[%s6204_s1 + $0xa60] ss:$8 sps:$4 sm:$0xff]  }
 0x10c   :  { %2896 = vmatprep.subr.bf16.mxu0 %v4464_v29  ;;  %v4560_v29 = vld [vmem:[%s6204_s1 + $0xa54] ss:$8 sps:$4 sm:$0xff]  }
 0x10d   :  { %2938 = vmatpush1.bf16.msra.mxu1 %v4459_v30  ;;  %v4555_v30 = vld [vmem:[%s6204_s1 + $0xb60] ss:$8 sps:$4 sm:$0xff]  }
 0x10e   :  { %2939 = vmatprep.subr.bf16.mxu1 %v4467_v31  ;;  %v4563_v31 = vld [vmem:[%s6204_s1 + $0xb54] ss:$8 sps:$4 sm:$0xff]  }
 0x10f   :  { %2897 = vmatpush1.bf16.msra.mxu0 %v4462_v32  ;;  %v4558_v32 = vld [vmem:[%s6204_s1 + $0xa50] ss:$8 sps:$4 sm:$0xff]  }
 0x110   :  { %2898 = vmatprep.subr.bf16.mxu0 %v4470_v33  ;;  %v4566_v33 = vld [vmem:[%s6204_s1 + $0xa44] ss:$8 sps:$4 sm:$0xff]  }
 0x111   :  { %2940 = vmatpush1.bf16.msra.mxu1 %v4465_v34  ;;  %v4561_v34 = vld [vmem:[%s6204_s1 + $0xb50] ss:$8 sps:$4 sm:$0xff]  }
 0x112   :  { %2941 = vmatprep.subr.bf16.mxu1 %v4473_v35  ;;  %v4569_v35 = vld [vmem:[%s6204_s1 + $0xb44] ss:$8 sps:$4 sm:$0xff]  }
 0x113   :  { %2899 = vmatpush1.bf16.msra.mxu0 %v4468_v36  ;;  %v4564_v36 = vld [vmem:[%s6204_s1 + $0xa40] ss:$8 sps:$4 sm:$0xff]  }
 0x114   :  { %2900 = vmatprep.subr.bf16.mxu0 %v4476_v37  ;;  %v4572_v37 = vld [vmem:[%s6204_s1 + $0xa34] ss:$8 sps:$4 sm:$0xff]  }
 0x115   :  { %2942 = vmatpush1.bf16.msra.mxu1 %v4471_v38  ;;  %v4567_v38 = vld [vmem:[%s6204_s1 + $0xb40] ss:$8 sps:$4 sm:$0xff]  }
 0x116   :  { %2943 = vmatprep.subr.bf16.mxu1 %v4479_v39  ;;  %v4575_v39 = vld [vmem:[%s6204_s1 + $0xb34] ss:$8 sps:$4 sm:$0xff]  }
 0x117   :  { %2901 = vmatpush1.bf16.msra.mxu0 %v4474_v40  ;;  %v4570_v40 = vld [vmem:[%s6204_s1 + $0xa30] ss:$8 sps:$4 sm:$0xff]  }
 0x118   :  { %2902 = vmatprep.subr.bf16.mxu0 %v4482_v41  ;;  %v4578_v41 = vld [vmem:[%s6204_s1 + $0xa24] ss:$8 sps:$4 sm:$0xff]  }
 0x119   :  { %2944 = vmatpush1.bf16.msra.mxu1 %v4477_v42  ;;  %v4573_v42 = vld [vmem:[%s6204_s1 + $0xb30] ss:$8 sps:$4 sm:$0xff]  }
 0x11a   :  { %2945 = vmatprep.subr.bf16.mxu1 %v4485_v43  ;;  %v4581_v43 = vld [vmem:[%s6204_s1 + $0xb24] ss:$8 sps:$4 sm:$0xff]  }
 0x11b   :  { %2903 = vmatpush1.bf16.msra.mxu0 %v4480_v44  ;;  %v4576_v44 = vld [vmem:[%s6204_s1 + $0xa20] ss:$8 sps:$4 sm:$0xff]  }
 0x11c   :  { %2904 = vmatprep.subr.bf16.mxu0 %v4488_v45  ;;  %v4584_v45 = vld [vmem:[%s6204_s1 + $0xa14] ss:$8 sps:$4 sm:$0xff]  }
 0x11d   :  { %2946 = vmatpush1.bf16.msra.mxu1 %v4483_v46  ;;  %v4579_v46 = vld [vmem:[%s6204_s1 + $0xb20] ss:$8 sps:$4 sm:$0xff]  }
 0x11e   :  { %2947 = vmatprep.subr.bf16.mxu1 %v4491_v47  ;;  %v4587_v47 = vld [vmem:[%s6204_s1 + $0xb14] ss:$8 sps:$4 sm:$0xff]  }
 0x11f   :  { %2905 = vmatpush1.bf16.msra.mxu0 %v4486_v48  ;;  %v4582_v48 = vld [vmem:[%s6204_s1 + $0xa10] ss:$8 sps:$4 sm:$0xff]  }
 0x120   :  { %2906 = vmatprep.subr.bf16.mxu0 %v4494_v49  ;;  %v4590_v49 = vld [vmem:[%s6204_s1 + $0xa04] ss:$8 sps:$4 sm:$0xff]  }
 0x121   :  { %2948 = vmatpush1.bf16.msra.mxu1 %v4489_v50  ;;  %v4585_v50 = vld [vmem:[%s6204_s1 + $0xb10] ss:$8 sps:$4 sm:$0xff]  }
 0x122   :  { %2949 = vmatprep.subr.bf16.mxu1 %v4497_v51  ;;  %v4593_v51 = vld [vmem:[%s6204_s1 + $0xb04] ss:$8 sps:$4 sm:$0xff]  }
 0x123   :  { %2907 = vmatpush2.bf16.msra.mxu0 %v4492_v52  ;;  %v4588_v52 = vld [vmem:[%s6204_s1 + $0xa00] ss:$8 sps:$4 sm:$0xff]  }
 0x124   :  { %2908 = vmatprep.subr.bf16.mxu0 %v4500_v53  ;;  %v4596_v53 = vld [vmem:[%s6204_s1 + $0xaf4] ss:$8 sps:$4 sm:$0xff]  }
 0x125   :  { %2950 = vmatpush2.bf16.msra.mxu1 %v4495_v54  ;;  %v4591_v54 = vld [vmem:[%s6204_s1 + $0xb00] ss:$8 sps:$4 sm:$0xff]  }
 0x126   :  { %2951 = vmatprep.subr.bf16.mxu1 %v4503_v55  ;;  %v4599_v55 = vld [vmem:[%s6204_s1 + $0xbf4] ss:$8 sps:$4 sm:$0xff]  }
 0x127   :  { %2909 = vmatpush2.bf16.msra.mxu0 %v4498_v56  ;;  %v4594_v56 = vld [vmem:[%s6204_s1 + $0xaf0] ss:$8 sps:$4 sm:$0xff]  }
 0x128   :  { %2910 = vmatprep.subr.bf16.mxu0 %v4506_v57  ;;  %v4602_v57 = vld [vmem:[%s6204_s1 + $0xae4] ss:$8 sps:$4 sm:$0xff]  }
 0x129   :  { %2952 = vmatpush2.bf16.msra.mxu1 %v4501_v58  ;;  %v4597_v58 = vld [vmem:[%s6204_s1 + $0xbf0] ss:$8 sps:$4 sm:$0xff]  }
 0x12a   :  { %2953 = vmatprep.subr.bf16.mxu1 %v4509_v59  ;;  %v4605_v59 = vld [vmem:[%s6204_s1 + $0xbe4] ss:$8 sps:$4 sm:$0xff]  }
 0x12b   :  { %2911 = vmatpush2.bf16.msra.mxu0 %v4504_v60  ;;  %v4600_v60 = vld [vmem:[%s6204_s1 + $0xae0] ss:$8 sps:$4 sm:$0xff]  }
 0x12c   :  { %2912 = vmatprep.subr.bf16.mxu0 %v4512_v61  ;;  %v4608_v61 = vld [vmem:[%s6204_s1 + $0xad4] ss:$8 sps:$4 sm:$0xff]  }
 0x12d   :  { %2954 = vmatpush2.bf16.msra.mxu1 %v4507_v62  ;;  %v4603_v62 = vld [vmem:[%s6204_s1 + $0xbe0] ss:$8 sps:$4 sm:$0xff]  }
 0x12e   :  { %2955 = vmatprep.subr.bf16.mxu1 %v4515_v63  ;;  %v4611_v63 = vld [vmem:[%s6204_s1 + $0xbd4] ss:$8 sps:$4 sm:$0xff]  }
 0x12f   :  { %2913 = vmatpush2.bf16.msra.mxu0 %v4510_v0  ;;  %v4606_v0 = vld [vmem:[%s6204_s1 + $0xad0] ss:$8 sps:$4 sm:$0xff]  }
 0x130   :  { %2914 = vmatprep.subr.bf16.mxu0 %v4518_v1  ;;  %v4614_v1 = vld [vmem:[%s6204_s1 + $0xac4] ss:$8 sps:$4 sm:$0xff]  }
 0x131   :  { %2956 = vmatpush2.bf16.msra.mxu1 %v4513_v2  ;;  %v4609_v2 = vld [vmem:[%s6204_s1 + $0xbd0] ss:$8 sps:$4 sm:$0xff]  }
 0x132   :  { %2957 = vmatprep.subr.bf16.mxu1 %v4521_v3  ;;  %v4617_v3 = vld [vmem:[%s6204_s1 + $0xbc4] ss:$8 sps:$4 sm:$0xff]  }
 0x133   :  { %2915 = vmatpush2.bf16.msra.mxu0 %v4516_v4  ;;  %v4612_v4 = vld [vmem:[%s6204_s1 + $0xac0] ss:$8 sps:$4 sm:$0xff]  }
 0x134   :  { %2916 = vmatprep.subr.bf16.mxu0 %v4524_v5  ;;  %v4620_v5 = vld [vmem:[%s6204_s1 + $0xab4] ss:$8 sps:$4 sm:$0xff]  }
 0x135   :  { %2958 = vmatpush2.bf16.msra.mxu1 %v4519_v6  ;;  %v4615_v6 = vld [vmem:[%s6204_s1 + $0xbc0] ss:$8 sps:$4 sm:$0xff]  }
 0x136   :  { %2959 = vmatprep.subr.bf16.mxu1 %v4527_v7  ;;  %v4623_v7 = vld [vmem:[%s6204_s1 + $0xbb4] ss:$8 sps:$4 sm:$0xff]  }
 0x137   :  { %2917 = vmatpush2.bf16.msra.mxu0 %v4522_v8  ;;  %v4618_v8 = vld [vmem:[%s6204_s1 + $0xab0] ss:$8 sps:$4 sm:$0xff]  }
 0x138   :  { %2918 = vmatprep.subr.bf16.mxu0 %v4530_v9  ;;  %v4626_v9 = vld [vmem:[%s6204_s1 + $0xaa4] ss:$8 sps:$4 sm:$0xff]  }
 0x139   :  { %2960 = vmatpush2.bf16.msra.mxu1 %v4525_v10  ;;  %v4621_v10 = vld [vmem:[%s6204_s1 + $0xbb0] ss:$8 sps:$4 sm:$0xff]  }
 0x13a   :  { %2961 = vmatprep.subr.bf16.mxu1 %v4533_v11  ;;  %v4629_v11 = vld [vmem:[%s6204_s1 + $0xba4] ss:$8 sps:$4 sm:$0xff]  }
 0x13b   :  { %2919 = vmatpush2.bf16.msra.mxu0 %v4528_v12  ;;  %v4624_v12 = vld [vmem:[%s6204_s1 + $0xaa0] ss:$8 sps:$4 sm:$0xff]  }
 0x13c   :  { %2920 = vmatprep.subr.bf16.mxu0 %v4536_v13  ;;  %v4632_v13 = vld [vmem:[%s6204_s1 + $0xa94] ss:$8 sps:$4 sm:$0xff]  }
 0x13d   :  { %2962 = vmatpush2.bf16.msra.mxu1 %v4531_v14  ;;  %v4627_v14 = vld [vmem:[%s6204_s1 + $0xba0] ss:$8 sps:$4 sm:$0xff]  }
 0x13e   :  { %2963 = vmatprep.subr.bf16.mxu1 %v4539_v15  ;;  %v4635_v15 = vld [vmem:[%s6204_s1 + $0xb94] ss:$8 sps:$4 sm:$0xff]  }
 0x13f   :  { %2921 = vmatpush2.bf16.msra.mxu0 %v4534_v16  ;;  %v4630_v16 = vld [vmem:[%s6204_s1 + $0xa90] ss:$8 sps:$4 sm:$0xff]  }
 0x140   :  { %2976 = vmatprep.subr.bf16.mxu0 %v4545_v17  ;;  %v4638_v17 = vld [vmem:[%s6204_s1 + $0xa84] ss:$8 sps:$4 sm:$0xff]  }
 0x141   :  { %2964 = vmatpush2.bf16.msra.mxu1 %v4537_v18  ;;  %v4633_v18 = vld [vmem:[%s6204_s1 + $0xb90] ss:$8 sps:$4 sm:$0xff]  }
 0x142   :  { %2923 = vmatmul.mubr.bf16.vlgmr.msra.gmra.mxu0 %v4540_v19  ;;  %3019 = vmatprep.subr.bf16.mxu1 %v4551_v20  ;;  %v4641_v19 = vld [vmem:[%s6204_s1 + $0xb84] ss:$8 sps:$4 sm:$0xff]   ;;  %v4636_v20 = vld [vmem:[%s6204_s1 + $0xa80] ss:$8 sps:$4 sm:$0xff]  }
 0x143   :  { %2977 = vmatpush1.bf16.msra.mxu0 %v4543_v21  ;;  %3008 = vmatprep.mubr.bf16.mxu0 %v4644_v22  ;;  %v4647_v21 = vld [vmem:[%s6204_s1 + $0xc34] ss:$8 sps:$4 sm:$0xff]   ;;  %v4639_v22 = vld [vmem:[%s6204_s1 + $0xb80] ss:$8 sps:$4 sm:$0xff]  }
 0x144   :  { %2966 = vmatmul.mubr.bf16.vlgmr.msra.gmra.mxu1 %v4546_v23  ;;  %2978 = vmatprep.subr.bf16.mxu0 %v4554_v24  ;;  %v4642_v23 = vld [vmem:[%s6205_s0 + $0x50] ss:$100 sps:$4 sm:$0xff]  }
 0x145   :  { %3020 = vmatpush1.bf16.msra.mxu1 %v4549_v25  ;;  %3051 = vmatprep.mubr.bf16.mxu1 %v4650_v26  ;;  %v4645_v24 = vld [vmem:[%s6204_s1 + $0xc30] ss:$8 sps:$4 sm:$0xff]   ;;  %v4653_v26 = vld [vmem:[%s6204_s1 + $0xc24] ss:$8 sps:$4 sm:$0xff]  }
 0x146   :  { %3021 = vmatprep.subr.bf16.mxu1 %v4557_v27  ;;  %v4648_v25 = vld [vmem:[%s6205_s0 + $0x58] ss:$100 sps:$4 sm:$0xff]   ;;  %v4651_v27 = vld [vmem:[%s6204_s1 + $0xc20] ss:$8 sps:$4 sm:$0xff]  }
 0x147   :  { %2979 = vmatpush1.bf16.msra.mxu0 %v4552_v28  ;;  %v4741_v28 = vmov 0  }
 0x148   :  { %2980 = vmatprep.subr.bf16.mxu0 %v4560_v29  ;;  %v4656_v29 = vld [vmem:[%s6204_s1 + $0xc14] ss:$8 sps:$4 sm:$0xff]  }
 0x149   :  { %3022 = vmatpush1.bf16.msra.mxu1 %v4555_v30  ;;  %v4654_v30 = vld [vmem:[%s6204_s1 + $0xc10] ss:$8 sps:$4 sm:$0xff]  }
 0x14a   :  { %3023 = vmatprep.subr.bf16.mxu1 %v4563_v31  ;;  %v4659_v31 = vld [vmem:[%s6204_s1 + $0xc04] ss:$8 sps:$4 sm:$0xff]  }
 0x14b   :  { %2981 = vmatpush1.bf16.msra.mxu0 %v4558_v32  ;;  %v4657_v32 = vld [vmem:[%s6204_s1 + $0xc00] ss:$8 sps:$4 sm:$0xff]  }
 0x14c   :  { %2982 = vmatprep.subr.bf16.mxu0 %v4566_v33  ;;  %v4661_v33 = vld [vmem:[%s6206_s3 + $0x70] ss:$8 sps:$4 sm:$0xff]  }
 0x14d   :  { %3024 = vmatpush1.bf16.msra.mxu1 %v4561_v34  ;;  %v4663_v34 = vld [vmem:[%s6206_s3 + $0x74] ss:$8 sps:$4 sm:$0xff]  }
 0x14e   :  { %3025 = vmatprep.subr.bf16.mxu1 %v4569_v35  ;;  %v4660_v35 = vld [vmem:[%s6205_s0 + $0x60] ss:$100 sps:$4 sm:$0xff]  }
 0x14f   :  { %2983 = vmatpush1.bf16.msra.mxu0 %v4564_v36  ;;  %v4666_v36 = vld [vmem:[%s6206_s3 + $0x64] ss:$8 sps:$4 sm:$0xff]  }
 0x150   :  { %2984 = vmatprep.subr.bf16.mxu0 %v4572_v37  ;;  %v4664_v37 = vld [vmem:[%s6206_s3 + $0x60] ss:$8 sps:$4 sm:$0xff]  }
 0x151   :  { %3026 = vmatpush1.bf16.msra.mxu1 %v4567_v38  ;;  %v4669_v38 = vld [vmem:[%s6206_s3 + $0x54] ss:$8 sps:$4 sm:$0xff]  }
 0x152   :  { %3027 = vmatprep.subr.bf16.mxu1 %v4575_v39  ;;  %v4667_v39 = vld [vmem:[%s6206_s3 + $0x50] ss:$8 sps:$4 sm:$0xff]  }
 0x153   :  { %2985 = vmatpush1.bf16.msra.mxu0 %v4570_v40  ;;  %v4672_v40 = vld [vmem:[%s6206_s3 + $0x44] ss:$8 sps:$4 sm:$0xff]  }
 0x154   :  { %2986 = vmatprep.subr.bf16.mxu0 %v4578_v41  ;;  %v4670_v41 = vld [vmem:[%s6206_s3 + $0x40] ss:$8 sps:$4 sm:$0xff]  }
 0x155   :  { %3028 = vmatpush1.bf16.msra.mxu1 %v4573_v42  ;;  %v4675_v42 = vld [vmem:[%s6206_s3 + $0x34] ss:$8 sps:$4 sm:$0xff]  }
 0x156   :  { %3029 = vmatprep.subr.bf16.mxu1 %v4581_v43  ;;  %v4673_v43 = vld [vmem:[%s6206_s3 + $0x30] ss:$8 sps:$4 sm:$0xff]  }
 0x157   :  { %2987 = vmatpush1.bf16.msra.mxu0 %v4576_v44  ;;  %v4678_v44 = vld [vmem:[%s6206_s3 + $0x24] ss:$8 sps:$4 sm:$0xff]  }
 0x158   :  { %2988 = vmatprep.subr.bf16.mxu0 %v4584_v45  ;;  %v4676_v45 = vld [vmem:[%s6206_s3 + $0x20] ss:$8 sps:$4 sm:$0xff]  }
 0x159   :  { %3030 = vmatpush1.bf16.msra.mxu1 %v4579_v46  ;;  %v4681_v46 = vld [vmem:[%s6206_s3 + $0x14] ss:$8 sps:$4 sm:$0xff]  }
 0x15a   :  { %3031 = vmatprep.subr.bf16.mxu1 %v4587_v47  ;;  %v4679_v47 = vld [vmem:[%s6206_s3 + $0x10] ss:$8 sps:$4 sm:$0xff]  }
 0x15b   :  { %2989 = vmatpush1.bf16.msra.mxu0 %v4582_v48  ;;  %v4684_v48 = vld [vmem:[%s6206_s3 + $0x4] ss:$8 sps:$4 sm:$0xff]  }
 0x15c   :  { %2990 = vmatprep.subr.bf16.mxu0 %v4590_v49  ;;  %v4682_v49 = vld [vmem:[%s6206_s3] ss:$8 sps:$4 sm:$0xff]  }
 0x15d   :  { %3032 = vmatpush1.bf16.msra.mxu1 %v4585_v50  ;;  %v4687_v50 = vld [vmem:[%s6206_s3 + $0xf4] ss:$8 sps:$4 sm:$0xff]  }
 0x15e   :  { %3033 = vmatprep.subr.bf16.mxu1 %v4593_v51  ;;  %v4685_v51 = vld [vmem:[%s6206_s3 + $0xf0] ss:$8 sps:$4 sm:$0xff]  }
 0x15f   :  { %2991 = vmatpush1.bf16.msra.mxu0 %v4588_v52  ;;  %v4690_v52 = vld [vmem:[%s6206_s3 + $0xe4] ss:$8 sps:$4 sm:$0xff]  }
 0x160   :  { %2992 = vmatprep.subr.bf16.mxu0 %v4596_v53  ;;  %v4688_v53 = vld [vmem:[%s6206_s3 + $0xe0] ss:$8 sps:$4 sm:$0xff]  }
 0x161   :  { %3034 = vmatpush1.bf16.msra.mxu1 %v4591_v54  ;;  %v4693_v54 = vld [vmem:[%s6206_s3 + $0xd4] ss:$8 sps:$4 sm:$0xff]  }
 0x162   :  { %3035 = vmatprep.subr.bf16.mxu1 %v4599_v55  ;;  %v4691_v55 = vld [vmem:[%s6206_s3 + $0xd0] ss:$8 sps:$4 sm:$0xff]  }
 0x163   :  { %2993 = vmatpush2.bf16.msra.mxu0 %v4594_v56  ;;  %v4696_v56 = vld [vmem:[%s6206_s3 + $0xc4] ss:$8 sps:$4 sm:$0xff]  }
 0x164   :  { %2994 = vmatprep.subr.bf16.mxu0 %v4602_v57  ;;  %v4694_v57 = vld [vmem:[%s6206_s3 + $0xc0] ss:$8 sps:$4 sm:$0xff]  }
 0x165   :  { %3036 = vmatpush2.bf16.msra.mxu1 %v4597_v58  ;;  %v4699_v58 = vld [vmem:[%s6206_s3 + $0xb4] ss:$8 sps:$4 sm:$0xff]  }
 0x166   :  { %3037 = vmatprep.subr.bf16.mxu1 %v4605_v59  ;;  %v4697_v59 = vld [vmem:[%s6206_s3 + $0xb0] ss:$8 sps:$4 sm:$0xff]  }
 0x167   :  { %2995 = vmatpush2.bf16.msra.mxu0 %v4600_v60  ;;  %v4702_v60 = vld [vmem:[%s6206_s3 + $0xa4] ss:$8 sps:$4 sm:$0xff]  }
 0x168   :  { %2996 = vmatprep.subr.bf16.mxu0 %v4608_v61  ;;  %v4700_v61 = vld [vmem:[%s6206_s3 + $0xa0] ss:$8 sps:$4 sm:$0xff]  }
 0x169   :  { %3038 = vmatpush2.bf16.msra.mxu1 %v4603_v62  ;;  %v4705_v62 = vld [vmem:[%s6206_s3 + $0x94] ss:$8 sps:$4 sm:$0xff]  }
 0x16a   :  { %3039 = vmatprep.subr.bf16.mxu1 %v4611_v63  ;;  %v4703_v63 = vld [vmem:[%s6206_s3 + $0x90] ss:$8 sps:$4 sm:$0xff]  }
 0x16b   :  { %2997 = vmatpush2.bf16.msra.mxu0 %v4606_v0  ;;  %v4708_v0 = vld [vmem:[%s6206_s3 + $0x84] ss:$8 sps:$4 sm:$0xff]  }
 0x16c   :  { %2998 = vmatprep.subr.bf16.mxu0 %v4614_v1  ;;  %v4706_v1 = vld [vmem:[%s6206_s3 + $0x80] ss:$8 sps:$4 sm:$0xff]  }
 0x16d   :  { %3040 = vmatpush2.bf16.msra.mxu1 %v4609_v2  ;;  %v4709_v2 = vld [vmem:[%s6207_s5 + $0x78] sm:$0xff]  }
 0x16e   :  { %3041 = vmatprep.subr.bf16.mxu1 %v4617_v3  ;;  %v4710_v3 = vld [vmem:[%s6207_s5 + $0x38] sm:$0xff]  }
 0x16f   :  { %2999 = vmatpush2.bf16.msra.mxu0 %v4612_v4  ;;  %v4711_v4 = vld [vmem:[%s6207_s5 + $0x70] sm:$0xff]  }
 0x170   :  { %3000 = vmatprep.subr.bf16.mxu0 %v4620_v5  ;;  %v4712_v5 = vld [vmem:[%s6207_s5 + $0x30] sm:$0xff]  }
 0x171   :  { %3042 = vmatpush2.bf16.msra.mxu1 %v4615_v6  ;;  %v2580_v6 = vpop.f32.mrf.mxu0 }
 0x172   :  { %3043 = vmatprep.subr.bf16.mxu1 %v4623_v7 }
 0x173   :  { %3001 = vmatpush2.bf16.msra.mxu0 %v4618_v8  ;;  %v2582_v7 = vpop.f32.mrf.mxu0  ;;  %v2623_v8 = vpop.f32.mrf.mxu1 }
 0x174   :  { %3002 = vmatprep.subr.bf16.mxu0 %v4626_v9 }
 0x175   :  { %3044 = vmatpush2.bf16.msra.mxu1 %v4621_v10  ;;  %v2584_v9 = vpop.f32.mrf.mxu0  ;;  %v2625_v10 = vpop.f32.mrf.mxu1 }
 0x176   :  { %3045 = vmatprep.subr.bf16.mxu1 %v4629_v11 }
 0x177   :  { %3003 = vmatpush2.bf16.msra.mxu0 %v4624_v12  ;;  %v2586_v11 = vpop.f32.mrf.mxu0  ;;  %v2627_v12 = vpop.f32.mrf.mxu1 }
 0x178   :  { %3004 = vmatprep.subr.bf16.mxu0 %v4632_v13 }
 0x179   :  { %3046 = vmatpush2.bf16.msra.mxu1 %v4627_v14  ;;  %v2666_v13 = vpop.f32.mrf.mxu0  ;;  %v2629_v14 = vpop.f32.mrf.mxu1 }
 0x17a   :  { %3047 = vmatprep.subr.bf16.mxu1 %v4635_v15 }
 0x17b   :  { %3005 = vmatpush2.bf16.msra.mxu0 %v4630_v16  ;;  %v2668_v15 = vpop.f32.mrf.mxu0  ;;  %v2709_v16 = vpop.f32.mrf.mxu1 }
 0x17c   :  { %3006 = vmatprep.subr.bf16.mxu0 %v4638_v17 }
 0x17d   :  { %3048 = vmatpush2.bf16.msra.mxu1 %v4633_v18  ;;  %v2670_v17 = vpop.f32.mrf.mxu0  ;;  %v2711_v18 = vpop.f32.mrf.mxu1 }
 0x17e   :  { %3049 = vmatprep.subr.bf16.mxu1 %v4641_v19 }
 0x17f   :  { %3007 = vmatpush2.bf16.msra.mxu0 %v4636_v20  ;;  %v2672_v19 = vpop.f32.mrf.mxu0  ;;  %v2713_v20 = vpop.f32.mrf.mxu1 }
 0x180   :  { %3070 = vmatprep.subr.bf16.mxu0 %v4647_v21 }
 0x181   :  { %3050 = vmatpush2.bf16.msra.mxu1 %v4639_v22  ;;  %v2715_v22 = vpop.f32.mrf.mxu1 }
 0x182   :  { %3009 = vmatmul.mubr.bf16.vlgmr.msra.gmra.mxu0 %v4642_v23  ;;  %3315 = vmatprep.subr.bf16.mxu1 %v4663_v34  ;;  %v2752_v21 = vpop.f32.mrf.mxu0 }
 0x183   :  { %3071 = vmatpush1.bf16.msra.mxu0 %v4645_v24  ;;  %3094 = vmatprep.mubr.bf16.mxu0 %v4741_v28 }
 0x184   :  { %3052 = vmatmul.mubr.bf16.vlgmr.msra.gmra.mxu1 %v4648_v25  ;;  %3072 = vmatprep.subr.bf16.mxu0 %v4653_v26  ;;  %v2754_v23 = vpop.f32.mrf.mxu0  ;;  %v2795_v24 = vpop.f32.mrf.mxu1  ;;  %v447_v25 = vlaneseq }
 0x185   :  { %3316 = vmatpush1.bf16.msra.mxu1 %v4661_v33  ;;  %v445_v33 = vld [vmem:[%s6208_s2] sm:$0x3] }
 0x186   :  { %3317 = vmatprep.subr.bf16.mxu1 %v4666_v36  ;;  %v2756_v26 = vpop.f32.mrf.mxu0  ;;  %v6141_v28 = vshrl.u32 %v447_v25, 7 }
 0x187   :  { %3073 = vmatpush1.bf16.msra.mxu0 %v4651_v27  ;;  %v2797_v27 = vpop.f32.mrf.mxu1 }
 0x188   :  { %3074 = vmatprep.subr.bf16.mxu0 %v4656_v29  ;;  %v2758_v29 = vpop.f32.mrf.mxu0 }
 0x189   :  { %3318 = vmatpush1.bf16.msra.mxu1 %v4664_v37 }
 0x18a   :  { %3319 = vmatprep.subr.bf16.mxu1 %v4669_v38 }
 0x18b   :  { %3075 = vmatpush1.bf16.msra.mxu0 %v4654_v30  ;;  %v2799_v30 = vpop.f32.mrf.mxu1 }
 0x18c   :  { %3076 = vmatprep.subr.bf16.mxu0 %v4659_v31 }
 0x18d   :  { %3320 = vmatpush1.bf16.msra.mxu1 %v4667_v39  ;;  %v2801_v34 = vpop.f32.mrf.mxu1 }
 0x18e   :  { %3321 = vmatprep.subr.bf16.mxu1 %v4672_v40 }
 0x18f   :  { %3077 = vmatpush1.bf16.msra.mxu0 %v4657_v32  ;;  %v453_v32 = vsub.s32 1, %v6141_v28 }
 0x190   :  { %4013 = vmatprep.subr.bf16.mxu0 %v4709_v2 }
 0x191   :  { %3322 = vmatpush1.bf16.msra.mxu1 %v4670_v41  ;;  %v454_v38 = vrot.slane %v445_v33, %v453_v32 }
 0x192   :  { %3963 = vmatmul.mubr.msk.bf16.vlgmr.msra.gmra.mxu0 %vm2542_vm0, %v4660_v35  ;;  %3323 = vmatprep.subr.bf16.mxu1 %v4675_v42  ;;  %v449_v35 = vsub.s32 0, %v6141_v28 }
 0x193   :  { %4014 = vmatpush3.bf16.msra.mxu0 %v4710_v3  ;;  %v2583_v42 = vadd.f32 %v2582_v7, %v454_v38 }
 0x194   :  { %4015 = vmatprep.subr.bf16.mxu0 %v4711_v4  ;;  %v450_v39 = vrot.slane %v445_v33, %v449_v35 }
 0x195   :  { %3324 = vmatpush1.bf16.msra.mxu1 %v4673_v43 }
 0x196   :  { %3325 = vmatprep.subr.bf16.mxu1 %v4678_v44  ;;  %v2585_v43 = vadd.f32 %v2584_v9, %v450_v39  ;;  %v2581_v44 = vadd.f32 %v2580_v6, %v450_v39 }
 0x197   :  { %4016 = vmatpush3.bf16.msra.mxu0 %v4712_v5 }
 0x199   :  { %3326 = vmatpush1.bf16.msra.mxu1 %v4676_v45 }
 0x19a   :  { %3327 = vmatprep.subr.bf16.mxu1 %v4681_v46 }
 0x19d   :  { %3328 = vmatpush1.bf16.msra.mxu1 %v4679_v47  ;;  %v2626_v47 = vadd.f32 %v2625_v10, %v2583_v42 }
 0x19e   :  { %3329 = vmatprep.subr.bf16.mxu1 %v4684_v48  ;;  %v2587_v48 = vadd.f32 %v2586_v11, %v454_v38 }
 0x1a1   :  { %3330 = vmatpush1.bf16.msra.mxu1 %v4682_v49 }
 0x1a2   :  { %3331 = vmatprep.subr.bf16.mxu1 %v4687_v50  ;;  %v2628_v50 = vadd.f32 %v2627_v12, %v2585_v43 }
 0x1a5   :  { %3332 = vmatpush2.bf16.msra.mxu1 %v4685_v51  ;;  %v2669_v51 = vadd.f32 %v2668_v15, %v2626_v47 }
 0x1a6   :  { %3333 = vmatprep.subr.bf16.mxu1 %v4690_v52  ;;  %v2624_v52 = vadd.f32 %v2623_v8, %v2581_v44 }
 0x1a9   :  { %3334 = vmatpush2.bf16.msra.mxu1 %v4688_v53 }
 0x1aa   :  { %3335 = vmatprep.subr.bf16.mxu1 %v4693_v54  ;;  %v2630_v54 = vadd.f32 %v2629_v14, %v2587_v48 }
 0x1ad   :  { %3336 = vmatpush2.bf16.msra.mxu1 %v4691_v55  ;;  %v2671_v55 = vadd.f32 %v2670_v17, %v2628_v50 }
 0x1ae   :  { %3337 = vmatprep.subr.bf16.mxu1 %v4696_v56  ;;  %v2667_v56 = vadd.f32 %v2666_v13, %v2624_v52 }
 0x1b1   :  { %3338 = vmatpush2.bf16.msra.mxu1 %v4694_v57 }
 0x1b2   :  { %3339 = vmatprep.subr.bf16.mxu1 %v4699_v58 }
 0x1b5   :  { %3340 = vmatpush2.bf16.msra.mxu1 %v4697_v59  ;;  %v2712_v59 = vadd.f32 %v2711_v18, %v2669_v51 }
 0x1b6   :  { %3341 = vmatprep.subr.bf16.mxu1 %v4702_v60  ;;  %v2673_v60 = vadd.f32 %v2672_v19, %v2630_v54 }
 0x1b8   :  { %v2716_v2 = vadd.f32 %v2715_v22, %v2673_v60 }
 0x1b9   :  { %3342 = vmatpush2.bf16.msra.mxu1 %v4700_v61  ;;  %v2714_v61 = vadd.f32 %v2713_v20, %v2671_v55 }
 0x1ba   :  { %3343 = vmatprep.subr.bf16.mxu1 %v4705_v62  ;;  %v2755_v62 = vadd.f32 %v2754_v23, %v2712_v59  ;;  %v2759_v6 = vadd.f32 %v2758_v29, %v2716_v2  ;;  %v4717_v2 = vld [vmem:[%s6207_s5 + $0x58] sm:$0xff]  }
 0x1bb   :  { %v2757_v3 = vadd.f32 %v2756_v26, %v2714_v61 }
 0x1bc   :  { %v2798_v5 = vadd.f32 %v2797_v27, %v2755_v62  ;;  %v2802_v13 = vadd.f32 %v2801_v34, %v2759_v6  ;;  %v4713_v62 = vld [vmem:[%s6207_s5 + $0x68] sm:$0xff]  }
 0x1bd   :  { %3344 = vmatpush2.bf16.msra.mxu1 %v4703_v63  ;;  %v2710_v63 = vadd.f32 %v2709_v16, %v2667_v56  ;;  %v2800_v9 = vadd.f32 %v2799_v30, %v2757_v3  ;;  %4017 = vmatprep.subr.bf16.mxu0 %v4713_v62  ;;  %v4718_v3 = vld [vmem:[%s6207_s5 + $0x18] sm:$0xff]   ;;  %v4721_v6 = vld [vmem:[%s6207_s5 + $0x48] sm:$0xff]  }
 0x1be   :  { %3345 = vmatprep.subr.bf16.mxu1 %v4708_v0 }
 0x1bf   :  { %v2753_v4 = vadd.f32 %v2752_v21, %v2710_v63  ;;  %v4714_v63 = vld [vmem:[%s6207_s5 + $0x28] sm:$0xff]  }
 0x1c0   :  { %4018 = vmatpush3.bf16.msra.mxu0 %v4714_v63 }
 0x1c1   :  { %3346 = vmatpush2.bf16.msra.mxu1 %v4706_v1  ;;  %v2796_v11 = vadd.f32 %v2795_v24, %v2753_v4  ;;  %v4719_v4 = vld [vmem:[%s6207_s5 + $0x50] sm:$0xff]  }
 0x1c2   :  { %v2838_v31 = vpop.f32.mrf.mxu0 }
 0x1c3   :  { %v2839_v15 = vadd.f32 %v2838_v31, %v2796_v11 }
 0x1c4   :  { %v2840_v36 = vpop.f32.mrf.mxu0  ;;  %v2881_v37 = vpop.f32.mrf.mxu1 }
 0x1c5   :  { %v2841_v10 = vadd.f32 %v2840_v36, %v2798_v5  ;;  %v2882_v25 = vadd.f32 %v2881_v37, %v2839_v15  ;;  %v4720_v5 = vld [vmem:[%s6207_s5 + $0x10] sm:$0xff]  }
 0x1c6   :  { %v2842_v40 = vpop.f32.mrf.mxu0  ;;  %v2883_v41 = vpop.f32.mrf.mxu1 }
 0x1c7   :  { %v2843_v14 = vadd.f32 %v2842_v40, %v2800_v9  ;;  %v2884_v18 = vadd.f32 %v2883_v41, %v2841_v10  ;;  %v4724_v9 = vld [vmem:[%s6207_s5] sm:$0xff]  }
 0x1c8   :  { %v2844_v45 = vpop.f32.mrf.mxu0  ;;  %v2885_v46 = vpop.f32.mrf.mxu1  ;;  %v3143_v10 = vld [vmem:[%s6209_s4] sm:$0x3] }
 0x1c9   :  { %v2845_v19 = vadd.f32 %v2844_v45, %v2802_v13  ;;  %v2886_v23 = vadd.f32 %v2885_v46, %v2843_v14  ;;  %v3152_v11 = vrot.slane %v3143_v10, %v453_v32  ;;  %v3148_v13 = vrot.slane %v3143_v10, %v449_v35  ;;  %v3996_v35 = vld [vmem:[%s6210_s6] ss:$0 sm:$0xff] }
 0x1ca   :  { %v2887_v53 = vpop.f32.mrf.mxu1 }
 0x1cb   :  { %v2888_v21 = vadd.f32 %v2887_v53, %v2845_v19 }
 0x202   :  { %v2924_v49 = vpop.f32.mrf.mxu0 }
 0x203   :  { %v2925_v27 = vadd.f32 %v2924_v49, %v2882_v25 }
 0x204   :  { %v2926_v57 = vpop.f32.mrf.mxu0  ;;  %v2967_v58 = vpop.f32.mrf.mxu1 }
 0x205   :  { %v2927_v22 = vadd.f32 %v2926_v57, %v2884_v18  ;;  %v2968_v34 = vadd.f32 %v2967_v58, %v2925_v27 }
 0x206   :  { %v2928_v0 = vpop.f32.mrf.mxu0  ;;  %v2969_v1 = vpop.f32.mrf.mxu1 }
 0x207   :  { %v2929_v26 = vadd.f32 %v2928_v0, %v2886_v23  ;;  %v2970_v30 = vadd.f32 %v2969_v1, %v2927_v22  ;;  %v4715_v0 = vld [vmem:[%s6207_s5 + $0x60] sm:$0xff]  }
 0x208   :  { %v2930_v7 = vpop.f32.mrf.mxu0  ;;  %v2971_v8 = vpop.f32.mrf.mxu1  ;;  %v4716_v1 = vld [vmem:[%s6207_s5 + $0x20] sm:$0xff]   ;;  %4019 = vmatprep.subr.bf16.mxu0 %v4715_v0 }
 0x209   :  { %v2931_v36 = vadd.f32 %v2930_v7, %v2888_v21  ;;  %v2972_v24 = vadd.f32 %v2971_v8, %v2929_v26  ;;  %4020 = vmatpush3.bf16.msra.mxu0 %v4716_v1  ;;  %v4722_v7 = vld [vmem:[%s6207_s5 + $0x8] sm:$0xff]   ;;  %v4723_v8 = vld [vmem:[%s6207_s5 + $0x40] sm:$0xff]  }
 0x20a   :  { %v2973_v17 = vpop.f32.mrf.mxu1  ;;  %4021 = vmatprep.subr.bf16.mxu0 %v4717_v2 }
 0x20b   :  { %v2974_v40 = vadd.f32 %v2973_v17, %v2931_v36 }
 0x20d   :  { %4022 = vmatpush3.bf16.msra.mxu0 %v4718_v3 }
 0x20e   :  { %4023 = vmatprep.subr.bf16.mxu0 %v4719_v4 }
 0x211   :  { %4024 = vmatpush3.bf16.msra.mxu0 %v4720_v5 }
 0x212   :  { %4025 = vmatprep.subr.bf16.mxu0 %v4721_v6 }
 0x215   :  { %4026 = vmatpush3.bf16.msra.mxu0 %v4722_v7 }
 0x216   :  { %4027 = vmatprep.subr.bf16.mxu0 %v4723_v8 }
 0x219   :  { %4028 = vmatpush3.bf16.msra.mxu0 %v4724_v9 }
 0x242   :  { %v3010_v12 = vpop.f32.mrf.mxu0 }
 0x243   :  { %v3011_v42 = vadd.f32 %v3010_v12, %v2968_v34 }
 0x244   :  { %v3012_v16 = vpop.f32.mrf.mxu0  ;;  %v3053_v20 = vpop.f32.mrf.mxu1 }
 0x245   :  { %v3013_v38 = vadd.f32 %v3012_v16, %v2970_v30  ;;  %v3054_v49 = vadd.f32 %v3053_v20, %v3011_v42 }
 0x246   :  { %v3014_v29 = vpop.f32.mrf.mxu0  ;;  %v3055_v33 = vpop.f32.mrf.mxu1 }
 0x247   :  { %v3015_v41 = vadd.f32 %v3014_v29, %v2972_v24  ;;  %v3056_v44 = vadd.f32 %v3055_v33, %v3013_v38 }
 0x248   :  { %v3016_v39 = vpop.f32.mrf.mxu0  ;;  %v3057_v31 = vpop.f32.mrf.mxu1 }
 0x249   :  { %v3017_v45 = vadd.f32 %v3016_v39, %v2974_v40  ;;  %v3058_v47 = vadd.f32 %v3057_v31, %v3015_v41 }
 0x24a   :  { %v3059_v46 = vpop.f32.mrf.mxu1 }
 0x24b   :  { %v3060_v51 = vadd.f32 %v3059_v46, %v3017_v45 }
 0x252   :  { %v3096_v43 = vpop.f32.mrf.mxu0 }
 0x253   :  { %v3097_v53 = vadd.f32 %v3096_v43, %v3054_v49 }
 0x254   :  { %v3098_v37 = vpop.f32.mrf.mxu0 }
 0x255   :  { %v3099_v48 = vadd.f32 %v3098_v37, %v3056_v44 }
 0x256   :  { %v3100_v50 = vpop.f32.mrf.mxu0 }
 0x257   :  { %v3101_v52 = vadd.f32 %v3100_v50, %v3058_v47  ;;  %4725 = vtanh.f32 %v3099_v48 }
 0x258   :  { %v3102_v54 = vpop.f32.mrf.mxu0 }
 0x259   :  { %v3103_v55 = vadd.f32 %v3102_v54, %v3060_v51  ;;  %4727 = vtanh.f32 %v3101_v52 }
 0x25b   :  { %4729 = vtanh.f32 %v3103_v55 }
 0x25c   :  { %4731 = vtanh.f32 %v3097_v53 }
 0x264   :  { %v4726_v56 = vpop.eup %4725 }
 0x266   :  { %v4728_v57 = vpop.eup %4727 }
 0x268   :  { %v4730_v58 = vpop.eup %4729 }
 0x269   :  { %v4732_v59 = vpop.eup %4731  ;;  %v3110_v60 = vpack.c.bf16 %v4730_v58, %v4726_v56 }
 0x26a   :  { %v3109_v61 = vpack.c.bf16 %v4728_v57, %v4732_v59 }
 0x26b   :  { %3347 = vmatprep.mubr.bf16.mxu1 %v3110_v60 }
 0x26c   :  { %3348 = vmatmul.mubr.bf16.vlgmr.msra.gmra.mxu1 %v3109_v61 }
 0x32c   :  { %v3349_v12 = vpop.f32.mrf.mxu1 }
 0x32d   :  { %v3350_v19 = vadd.f32 %v3349_v12, %v3148_v13 }
 0x32e   :  { %v3351_v14 = vpop.f32.mrf.mxu1 }
 0x32f   :  { %v3352_v15 = vadd.f32 %v3351_v14, %v3152_v11 }
 0x330   :  { %v3353_v17 = vpop.f32.mrf.mxu1 }
 0x331   :  { %v3354_v18 = vadd.f32 %v3353_v17, %v3148_v13  ;;  %4733 = vtanh.f32 %v3352_v15 }
 0x332   :  { %v3355_v16 = vpop.f32.mrf.mxu1 }
 0x333   :  { %v3356_v20 = vadd.f32 %v3355_v16, %v3152_v11  ;;  %4735 = vtanh.f32 %v3354_v18 }
 0x335   :  { %4737 = vtanh.f32 %v3356_v20 }
 0x336   :  { %4739 = vtanh.f32 %v3350_v19 }
 0x33e   :  { %v4734_v23 = vpop.eup %4733 }
 0x340   :  { %v4736_v22 = vpop.eup %4735 }
 0x342   :  { %v4738_v25 = vpop.eup %4737 }
 0x343   :  { %v4740_v21 = vpop.eup %4739  ;;  %v3363_v32 = vpack.c.bf16 %v4738_v25, %v4734_v23 }
 0x344   :  { %v3362_v26 = vpack.c.bf16 %v4736_v22, %v4740_v21 }
 0x345   :  { %3531 = vmatprep.mubr.bf16.mxu0 %v3363_v32 }
 0x346   :  { %3532 = vmatmul.mubr.bf16.vlgmr.msra.gmra.mxu0 %v3362_v26 }
 0x406   :  { %v4029_v28 = vpop.f32.mrf.mxu0 }
 0x408   :  { %v4030_v27 = vpop.f32.mrf.mxu0 }
 0x409   :  { %v4031_v29 = vadd.f32 %v4030_v27, %v4029_v28 }
 0x40a   :  { %v4032_v33 = vpop.f32.mrf.mxu0 }
 0x40b   :  { %v3534_v30 = vadd.f32 %v4031_v29, %v3996_v35 }
 0x40c   :  { %v4033_v36 = vpop.f32.mrf.mxu0 }
 0x40d   :  { %3540 = vst [vmem:[%s6211_s7] sm:$0xff] %v3534_v30  ;;  %v4034_v24 = vadd.f32 %v4033_v36, %v4032_v33 }
 0x40f   :  { %v3537_v38 = vadd.f32 %v4034_v24, %v3996_v35 }
 0x411   :  { %3541 = vst [vmem:[%s6211_s7 + $0x8] sm:$0xff] %v3537_v38 }

</bundles_post_ra>
